<compile_context>
chip_gen: v7x
topology: tpu7x:2x2x1
jax: 0.10.0
libtpu: 0.0.40
codegen_flags: <defaults>
</compile_context>

<pallas_src>
import jax
import jax.numpy as jnp
import numpy as np
from jax.experimental import pallas as pl
from jax.experimental.pallas import tpu as pltpu

# FlatSquare7x7NNUEv4(dim_middle=128, dim_feature=32, input_type='basic-nostm',
#                     value_no_draw=False)
DIM_MIDDLE = 128
DIM_FEATURE = 32
DIM_PLANE = 2            # 'basic-nostm' -> 2 binary planes (self / opponent stones)
DIM_VHEAD = 3            # value_no_draw=False -> 3 value logits
VHEAD_PAD = 128          # value logits zero-padded to a full 128-lane (unmasked) store
BOARD = 7
QMAX = 127.0 / 128.0
MAX_TILE = 32            # boards per grid step (review: 8 -> 32)

# get_features chunk table: (y0, y1, x0, x1, rot90_k, transpose)
CHUNK_INDICES = (
    ((0, 4, 0, 4, 0, False), (0, 4, 3, 7, 1, False), (3, 7, 3, 7, 2, False),
     (3, 7, 0, 4, 3, False)),
    ((0, 4, 1, 5, 0, False), (1, 5, 3, 7, 1, False), (3, 7, 2, 6, 2, False),
     (2, 6, 0, 4, 3, False), (1, 5, 0, 4, 0, True), (0, 4, 2, 6, 1, True),
     (2, 6, 3, 7, 2, True), (3, 7, 1, 5, 3, True)),
    ((1, 5, 1, 5, 0, False), (1, 5, 2, 6, 1, False), (2, 6, 2, 6, 2, False),
     (2, 6, 1, 5, 3, False)),
)
CHUNKS_PER_GROUP = tuple(len(g) for g in CHUNK_INDICES)    # (4, 8, 4)
NUM_CHUNKS = sum(CHUNKS_PER_GROUP)                         # 16

# source positions (flat 3x3 grid) of each 2x2 output window, (kh, kw) row-major
_WIN_3TO2 = ((0, 1, 3, 4), (1, 2, 4, 5), (3, 4, 6, 7), (4, 5, 7, 8))

_MAPPING_KEYS = ('w1s', 'w2s', 'b2s', 'w3s', 'b3s', 'w4s', 'b4s', 'w5s', 'b5s',
                 'w6s', 'b6s')
_HEAD_KEYS = ('wh1', 'bh1', 'wh2', 'bh2', 'wh3', 'bh3')


# ----------------------------------------------------------------------------------
# static patch-gather table (replaces the rot90/transpose/stack wrapper extraction)
# ----------------------------------------------------------------------------------
def _build_patch_table():
    """(9, 16, 8) table of flat indices into the 98-element (2,7,7) board.

    table[pos, chunk, k] is the source cell of the k-th column (in_channel, kh, kw)
    of layer-1's im2col row for 3x3 output position pos of that chunk.
    """
    idx = np.arange(DIM_PLANE * BOARD * BOARD, dtype=np.int32).reshape(
        DIM_PLANE, BOARD, BOARD)
    cols = []
    for group in CHUNK_INDICES:
        for (y0, y1, x0, x1, k, t) in group:
            sub = np.rot90(idx[:, y0:y1, x0:x1], k, axes=(1, 2))
            if t:
                sub = np.transpose(sub, (0, 2, 1))
            rows = [sub[:, oy:oy + 2, ox:ox + 2].reshape(8)
                    for oy in range(3) for ox in range(3)]
            cols.append(np.stack(rows, axis=0))             # (9, 8)
    return np.stack(cols, axis=1)                           # (9, 16, 8)


_PATCH_TABLE = _build_patch_table()


def _extract_chunks(planes):
    """(B, 2, 7, 7) -> list of 3 arrays (B, Cg, 2, 4, 4).  Used only by forward_ref
    (structurally independent cross-check of the gather table)."""
    groups = []
    for chunk_index in CHUNK_INDICES:
        chunks = []
        for (y0, y1, x0, x1, k, t) in chunk_index:
            c = jnp.rot90(planes[:, :, y0:y1, x0:x1], k, axes=(2, 3))
            if t:
                c = jnp.swapaxes(c, 2, 3)
            chunks.append(c)
        groups.append(jnp.stack(chunks, axis=1))
    return groups


# ----------------------------------------------------------------------------------
# Pallas kernel
# ----------------------------------------------------------------------------------
def _mapping_tower(p_ref, n, w1, w2, b2, w3, b3, w4, b4, w5, b5, w6, b6):
    """One group's 6-layer mapping tower on n = T*Cg chunks.

    p_ref is the (9, n, 8) layer-1 im2col block (position-major leading axis, bf16
    binary values).  Every matmul takes bf16 operands and accumulates in f32 on the
    MXU; bias / ReLU / clamp / fake_quant math stays f32.  Returns (n, 32) features.
    """
    f32, bf16 = jnp.float32, jnp.bfloat16
    # layer 1: 2x2 conv on the 4x4 chunk -> 3x3 grid, relu (no norm, no bias).
    # Load slabs as f32 so the sublane concat stays 8-row aligned; cast at the dot.
    x = jnp.concatenate([p_ref[p].astype(f32) for p in range(9)], axis=0)   # (9n, 8)
    x = jnp.maximum(jnp.dot(x.astype(bf16), w1, preferred_element_type=f32), 0.0)
    # layer 2: 1x1 conv + bn + relu
    x = jnp.maximum(jnp.dot(x.astype(bf16), w2, preferred_element_type=f32) + b2, 0.0)
    # layer 3: 2x2 conv on the 3x3 grid -> 2x2, bn + relu.  Positions live in
    # contiguous n-row slabs, so im2col is slab slicing + lane concatenation.
    slab = lambda a, p: a[p * n:(p + 1) * n, :]
    x = jnp.concatenate(
        [jnp.concatenate([slab(x, p) for p in win], axis=-1) for win in _WIN_3TO2],
        axis=0)                                                             # (4n, 512)
    x = jnp.maximum(jnp.dot(x.astype(bf16), w3, preferred_element_type=f32) + b3, 0.0)
    # layer 4: 1x1 conv + bn + relu
    x = jnp.maximum(jnp.dot(x.astype(bf16), w4, preferred_element_type=f32) + b4, 0.0)
    # layer 5: 2x2 conv on the 2x2 grid -> 1x1, bn + relu
    x = jnp.concatenate([slab(x, p) for p in range(4)], axis=-1)            # (n, 512)
    x = jnp.maximum(jnp.dot(x.astype(bf16), w5, preferred_element_type=f32) + b5, 0.0)
    # layer 6: 1x1 conv + bn (no activation)
    x = jnp.dot(x.astype(bf16), w6, preferred_element_type=f32) + b6        # (n, 32)
    # get_features clamp + forward's fake_quant(scale=128), exact f32 math
    x = jnp.clip(x, -1.0, QMAX)
    return jnp.round(x * 128.0) * (1.0 / 128.0)


def _nnue_kernel(p0_ref, p1_ref, p2_ref,
                 w1s, w2s, b2s, w3s, b3s, w4s, b4s, w5s, b5s, w6s, b6s,
                 wh1, bh1, wh2, bh2, wh3, bh3, value_ref):
    f32, bf16 = jnp.float32, jnp.bfloat16
    t = value_ref.shape[0]                                 # boards in this tile
    feature = jnp.zeros((t, DIM_FEATURE), f32)
    for g, p_ref in enumerate((p0_ref, p1_ref, p2_ref)):
        n = p_ref.shape[1]                                 # t * chunks-in-group
        cg = n // t
        feats = _mapping_tower(p_ref, n, w1s[g], w2s[g], b2s[g], w3s[g], b3s[g],
                               w4s[g], b4s[g], w5s[g], b5s[g], w6s[g], b6s[g])
        # per-board sum of the chunk features (rows are board-major) as a tiny
        # selection matmul -- avoids sublane-splitting reshapes / strided reduces.
        # feats are multiples of 1/128 and sel is 0/1, so the bf16 casts are exact.
        row = jax.lax.broadcasted_iota(jnp.int32, (t, n), 1)
        brd = jax.lax.broadcasted_iota(jnp.int32, (t, n), 0)
        sel = jnp.logical_and(row >= brd * cg, row < (brd + 1) * cg).astype(bf16)
        feature = feature + jnp.dot(sel, feats.astype(bf16),
                                    preferred_element_type=f32)

    # value head: 3 quantized LinearBlocks with the module's pre-clamps
    v = jnp.clip(feature, -1.0, QMAX)
    v = jnp.dot(v.astype(bf16), wh1[...], preferred_element_type=f32) + bh1[...]
    v = jnp.clip(v, 0.0, QMAX)
    v = jnp.dot(v.astype(bf16), wh2[...], preferred_element_type=f32) + bh2[...]
    v = jnp.clip(v, 0.0, QMAX)
    v = jnp.dot(v.astype(bf16), wh3[...], preferred_element_type=f32) + bh3[...]
    value_ref[...] = v                                      # (t, 128) unmasked store


def _pick_tile(b):
    """Boards per grid step.  Large tiles amortize per-step overhead and fill MXU M;
    B > 8 uses >= 2 grid steps (both v7x TensorCores busy) with the tile a multiple
    of 8 so every block stays (8,128)-aligned; B <= 8 runs as one full-array block."""
    if b <= 8:
        return b
    return min(MAX_TILE, max(8, ((b + 1) // 2) // 8 * 8))


def flat_square7x7_nnue_v4_forward(planes, params):
    """Forward pass: planes (B, 2, 7, 7) f32 -> (value (B, 3), policy (B, 7, 7))."""
    b, c, h, w = planes.shape
    t = _pick_tile(b)
    pad = (-b) % t
    bp = b + pad
    if pad:
        planes = jnp.concatenate(
            [planes, jnp.zeros((pad, c, h, w), planes.dtype)], axis=0)

    # chunk extraction + layer-1 im2col as ONE static gather (position-major layout);
    # bf16 storage is lossless for the binary planes and halves the patch DMA bytes.
    flat = planes.reshape(bp, DIM_PLANE * BOARD * BOARD)
    gath = jnp.take(flat, _PATCH_TABLE.reshape(-1), axis=1)
    gath = gath.reshape(bp, 9, NUM_CHUNKS, 8).transpose(1, 0, 2, 3)  # (9, Bp, 16, 8)
    gath = gath.astype(jnp.bfloat16)
    patches, off = [], 0
    for cg in CHUNKS_PER_GROUP:
        patches.append(gath[:, :, off:off + cg, :].reshape(9, bp * cg, 8))
        off += cg

    def patch_spec(cg):
        return pl.BlockSpec((9, t * cg, 8), lambda i: (0, i, 0))

    def full_spec(arr):
        nd = arr.ndim
        return pl.BlockSpec(tuple(arr.shape), lambda i, _nd=nd: (0,) * _nd)

    const_args = [params[k] for k in _MAPPING_KEYS] + [params[k] for k in _HEAD_KEYS]
    in_specs = ([patch_spec(cg) for cg in CHUNKS_PER_GROUP]
                + [full_spec(a) for a in const_args])

    value = pl.pallas_call(
        _nnue_kernel,
        out_shape=jax.ShapeDtypeStruct((bp, VHEAD_PAD), jnp.float32),
        grid_spec=pltpu.PrefetchScalarGridSpec(
            num_scalar_prefetch=0,
            grid=(bp // t,),
            in_specs=in_specs,
            out_specs=pl.BlockSpec((t, VHEAD_PAD), lambda i: (i, 0)),
        ),
        compiler_params=pltpu.CompilerParams(
            dimension_semantics=("parallel",),
            # ~2 MB resident bf16 weights (x2 buffers) + <8 MB intermediates at T=32.
            vmem_limit_bytes=32 * 1024 * 1024),
    )(patches[0], patches[1], patches[2], *const_args)

    value = value[:b, :DIM_VHEAD]
    policy = jnp.zeros((b, h, w), value.dtype)              # module returns zeros
    return value, policy


# ----------------------------------------------------------------------------------
# parameter construction (random, BN folded offline, bf16 weights) + JAX reference
# ----------------------------------------------------------------------------------
def _fake_quant(x, scale):
    return jnp.round(x * scale) / scale


def _fold_bn(w, gamma, beta, mean, var, eps=1e-5):
    s = gamma / jnp.sqrt(var + eps)
    return w * s[:, None, None, None], beta - mean * s


def _conv_mat_in_major(w):
    """(O, I, kh, kw) conv weight -> (I*kh*kw, O) matmul weight, rows (in, kh, kw)."""
    o, i, kh, kw = w.shape
    return jnp.transpose(w, (1, 2, 3, 0)).reshape(i * kh * kw, o)


def _conv_mat_pos_major(w):
    """(O, I, kh, kw) conv weight -> (kh*kw*I, O) matmul weight, rows (kh, kw, in)."""
    o, i, kh, kw = w.shape
    return jnp.transpose(w, (2, 3, 1, 0)).reshape(kh * kw * i, o)


def init_params(key):
    """Random eval-mode parameters.  BN is folded into (weight, bias) offline; matmul
    weights are stored in bf16 (MXU operands) and biases in f32.  The conv-form copy
    used by forward_ref carries the SAME bf16-rounded weights so both paths agree."""
    bf16 = jnp.bfloat16
    g_keys = jax.random.split(key, 4)
    mats = {k: [] for k in _MAPPING_KEYS}
    conv_groups = []

    def conv_w(k, o, i, s, gain=1.0):
        bound = gain * float(np.sqrt(6.0 / (i * s * s)))
        return jax.random.uniform(k, (o, i, s, s), jnp.float32, -bound, bound)

    def bn(k, ch):
        k1, k2, k3, k4 = jax.random.split(k, 4)
        return (jax.random.uniform(k1, (ch,), jnp.float32, 0.5, 1.5),
                jax.random.uniform(k2, (ch,), jnp.float32, -0.1, 0.1),
                0.1 * jax.random.normal(k3, (ch,), jnp.float32),
                jax.random.uniform(k4, (ch,), jnp.float32, 0.5, 1.5))

    for g in range(3):
        ks = jax.random.split(g_keys[g], 11)
        # L1: Conv2dBlock(2, 128, ks=2, relu, bias=False) -- no norm
        layers = [(conv_w(ks[0], DIM_MIDDLE, DIM_PLANE, 2),
                   jnp.zeros((DIM_MIDDLE,), jnp.float32))]
        # L2..L6: 1x1 / 2x2 convs, eval-mode BatchNorm folded into (weight, bias)
        spec = ((DIM_MIDDLE, DIM_MIDDLE, 1, 1.0), (DIM_MIDDLE, DIM_MIDDLE, 2, 1.0),
                (DIM_MIDDLE, DIM_MIDDLE, 1, 1.0), (DIM_MIDDLE, DIM_MIDDLE, 2, 1.0),
                (DIM_FEATURE, DIM_MIDDLE, 1, 0.25))
        for li, (o, i, s, gain) in enumerate(spec):
            wf, bf = _fold_bn(conv_w(ks[1 + 2 * li], o, i, s, gain),
                              *bn(ks[2 + 2 * li], o))
            layers.append((wf, bf))
        # bf16-round the folded conv weights once; kernel and reference share them.
        layers = [(wc.astype(bf16), bc) for (wc, bc) in layers]
        conv_groups.append(tuple(layers))

        (w1, _), (w2, b2), (w3, b3), (w4, b4), (w5, b5), (w6, b6) = layers
        mats['w1s'].append(_conv_mat_in_major(w1))
        mats['w2s'].append(_conv_mat_pos_major(w2)); mats['b2s'].append(b2.reshape(1, -1))
        mats['w3s'].append(_conv_mat_pos_major(w3)); mats['b3s'].append(b3.reshape(1, -1))
        mats['w4s'].append(_conv_mat_pos_major(w4)); mats['b4s'].append(b4.reshape(1, -1))
        mats['w5s'].append(_conv_mat_pos_major(w5)); mats['b5s'].append(b5.reshape(1, -1))
        mats['w6s'].append(_conv_mat_pos_major(w6)); mats['b6s'].append(b6.reshape(1, -1))

    params = {k: jnp.stack(v, axis=0) for k, v in mats.items()}
    params['conv'] = tuple(conv_groups)     # conv-form copy, used only by forward_ref

    # value head: LinearBlock(32,32,quant=True,weight_quant_scale=256),
    #             LinearBlock(32,32,quant=True), LinearBlock(32,3,quant=True)
    # TODO(synk): LinearBlock's exact input/bias quant-scale details are approximated;
    # weights are clipped to the module's weight_clipping range and fake-quantized
    # offline (the resulting k/256 and k/128 grids are exactly representable in bf16).
    hk = jax.random.split(g_keys[3], 6)

    def linear(kw, kb, fi, fo, wscale):
        bound = 1.0 / float(np.sqrt(fi))
        wgt = jax.random.uniform(kw, (fo, fi), jnp.float32, -bound, bound)
        bia = jax.random.uniform(kb, (fo,), jnp.float32, -bound, bound)
        wgt = _fake_quant(jnp.clip(wgt, -1.0, QMAX), wscale)
        bia = _fake_quant(bia, wscale * 128.0)
        return wgt.T.astype(bf16), bia.reshape(1, -1)       # store W^T for x @ W^T

    params['wh1'], params['bh1'] = linear(hk[0], hk[1], DIM_FEATURE, 32, 256.0)
    params['wh2'], params['bh2'] = linear(hk[2], hk[3], 32, 32, 128.0)
    wh3, bh3 = linear(hk[4], hk[5], 32, DIM_VHEAD, 128.0)
    # zero-pad the final layer to 128 output lanes so the kernel store is unmasked.
    params['wh3'] = jnp.pad(wh3, ((0, 0), (0, VHEAD_PAD - DIM_VHEAD)))
    params['bh3'] = jnp.pad(bh3, ((0, 0), (0, VHEAD_PAD - DIM_VHEAD)))
    return params


def forward_ref(planes, params):
    """Pure-JAX reference: lax.conv on the conv-form weights with the same bf16
    operand rounding as the kernel (bf16 inputs, f32 accumulation)."""
    f32, bf16 = jnp.float32, jnp.bfloat16
    b = planes.shape[0]
    feature = jnp.zeros((b, DIM_FEATURE), f32)
    for g, chunks in enumerate(_extract_chunks(planes)):
        cg = chunks.shape[1]
        x = chunks.reshape(b * cg, DIM_PLANE, 4, 4).astype(f32)
        for li, (wc, bc) in enumerate(params['conv'][g]):
            x = jax.lax.conv_general_dilated(
                x.astype(bf16), wc, (1, 1), 'VALID',
                dimension_numbers=('NCHW', 'OIHW', 'NCHW'),
                preferred_element_type=f32)
            x = x + bc.reshape(1, -1, 1, 1)
            if li < 5:
                x = jnp.maximum(x, 0.0)
        feat = jnp.clip(x.reshape(b, cg, DIM_FEATURE), -1.0, QMAX)
        feature = feature + jnp.sum(jnp.round(feat * 128.0) / 128.0, axis=1)
    v = jnp.clip(feature, -1.0, QMAX)
    v = jnp.dot(v.astype(bf16), params['wh1'], preferred_element_type=f32) + params['bh1']
    v = jnp.clip(v, 0.0, QMAX)
    v = jnp.dot(v.astype(bf16), params['wh2'], preferred_element_type=f32) + params['bh2']
    v = jnp.clip(v, 0.0, QMAX)
    v = jnp.dot(v.astype(bf16), params['wh3'], preferred_element_type=f32) + params['bh3']
    value = v[:, :DIM_VHEAD]
    policy = jnp.zeros((b, BOARD, BOARD), value.dtype)
    return value, policy


if __name__ == "__main__":
    B = 2
    key = jax.random.PRNGKey(0)
    k_board, k_params = jax.random.split(key)

    # synthetic 7x7 board: 0 empty, 1 self stone, 2 opponent stone -> 2 binary planes
    board = jax.random.randint(k_board, (B, BOARD, BOARD), 0, 3)
    planes = jnp.stack([board == 1, board == 2], axis=1).astype(jnp.float32)

    params = init_params(k_params)

    fwd = jax.jit(flat_square7x7_nnue_v4_forward)
    value, policy = jax.block_until_ready(fwd(planes, params))

    v_ref, p_ref = forward_ref(planes, params)
    np.testing.assert_allclose(np.asarray(value), np.asarray(v_ref),
                               rtol=1e-2, atol=1e-2)
    assert value.shape == (B, DIM_VHEAD)
    assert policy.shape == (B, BOARD, BOARD) and not np.any(np.asarray(policy))
    print("KERNEL_OK")
</pallas_src>

<mosaic_0001>
module attributes {stable_mosaic.version = 11 : i64} {
  func.func @_nnue_kernel(%arg0: i32, %arg1: memref<9x8x8xbf16, #tpu.memory_space<vmem>>, %arg2: memref<9x16x8xbf16, #tpu.memory_space<vmem>>, %arg3: memref<9x8x8xbf16, #tpu.memory_space<vmem>>, %arg4: memref<3x8x128xbf16, #tpu.memory_space<vmem>>, %arg5: memref<3x128x128xbf16, #tpu.memory_space<vmem>>, %arg6: memref<3x1x128xf32, #tpu.memory_space<vmem>>, %arg7: memref<3x512x128xbf16, #tpu.memory_space<vmem>>, %arg8: memref<3x1x128xf32, #tpu.memory_space<vmem>>, %arg9: memref<3x128x128xbf16, #tpu.memory_space<vmem>>, %arg10: memref<3x1x128xf32, #tpu.memory_space<vmem>>, %arg11: memref<3x512x128xbf16, #tpu.memory_space<vmem>>, %arg12: memref<3x1x128xf32, #tpu.memory_space<vmem>>, %arg13: memref<3x128x32xbf16, #tpu.memory_space<vmem>>, %arg14: memref<3x1x32xf32, #tpu.memory_space<vmem>>, %arg15: memref<32x32xbf16, #tpu.memory_space<vmem>>, %arg16: memref<1x32xf32, #tpu.memory_space<vmem>>, %arg17: memref<32x32xbf16, #tpu.memory_space<vmem>>, %arg18: memref<1x32xf32, #tpu.memory_space<vmem>>, %arg19: memref<32x128xbf16, #tpu.memory_space<vmem>>, %arg20: memref<1x128xf32, #tpu.memory_space<vmem>>, %arg21: memref<2x128xf32, #tpu.memory_space<vmem>>) attributes {dimension_semantics = [#tpu.dimension_semantics<parallel>], iteration_bounds = array<i64: 1>, scalar_prefetch = 0 : i64, scratch_operands = 0 : i64, tpu.core_type = #tpu.core_type<tc>, window_params = [{transform_indices = @transform_0, window_bounds = array<i64: 9, 8, 8>}, {transform_indices = @transform_1, window_bounds = array<i64: 9, 16, 8>}, {transform_indices = @transform_2, window_bounds = array<i64: 9, 8, 8>}, {pipeline_mode = #tpu.pipeline_mode<synchronous>, transform_indices = @transform_3, window_bounds = array<i64: 3, 8, 128>}, {pipeline_mode = #tpu.pipeline_mode<synchronous>, transform_indices = @transform_4, window_bounds = array<i64: 3, 128, 128>}, {pipeline_mode = #tpu.pipeline_mode<synchronous>, transform_indices = @transform_5, window_bounds = array<i64: 3, 1, 128>}, {pipeline_mode = #tpu.pipeline_mode<synchronous>, transform_indices = @transform_6, window_bounds = array<i64: 3, 512, 128>}, {pipeline_mode = #tpu.pipeline_mode<synchronous>, transform_indices = @transform_7, window_bounds = array<i64: 3, 1, 128>}, {pipeline_mode = #tpu.pipeline_mode<synchronous>, transform_indices = @transform_8, window_bounds = array<i64: 3, 128, 128>}, {pipeline_mode = #tpu.pipeline_mode<synchronous>, transform_indices = @transform_9, window_bounds = array<i64: 3, 1, 128>}, {pipeline_mode = #tpu.pipeline_mode<synchronous>, transform_indices = @transform_10, window_bounds = array<i64: 3, 512, 128>}, {pipeline_mode = #tpu.pipeline_mode<synchronous>, transform_indices = @transform_11, window_bounds = array<i64: 3, 1, 128>}, {pipeline_mode = #tpu.pipeline_mode<synchronous>, transform_indices = @transform_12, window_bounds = array<i64: 3, 128, 32>}, {pipeline_mode = #tpu.pipeline_mode<synchronous>, transform_indices = @transform_13, window_bounds = array<i64: 3, 1, 32>}, {pipeline_mode = #tpu.pipeline_mode<synchronous>, transform_indices = @transform_14, window_bounds = array<i64: 32, 32>}, {pipeline_mode = #tpu.pipeline_mode<synchronous>, transform_indices = @transform_15, window_bounds = array<i64: 1, 32>}, {pipeline_mode = #tpu.pipeline_mode<synchronous>, transform_indices = @transform_16, window_bounds = array<i64: 32, 32>}, {pipeline_mode = #tpu.pipeline_mode<synchronous>, transform_indices = @transform_17, window_bounds = array<i64: 1, 32>}, {pipeline_mode = #tpu.pipeline_mode<synchronous>, transform_indices = @transform_18, window_bounds = array<i64: 32, 128>}, {pipeline_mode = #tpu.pipeline_mode<synchronous>, transform_indices = @transform_19, window_bounds = array<i64: 1, 128>}, {transform_indices = @transform_20, window_bounds = array<i64: 2, 128>}]} {
    %cst = arith.constant 0.000000e+00 : f32
    %0 = vector.broadcast %cst : f32 to vector<2x32xf32>
    %c0 = arith.constant 0 : index
    %c0_0 = arith.constant 0 : index
    %c0_1 = arith.constant 0 : index
    %1 = vector.load %arg4[%c0, %c0_0, %c0_1] : memref<3x8x128xbf16, #tpu.memory_space<vmem>>, vector<1x8x128xbf16>
    %2 = vector.shape_cast %1 : vector<1x8x128xbf16> to vector<8x128xbf16>
    %c0_2 = arith.constant 0 : index
    %c0_3 = arith.constant 0 : index
    %c0_4 = arith.constant 0 : index
    %3 = vector.load %arg5[%c0_2, %c0_3, %c0_4] : memref<3x128x128xbf16, #tpu.memory_space<vmem>>, vector<1x128x128xbf16>
    %4 = vector.shape_cast %3 : vector<1x128x128xbf16> to vector<128x128xbf16>
    %c0_5 = arith.constant 0 : index
    %c0_6 = arith.constant 0 : index
    %c0_7 = arith.constant 0 : index
    %5 = vector.load %arg6[%c0_5, %c0_6, %c0_7] : memref<3x1x128xf32, #tpu.memory_space<vmem>>, vector<1x1x128xf32>
    %6 = vector.shape_cast %5 : vector<1x1x128xf32> to vector<1x128xf32>
    %c0_8 = arith.constant 0 : index
    %c0_9 = arith.constant 0 : index
    %c0_10 = arith.constant 0 : index
    %7 = vector.load %arg7[%c0_8, %c0_9, %c0_10] : memref<3x512x128xbf16, #tpu.memory_space<vmem>>, vector<1x512x128xbf16>
    %8 = vector.shape_cast %7 : vector<1x512x128xbf16> to vector<512x128xbf16>
    %c0_11 = arith.constant 0 : index
    %c0_12 = arith.constant 0 : index
    %c0_13 = arith.constant 0 : index
    %9 = vector.load %arg8[%c0_11, %c0_12, %c0_13] : memref<3x1x128xf32, #tpu.memory_space<vmem>>, vector<1x1x128xf32>
    %10 = vector.shape_cast %9 : vector<1x1x128xf32> to vector<1x128xf32>
    %c0_14 = arith.constant 0 : index
    %c0_15 = arith.constant 0 : index
    %c0_16 = arith.constant 0 : index
    %11 = vector.load %arg9[%c0_14, %c0_15, %c0_16] : memref<3x128x128xbf16, #tpu.memory_space<vmem>>, vector<1x128x128xbf16>
    %12 = vector.shape_cast %11 : vector<1x128x128xbf16> to vector<128x128xbf16>
    %c0_17 = arith.constant 0 : index
    %c0_18 = arith.constant 0 : index
    %c0_19 = arith.constant 0 : index
    %13 = vector.load %arg10[%c0_17, %c0_18, %c0_19] : memref<3x1x128xf32, #tpu.memory_space<vmem>>, vector<1x1x128xf32>
    %14 = vector.shape_cast %13 : vector<1x1x128xf32> to vector<1x128xf32>
    %c0_20 = arith.constant 0 : index
    %c0_21 = arith.constant 0 : index
    %c0_22 = arith.constant 0 : index
    %15 = vector.load %arg11[%c0_20, %c0_21, %c0_22] : memref<3x512x128xbf16, #tpu.memory_space<vmem>>, vector<1x512x128xbf16>
    %16 = vector.shape_cast %15 : vector<1x512x128xbf16> to vector<512x128xbf16>
    %c0_23 = arith.constant 0 : index
    %c0_24 = arith.constant 0 : index
    %c0_25 = arith.constant 0 : index
    %17 = vector.load %arg12[%c0_23, %c0_24, %c0_25] : memref<3x1x128xf32, #tpu.memory_space<vmem>>, vector<1x1x128xf32>
    %18 = vector.shape_cast %17 : vector<1x1x128xf32> to vector<1x128xf32>
    %c0_26 = arith.constant 0 : index
    %c0_27 = arith.constant 0 : index
    %c0_28 = arith.constant 0 : index
    %19 = vector.load %arg13[%c0_26, %c0_27, %c0_28] : memref<3x128x32xbf16, #tpu.memory_space<vmem>>, vector<1x128x32xbf16>
    %20 = vector.shape_cast %19 : vector<1x128x32xbf16> to vector<128x32xbf16>
    %c0_29 = arith.constant 0 : index
    %c0_30 = arith.constant 0 : index
    %c0_31 = arith.constant 0 : index
    %21 = vector.load %arg14[%c0_29, %c0_30, %c0_31] : memref<3x1x32xf32, #tpu.memory_space<vmem>>, vector<1x1x32xf32>
    %22 = vector.shape_cast %21 : vector<1x1x32xf32> to vector<1x32xf32>
    %c0_32 = arith.constant 0 : index
    %c0_33 = arith.constant 0 : index
    %c0_34 = arith.constant 0 : index
    %23 = vector.load %arg1[%c0_32, %c0_33, %c0_34] : memref<9x8x8xbf16, #tpu.memory_space<vmem>>, vector<1x8x8xbf16>
    %24 = vector.shape_cast %23 : vector<1x8x8xbf16> to vector<8x8xbf16>
    %25 = arith.extf %24 : vector<8x8xbf16> to vector<8x8xf32>
    %c1 = arith.constant 1 : index
    %c0_35 = arith.constant 0 : index
    %c0_36 = arith.constant 0 : index
    %26 = vector.load %arg1[%c1, %c0_35, %c0_36] : memref<9x8x8xbf16, #tpu.memory_space<vmem>>, vector<1x8x8xbf16>
    %27 = vector.shape_cast %26 : vector<1x8x8xbf16> to vector<8x8xbf16>
    %28 = arith.extf %27 : vector<8x8xbf16> to vector<8x8xf32>
    %c2 = arith.constant 2 : index
    %c0_37 = arith.constant 0 : index
    %c0_38 = arith.constant 0 : index
    %29 = vector.load %arg1[%c2, %c0_37, %c0_38] : memref<9x8x8xbf16, #tpu.memory_space<vmem>>, vector<1x8x8xbf16>
    %30 = vector.shape_cast %29 : vector<1x8x8xbf16> to vector<8x8xbf16>
    %31 = arith.extf %30 : vector<8x8xbf16> to vector<8x8xf32>
    %c3 = arith.constant 3 : index
    %c0_39 = arith.constant 0 : index
    %c0_40 = arith.constant 0 : index
    %32 = vector.load %arg1[%c3, %c0_39, %c0_40] : memref<9x8x8xbf16, #tpu.memory_space<vmem>>, vector<1x8x8xbf16>
    %33 = vector.shape_cast %32 : vector<1x8x8xbf16> to vector<8x8xbf16>
    %34 = arith.extf %33 : vector<8x8xbf16> to vector<8x8xf32>
    %c4 = arith.constant 4 : index
    %c0_41 = arith.constant 0 : index
    %c0_42 = arith.constant 0 : index
    %35 = vector.load %arg1[%c4, %c0_41, %c0_42] : memref<9x8x8xbf16, #tpu.memory_space<vmem>>, vector<1x8x8xbf16>
    %36 = vector.shape_cast %35 : vector<1x8x8xbf16> to vector<8x8xbf16>
    %37 = arith.extf %36 : vector<8x8xbf16> to vector<8x8xf32>
    %c5 = arith.constant 5 : index
    %c0_43 = arith.constant 0 : index
    %c0_44 = arith.constant 0 : index
    %38 = vector.load %arg1[%c5, %c0_43, %c0_44] : memref<9x8x8xbf16, #tpu.memory_space<vmem>>, vector<1x8x8xbf16>
    %39 = vector.shape_cast %38 : vector<1x8x8xbf16> to vector<8x8xbf16>
    %40 = arith.extf %39 : vector<8x8xbf16> to vector<8x8xf32>
    %c6 = arith.constant 6 : index
    %c0_45 = arith.constant 0 : index
    %c0_46 = arith.constant 0 : index
    %41 = vector.load %arg1[%c6, %c0_45, %c0_46] : memref<9x8x8xbf16, #tpu.memory_space<vmem>>, vector<1x8x8xbf16>
    %42 = vector.shape_cast %41 : vector<1x8x8xbf16> to vector<8x8xbf16>
    %43 = arith.extf %42 : vector<8x8xbf16> to vector<8x8xf32>
    %c7 = arith.constant 7 : index
    %c0_47 = arith.constant 0 : index
    %c0_48 = arith.constant 0 : index
    %44 = vector.load %arg1[%c7, %c0_47, %c0_48] : memref<9x8x8xbf16, #tpu.memory_space<vmem>>, vector<1x8x8xbf16>
    %45 = vector.shape_cast %44 : vector<1x8x8xbf16> to vector<8x8xbf16>
    %46 = arith.extf %45 : vector<8x8xbf16> to vector<8x8xf32>
    %c8 = arith.constant 8 : index
    %c0_49 = arith.constant 0 : index
    %c0_50 = arith.constant 0 : index
    %47 = vector.load %arg1[%c8, %c0_49, %c0_50] : memref<9x8x8xbf16, #tpu.memory_space<vmem>>, vector<1x8x8xbf16>
    %48 = vector.shape_cast %47 : vector<1x8x8xbf16> to vector<8x8xbf16>
    %49 = arith.extf %48 : vector<8x8xbf16> to vector<8x8xf32>
    %50 = tpu.concatenate %25, %28, %31, %34, %37, %40, %43, %46, %49 in 0 : vector<8x8xf32>, vector<8x8xf32>, vector<8x8xf32>, vector<8x8xf32>, vector<8x8xf32>, vector<8x8xf32>, vector<8x8xf32>, vector<8x8xf32>, vector<8x8xf32> -> vector<72x8xf32>
    %51 = arith.truncf %50 : vector<72x8xf32> to vector<72x8xbf16>
    %cst_51 = arith.constant dense<0.000000e+00> : vector<72x128xf32>
    %52 = tpu.matmul %51, %2, %cst_51 {dimension_numbers = #tpu.dot_dimension_numbers<[1], [0], [0], [1], [0, 0, 1, 1], [], []>} : vector<72x8xbf16>, vector<8x128xbf16>, vector<72x128xf32> -> vector<72x128xf32>
    %cst_52 = arith.constant 0.000000e+00 : f32
    %53 = vector.broadcast %cst_52 : f32 to vector<72x128xf32>
    %54 = arith.maximumf %52, %53 : vector<72x128xf32>
    %55 = arith.truncf %54 : vector<72x128xf32> to vector<72x128xbf16>
    %cst_53 = arith.constant dense<0.000000e+00> : vector<72x128xf32>
    %56 = tpu.matmul %55, %4, %cst_53 {dimension_numbers = #tpu.dot_dimension_numbers<[1], [0], [0], [1], [0, 0, 1, 1], [], []>} : vector<72x128xbf16>, vector<128x128xbf16>, vector<72x128xf32> -> vector<72x128xf32>
    %57 = vector.broadcast %6 : vector<1x128xf32> to vector<72x128xf32>
    %58 = arith.addf %56, %57 : vector<72x128xf32>
    %cst_54 = arith.constant 0.000000e+00 : f32
    %59 = vector.broadcast %cst_54 : f32 to vector<72x128xf32>
    %60 = arith.maximumf %58, %59 : vector<72x128xf32>
    %61 = vector.extract_strided_slice %60 {offsets = [0, 0], sizes = [8, 128], strides = [1, 1]} : vector<72x128xf32> to vector<8x128xf32>
    %62 = vector.extract_strided_slice %60 {offsets = [8, 0], sizes = [8, 128], strides = [1, 1]} : vector<72x128xf32> to vector<8x128xf32>
    %63 = vector.extract_strided_slice %60 {offsets = [24, 0], sizes = [8, 128], strides = [1, 1]} : vector<72x128xf32> to vector<8x128xf32>
    %64 = vector.extract_strided_slice %60 {offsets = [32, 0], sizes = [8, 128], strides = [1, 1]} : vector<72x128xf32> to vector<8x128xf32>
    %65 = tpu.concatenate %61, %62, %63, %64 in 1 : vector<8x128xf32>, vector<8x128xf32>, vector<8x128xf32>, vector<8x128xf32> -> vector<8x512xf32>
    %66 = vector.extract_strided_slice %60 {offsets = [8, 0], sizes = [8, 128], strides = [1, 1]} : vector<72x128xf32> to vector<8x128xf32>
    %67 = vector.extract_strided_slice %60 {offsets = [16, 0], sizes = [8, 128], strides = [1, 1]} : vector<72x128xf32> to vector<8x128xf32>
    %68 = vector.extract_strided_slice %60 {offsets = [32, 0], sizes = [8, 128], strides = [1, 1]} : vector<72x128xf32> to vector<8x128xf32>
    %69 = vector.extract_strided_slice %60 {offsets = [40, 0], sizes = [8, 128], strides = [1, 1]} : vector<72x128xf32> to vector<8x128xf32>
    %70 = tpu.concatenate %66, %67, %68, %69 in 1 : vector<8x128xf32>, vector<8x128xf32>, vector<8x128xf32>, vector<8x128xf32> -> vector<8x512xf32>
    %71 = vector.extract_strided_slice %60 {offsets = [24, 0], sizes = [8, 128], strides = [1, 1]} : vector<72x128xf32> to vector<8x128xf32>
    %72 = vector.extract_strided_slice %60 {offsets = [32, 0], sizes = [8, 128], strides = [1, 1]} : vector<72x128xf32> to vector<8x128xf32>
    %73 = vector.extract_strided_slice %60 {offsets = [48, 0], sizes = [8, 128], strides = [1, 1]} : vector<72x128xf32> to vector<8x128xf32>
    %74 = vector.extract_strided_slice %60 {offsets = [56, 0], sizes = [8, 128], strides = [1, 1]} : vector<72x128xf32> to vector<8x128xf32>
    %75 = tpu.concatenate %71, %72, %73, %74 in 1 : vector<8x128xf32>, vector<8x128xf32>, vector<8x128xf32>, vector<8x128xf32> -> vector<8x512xf32>
    %76 = vector.extract_strided_slice %60 {offsets = [32, 0], sizes = [8, 128], strides = [1, 1]} : vector<72x128xf32> to vector<8x128xf32>
    %77 = vector.extract_strided_slice %60 {offsets = [40, 0], sizes = [8, 128], strides = [1, 1]} : vector<72x128xf32> to vector<8x128xf32>
    %78 = vector.extract_strided_slice %60 {offsets = [56, 0], sizes = [8, 128], strides = [1, 1]} : vector<72x128xf32> to vector<8x128xf32>
    %79 = vector.extract_strided_slice %60 {offsets = [64, 0], sizes = [8, 128], strides = [1, 1]} : vector<72x128xf32> to vector<8x128xf32>
    %80 = tpu.concatenate %76, %77, %78, %79 in 1 : vector<8x128xf32>, vector<8x128xf32>, vector<8x128xf32>, vector<8x128xf32> -> vector<8x512xf32>
    %81 = tpu.concatenate %65, %70, %75, %80 in 0 : vector<8x512xf32>, vector<8x512xf32>, vector<8x512xf32>, vector<8x512xf32> -> vector<32x512xf32>
    %82 = arith.truncf %81 : vector<32x512xf32> to vector<32x512xbf16>
    %cst_55 = arith.constant dense<0.000000e+00> : vector<32x128xf32>
    %83 = tpu.matmul %82, %8, %cst_55 {dimension_numbers = #tpu.dot_dimension_numbers<[1], [0], [0], [1], [0, 0, 1, 1], [], []>} : vector<32x512xbf16>, vector<512x128xbf16>, vector<32x128xf32> -> vector<32x128xf32>
    %84 = vector.broadcast %10 : vector<1x128xf32> to vector<32x128xf32>
    %85 = arith.addf %83, %84 : vector<32x128xf32>
    %cst_56 = arith.constant 0.000000e+00 : f32
    %86 = vector.broadcast %cst_56 : f32 to vector<32x128xf32>
    %87 = arith.maximumf %85, %86 : vector<32x128xf32>
    %88 = arith.truncf %87 : vector<32x128xf32> to vector<32x128xbf16>
    %cst_57 = arith.constant dense<0.000000e+00> : vector<32x128xf32>
    %89 = tpu.matmul %88, %12, %cst_57 {dimension_numbers = #tpu.dot_dimension_numbers<[1], [0], [0], [1], [0, 0, 1, 1], [], []>} : vector<32x128xbf16>, vector<128x128xbf16>, vector<32x128xf32> -> vector<32x128xf32>
    %90 = vector.broadcast %14 : vector<1x128xf32> to vector<32x128xf32>
    %91 = arith.addf %89, %90 : vector<32x128xf32>
    %cst_58 = arith.constant 0.000000e+00 : f32
    %92 = vector.broadcast %cst_58 : f32 to vector<32x128xf32>
    %93 = arith.maximumf %91, %92 : vector<32x128xf32>
    %94 = vector.extract_strided_slice %93 {offsets = [0, 0], sizes = [8, 128], strides = [1, 1]} : vector<32x128xf32> to vector<8x128xf32>
    %95 = vector.extract_strided_slice %93 {offsets = [8, 0], sizes = [8, 128], strides = [1, 1]} : vector<32x128xf32> to vector<8x128xf32>
    %96 = vector.extract_strided_slice %93 {offsets = [16, 0], sizes = [8, 128], strides = [1, 1]} : vector<32x128xf32> to vector<8x128xf32>
    %97 = vector.extract_strided_slice %93 {offsets = [24, 0], sizes = [8, 128], strides = [1, 1]} : vector<32x128xf32> to vector<8x128xf32>
    %98 = tpu.concatenate %94, %95, %96, %97 in 1 : vector<8x128xf32>, vector<8x128xf32>, vector<8x128xf32>, vector<8x128xf32> -> vector<8x512xf32>
    %99 = arith.truncf %98 : vector<8x512xf32> to vector<8x512xbf16>
    %cst_59 = arith.constant dense<0.000000e+00> : vector<8x128xf32>
    %100 = tpu.matmul %99, %16, %cst_59 {dimension_numbers = #tpu.dot_dimension_numbers<[1], [0], [0], [1], [0, 0, 1, 1], [], []>} : vector<8x512xbf16>, vector<512x128xbf16>, vector<8x128xf32> -> vector<8x128xf32>
    %101 = vector.broadcast %18 : vector<1x128xf32> to vector<8x128xf32>
    %102 = arith.addf %100, %101 : vector<8x128xf32>
    %cst_60 = arith.constant 0.000000e+00 : f32
    %103 = vector.broadcast %cst_60 : f32 to vector<8x128xf32>
    %104 = arith.maximumf %102, %103 : vector<8x128xf32>
    %105 = arith.truncf %104 : vector<8x128xf32> to vector<8x128xbf16>
    %cst_61 = arith.constant dense<0.000000e+00> : vector<8x32xf32>
    %106 = tpu.matmul %105, %20, %cst_61 {dimension_numbers = #tpu.dot_dimension_numbers<[1], [0], [0], [1], [0, 0, 1, 1], [], []>} : vector<8x128xbf16>, vector<128x32xbf16>, vector<8x32xf32> -> vector<8x32xf32>
    %107 = vector.broadcast %22 : vector<1x32xf32> to vector<8x32xf32>
    %108 = arith.addf %106, %107 : vector<8x32xf32>
    %cst_62 = arith.constant -1.000000e+00 : f32
    %cst_63 = arith.constant 0.9921875 : f32
    %109 = vector.broadcast %cst_62 : f32 to vector<8x32xf32>
    %110 = arith.maximumf %109, %108 : vector<8x32xf32>
    %111 = vector.broadcast %cst_63 : f32 to vector<8x32xf32>
    %112 = arith.minimumf %111, %110 : vector<8x32xf32>
    %cst_64 = arith.constant 1.280000e+02 : f32
    %113 = vector.broadcast %cst_64 : f32 to vector<8x32xf32>
    %114 = arith.mulf %112, %113 : vector<8x32xf32>
    %115 = math.roundeven %114 : vector<8x32xf32>
    %cst_65 = arith.constant 7.812500e-03 : f32
    %116 = vector.broadcast %cst_65 : f32 to vector<8x32xf32>
    %117 = arith.mulf %115, %116 : vector<8x32xf32>
    %118 = tpu.iota {dimensions = array<i32: 1>} : vector<2x8xi32>
    %119 = tpu.iota {dimensions = array<i32: 0>} : vector<2x8xi32>
    %c4_i32 = arith.constant 4 : i32
    %120 = vector.broadcast %c4_i32 : i32 to vector<2x8xi32>
    %121 = arith.muli %119, %120 : vector<2x8xi32>
    %122 = arith.cmpi sge, %118, %121 : vector<2x8xi32>
    %c1_i32 = arith.constant 1 : i32
    %123 = vector.broadcast %c1_i32 : i32 to vector<2x8xi32>
    %124 = arith.addi %119, %123 : vector<2x8xi32>
    %c4_i32_66 = arith.constant 4 : i32
    %125 = vector.broadcast %c4_i32_66 : i32 to vector<2x8xi32>
    %126 = arith.muli %124, %125 : vector<2x8xi32>
    %127 = arith.cmpi slt, %118, %126 : vector<2x8xi32>
    %128 = arith.andi %122, %127 : vector<2x8xi1>
    %129 = arith.extui %128 : vector<2x8xi1> to vector<2x8xi32>
    %130 = arith.sitofp %129 : vector<2x8xi32> to vector<2x8xf32>
    %131 = arith.truncf %130 : vector<2x8xf32> to vector<2x8xbf16>
    %132 = arith.truncf %117 : vector<8x32xf32> to vector<8x32xbf16>
    %cst_67 = arith.constant dense<0.000000e+00> : vector<2x32xf32>
    %133 = tpu.matmul %131, %132, %cst_67 {dimension_numbers = #tpu.dot_dimension_numbers<[1], [0], [0], [1], [0, 0, 1, 1], [], []>} : vector<2x8xbf16>, vector<8x32xbf16>, vector<2x32xf32> -> vector<2x32xf32>
    %134 = arith.addf %0, %133 : vector<2x32xf32>
    %c1_68 = arith.constant 1 : index
    %c0_69 = arith.constant 0 : index
    %c0_70 = arith.constant 0 : index
    %135 = vector.load %arg4[%c1_68, %c0_69, %c0_70] : memref<3x8x128xbf16, #tpu.memory_space<vmem>>, vector<1x8x128xbf16>
    %136 = vector.shape_cast %135 : vector<1x8x128xbf16> to vector<8x128xbf16>
    %c1_71 = arith.constant 1 : index
    %c0_72 = arith.constant 0 : index
    %c0_73 = arith.constant 0 : index
    %137 = vector.load %arg5[%c1_71, %c0_72, %c0_73] : memref<3x128x128xbf16, #tpu.memory_space<vmem>>, vector<1x128x128xbf16>
    %138 = vector.shape_cast %137 : vector<1x128x128xbf16> to vector<128x128xbf16>
    %c1_74 = arith.constant 1 : index
    %c0_75 = arith.constant 0 : index
    %c0_76 = arith.constant 0 : index
    %139 = vector.load %arg6[%c1_74, %c0_75, %c0_76] : memref<3x1x128xf32, #tpu.memory_space<vmem>>, vector<1x1x128xf32>
    %140 = vector.shape_cast %139 : vector<1x1x128xf32> to vector<1x128xf32>
    %c1_77 = arith.constant 1 : index
    %c0_78 = arith.constant 0 : index
    %c0_79 = arith.constant 0 : index
    %141 = vector.load %arg7[%c1_77, %c0_78, %c0_79] : memref<3x512x128xbf16, #tpu.memory_space<vmem>>, vector<1x512x128xbf16>
    %142 = vector.shape_cast %141 : vector<1x512x128xbf16> to vector<512x128xbf16>
    %c1_80 = arith.constant 1 : index
    %c0_81 = arith.constant 0 : index
    %c0_82 = arith.constant 0 : index
    %143 = vector.load %arg8[%c1_80, %c0_81, %c0_82] : memref<3x1x128xf32, #tpu.memory_space<vmem>>, vector<1x1x128xf32>
    %144 = vector.shape_cast %143 : vector<1x1x128xf32> to vector<1x128xf32>
    %c1_83 = arith.constant 1 : index
    %c0_84 = arith.constant 0 : index
    %c0_85 = arith.constant 0 : index
    %145 = vector.load %arg9[%c1_83, %c0_84, %c0_85] : memref<3x128x128xbf16, #tpu.memory_space<vmem>>, vector<1x128x128xbf16>
    %146 = vector.shape_cast %145 : vector<1x128x128xbf16> to vector<128x128xbf16>
    %c1_86 = arith.constant 1 : index
    %c0_87 = arith.constant 0 : index
    %c0_88 = arith.constant 0 : index
    %147 = vector.load %arg10[%c1_86, %c0_87, %c0_88] : memref<3x1x128xf32, #tpu.memory_space<vmem>>, vector<1x1x128xf32>
    %148 = vector.shape_cast %147 : vector<1x1x128xf32> to vector<1x128xf32>
    %c1_89 = arith.constant 1 : index
    %c0_90 = arith.constant 0 : index
    %c0_91 = arith.constant 0 : index
    %149 = vector.load %arg11[%c1_89, %c0_90, %c0_91] : memref<3x512x128xbf16, #tpu.memory_space<vmem>>, vector<1x512x128xbf16>
    %150 = vector.shape_cast %149 : vector<1x512x128xbf16> to vector<512x128xbf16>
    %c1_92 = arith.constant 1 : index
    %c0_93 = arith.constant 0 : index
    %c0_94 = arith.constant 0 : index
    %151 = vector.load %arg12[%c1_92, %c0_93, %c0_94] : memref<3x1x128xf32, #tpu.memory_space<vmem>>, vector<1x1x128xf32>
    %152 = vector.shape_cast %151 : vector<1x1x128xf32> to vector<1x128xf32>
    %c1_95 = arith.constant 1 : index
    %c0_96 = arith.constant 0 : index
    %c0_97 = arith.constant 0 : index
    %153 = vector.load %arg13[%c1_95, %c0_96, %c0_97] : memref<3x128x32xbf16, #tpu.memory_space<vmem>>, vector<1x128x32xbf16>
    %154 = vector.shape_cast %153 : vector<1x128x32xbf16> to vector<128x32xbf16>
    %c1_98 = arith.constant 1 : index
    %c0_99 = arith.constant 0 : index
    %c0_100 = arith.constant 0 : index
    %155 = vector.load %arg14[%c1_98, %c0_99, %c0_100] : memref<3x1x32xf32, #tpu.memory_space<vmem>>, vector<1x1x32xf32>
    %156 = vector.shape_cast %155 : vector<1x1x32xf32> to vector<1x32xf32>
    %c0_101 = arith.constant 0 : index
    %c0_102 = arith.constant 0 : index
    %c0_103 = arith.constant 0 : index
    %157 = vector.load %arg2[%c0_101, %c0_102, %c0_103] : memref<9x16x8xbf16, #tpu.memory_space<vmem>>, vector<1x16x8xbf16>
    %158 = vector.shape_cast %157 : vector<1x16x8xbf16> to vector<16x8xbf16>
    %159 = arith.extf %158 : vector<16x8xbf16> to vector<16x8xf32>
    %c1_104 = arith.constant 1 : index
    %c0_105 = arith.constant 0 : index
    %c0_106 = arith.constant 0 : index
    %160 = vector.load %arg2[%c1_104, %c0_105, %c0_106] : memref<9x16x8xbf16, #tpu.memory_space<vmem>>, vector<1x16x8xbf16>
    %161 = vector.shape_cast %160 : vector<1x16x8xbf16> to vector<16x8xbf16>
    %162 = arith.extf %161 : vector<16x8xbf16> to vector<16x8xf32>
    %c2_107 = arith.constant 2 : index
    %c0_108 = arith.constant 0 : index
    %c0_109 = arith.constant 0 : index
    %163 = vector.load %arg2[%c2_107, %c0_108, %c0_109] : memref<9x16x8xbf16, #tpu.memory_space<vmem>>, vector<1x16x8xbf16>
    %164 = vector.shape_cast %163 : vector<1x16x8xbf16> to vector<16x8xbf16>
    %165 = arith.extf %164 : vector<16x8xbf16> to vector<16x8xf32>
    %c3_110 = arith.constant 3 : index
    %c0_111 = arith.constant 0 : index
    %c0_112 = arith.constant 0 : index
    %166 = vector.load %arg2[%c3_110, %c0_111, %c0_112] : memref<9x16x8xbf16, #tpu.memory_space<vmem>>, vector<1x16x8xbf16>
    %167 = vector.shape_cast %166 : vector<1x16x8xbf16> to vector<16x8xbf16>
    %168 = arith.extf %167 : vector<16x8xbf16> to vector<16x8xf32>
    %c4_113 = arith.constant 4 : index
    %c0_114 = arith.constant 0 : index
    %c0_115 = arith.constant 0 : index
    %169 = vector.load %arg2[%c4_113, %c0_114, %c0_115] : memref<9x16x8xbf16, #tpu.memory_space<vmem>>, vector<1x16x8xbf16>
    %170 = vector.shape_cast %169 : vector<1x16x8xbf16> to vector<16x8xbf16>
    %171 = arith.extf %170 : vector<16x8xbf16> to vector<16x8xf32>
    %c5_116 = arith.constant 5 : index
    %c0_117 = arith.constant 0 : index
    %c0_118 = arith.constant 0 : index
    %172 = vector.load %arg2[%c5_116, %c0_117, %c0_118] : memref<9x16x8xbf16, #tpu.memory_space<vmem>>, vector<1x16x8xbf16>
    %173 = vector.shape_cast %172 : vector<1x16x8xbf16> to vector<16x8xbf16>
    %174 = arith.extf %173 : vector<16x8xbf16> to vector<16x8xf32>
    %c6_119 = arith.constant 6 : index
    %c0_120 = arith.constant 0 : index
    %c0_121 = arith.constant 0 : index
    %175 = vector.load %arg2[%c6_119, %c0_120, %c0_121] : memref<9x16x8xbf16, #tpu.memory_space<vmem>>, vector<1x16x8xbf16>
    %176 = vector.shape_cast %175 : vector<1x16x8xbf16> to vector<16x8xbf16>
    %177 = arith.extf %176 : vector<16x8xbf16> to vector<16x8xf32>
    %c7_122 = arith.constant 7 : index
    %c0_123 = arith.constant 0 : index
    %c0_124 = arith.constant 0 : index
    %178 = vector.load %arg2[%c7_122, %c0_123, %c0_124] : memref<9x16x8xbf16, #tpu.memory_space<vmem>>, vector<1x16x8xbf16>
    %179 = vector.shape_cast %178 : vector<1x16x8xbf16> to vector<16x8xbf16>
    %180 = arith.extf %179 : vector<16x8xbf16> to vector<16x8xf32>
    %c8_125 = arith.constant 8 : index
    %c0_126 = arith.constant 0 : index
    %c0_127 = arith.constant 0 : index
    %181 = vector.load %arg2[%c8_125, %c0_126, %c0_127] : memref<9x16x8xbf16, #tpu.memory_space<vmem>>, vector<1x16x8xbf16>
    %182 = vector.shape_cast %181 : vector<1x16x8xbf16> to vector<16x8xbf16>
    %183 = arith.extf %182 : vector<16x8xbf16> to vector<16x8xf32>
    %184 = tpu.concatenate %159, %162, %165, %168, %171, %174, %177, %180, %183 in 0 : vector<16x8xf32>, vector<16x8xf32>, vector<16x8xf32>, vector<16x8xf32>, vector<16x8xf32>, vector<16x8xf32>, vector<16x8xf32>, vector<16x8xf32>, vector<16x8xf32> -> vector<144x8xf32>
    %185 = arith.truncf %184 : vector<144x8xf32> to vector<144x8xbf16>
    %cst_128 = arith.constant dense<0.000000e+00> : vector<144x128xf32>
    %186 = tpu.matmul %185, %136, %cst_128 {dimension_numbers = #tpu.dot_dimension_numbers<[1], [0], [0], [1], [0, 0, 1, 1], [], []>} : vector<144x8xbf16>, vector<8x128xbf16>, vector<144x128xf32> -> vector<144x128xf32>
    %cst_129 = arith.constant 0.000000e+00 : f32
    %187 = vector.broadcast %cst_129 : f32 to vector<144x128xf32>
    %188 = arith.maximumf %186, %187 : vector<144x128xf32>
    %189 = arith.truncf %188 : vector<144x128xf32> to vector<144x128xbf16>
    %cst_130 = arith.constant dense<0.000000e+00> : vector<144x128xf32>
    %190 = tpu.matmul %189, %138, %cst_130 {dimension_numbers = #tpu.dot_dimension_numbers<[1], [0], [0], [1], [0, 0, 1, 1], [], []>} : vector<144x128xbf16>, vector<128x128xbf16>, vector<144x128xf32> -> vector<144x128xf32>
    %191 = vector.broadcast %140 : vector<1x128xf32> to vector<144x128xf32>
    %192 = arith.addf %190, %191 : vector<144x128xf32>
    %cst_131 = arith.constant 0.000000e+00 : f32
    %193 = vector.broadcast %cst_131 : f32 to vector<144x128xf32>
    %194 = arith.maximumf %192, %193 : vector<144x128xf32>
    %195 = vector.extract_strided_slice %194 {offsets = [0, 0], sizes = [16, 128], strides = [1, 1]} : vector<144x128xf32> to vector<16x128xf32>
    %196 = vector.extract_strided_slice %194 {offsets = [16, 0], sizes = [16, 128], strides = [1, 1]} : vector<144x128xf32> to vector<16x128xf32>
    %197 = vector.extract_strided_slice %194 {offsets = [48, 0], sizes = [16, 128], strides = [1, 1]} : vector<144x128xf32> to vector<16x128xf32>
    %198 = vector.extract_strided_slice %194 {offsets = [64, 0], sizes = [16, 128], strides = [1, 1]} : vector<144x128xf32> to vector<16x128xf32>
    %199 = tpu.concatenate %195, %196, %197, %198 in 1 : vector<16x128xf32>, vector<16x128xf32>, vector<16x128xf32>, vector<16x128xf32> -> vector<16x512xf32>
    %200 = vector.extract_strided_slice %194 {offsets = [16, 0], sizes = [16, 128], strides = [1, 1]} : vector<144x128xf32> to vector<16x128xf32>
    %201 = vector.extract_strided_slice %194 {offsets = [32, 0], sizes = [16, 128], strides = [1, 1]} : vector<144x128xf32> to vector<16x128xf32>
    %202 = vector.extract_strided_slice %194 {offsets = [64, 0], sizes = [16, 128], strides = [1, 1]} : vector<144x128xf32> to vector<16x128xf32>
    %203 = vector.extract_strided_slice %194 {offsets = [80, 0], sizes = [16, 128], strides = [1, 1]} : vector<144x128xf32> to vector<16x128xf32>
    %204 = tpu.concatenate %200, %201, %202, %203 in 1 : vector<16x128xf32>, vector<16x128xf32>, vector<16x128xf32>, vector<16x128xf32> -> vector<16x512xf32>
    %205 = vector.extract_strided_slice %194 {offsets = [48, 0], sizes = [16, 128], strides = [1, 1]} : vector<144x128xf32> to vector<16x128xf32>
    %206 = vector.extract_strided_slice %194 {offsets = [64, 0], sizes = [16, 128], strides = [1, 1]} : vector<144x128xf32> to vector<16x128xf32>
    %207 = vector.extract_strided_slice %194 {offsets = [96, 0], sizes = [16, 128], strides = [1, 1]} : vector<144x128xf32> to vector<16x128xf32>
    %208 = vector.extract_strided_slice %194 {offsets = [112, 0], sizes = [16, 128], strides = [1, 1]} : vector<144x128xf32> to vector<16x128xf32>
    %209 = tpu.concatenate %205, %206, %207, %208 in 1 : vector<16x128xf32>, vector<16x128xf32>, vector<16x128xf32>, vector<16x128xf32> -> vector<16x512xf32>
    %210 = vector.extract_strided_slice %194 {offsets = [64, 0], sizes = [16, 128], strides = [1, 1]} : vector<144x128xf32> to vector<16x128xf32>
    %211 = vector.extract_strided_slice %194 {offsets = [80, 0], sizes = [16, 128], strides = [1, 1]} : vector<144x128xf32> to vector<16x128xf32>
    %212 = vector.extract_strided_slice %194 {offsets = [112, 0], sizes = [16, 128], strides = [1, 1]} : vector<144x128xf32> to vector<16x128xf32>
    %213 = vector.extract_strided_slice %194 {offsets = [128, 0], sizes = [16, 128], strides = [1, 1]} : vector<144x128xf32> to vector<16x128xf32>
    %214 = tpu.concatenate %210, %211, %212, %213 in 1 : vector<16x128xf32>, vector<16x128xf32>, vector<16x128xf32>, vector<16x128xf32> -> vector<16x512xf32>
    %215 = tpu.concatenate %199, %204, %209, %214 in 0 : vector<16x512xf32>, vector<16x512xf32>, vector<16x512xf32>, vector<16x512xf32> -> vector<64x512xf32>
    %216 = arith.truncf %215 : vector<64x512xf32> to vector<64x512xbf16>
    %cst_132 = arith.constant dense<0.000000e+00> : vector<64x128xf32>
    %217 = tpu.matmul %216, %142, %cst_132 {dimension_numbers = #tpu.dot_dimension_numbers<[1], [0], [0], [1], [0, 0, 1, 1], [], []>} : vector<64x512xbf16>, vector<512x128xbf16>, vector<64x128xf32> -> vector<64x128xf32>
    %218 = vector.broadcast %144 : vector<1x128xf32> to vector<64x128xf32>
    %219 = arith.addf %217, %218 : vector<64x128xf32>
    %cst_133 = arith.constant 0.000000e+00 : f32
    %220 = vector.broadcast %cst_133 : f32 to vector<64x128xf32>
    %221 = arith.maximumf %219, %220 : vector<64x128xf32>
    %222 = arith.truncf %221 : vector<64x128xf32> to vector<64x128xbf16>
    %cst_134 = arith.constant dense<0.000000e+00> : vector<64x128xf32>
    %223 = tpu.matmul %222, %146, %cst_134 {dimension_numbers = #tpu.dot_dimension_numbers<[1], [0], [0], [1], [0, 0, 1, 1], [], []>} : vector<64x128xbf16>, vector<128x128xbf16>, vector<64x128xf32> -> vector<64x128xf32>
    %224 = vector.broadcast %148 : vector<1x128xf32> to vector<64x128xf32>
    %225 = arith.addf %223, %224 : vector<64x128xf32>
    %cst_135 = arith.constant 0.000000e+00 : f32
    %226 = vector.broadcast %cst_135 : f32 to vector<64x128xf32>
    %227 = arith.maximumf %225, %226 : vector<64x128xf32>
    %228 = vector.extract_strided_slice %227 {offsets = [0, 0], sizes = [16, 128], strides = [1, 1]} : vector<64x128xf32> to vector<16x128xf32>
    %229 = vector.extract_strided_slice %227 {offsets = [16, 0], sizes = [16, 128], strides = [1, 1]} : vector<64x128xf32> to vector<16x128xf32>
    %230 = vector.extract_strided_slice %227 {offsets = [32, 0], sizes = [16, 128], strides = [1, 1]} : vector<64x128xf32> to vector<16x128xf32>
    %231 = vector.extract_strided_slice %227 {offsets = [48, 0], sizes = [16, 128], strides = [1, 1]} : vector<64x128xf32> to vector<16x128xf32>
    %232 = tpu.concatenate %228, %229, %230, %231 in 1 : vector<16x128xf32>, vector<16x128xf32>, vector<16x128xf32>, vector<16x128xf32> -> vector<16x512xf32>
    %233 = arith.truncf %232 : vector<16x512xf32> to vector<16x512xbf16>
    %cst_136 = arith.constant dense<0.000000e+00> : vector<16x128xf32>
    %234 = tpu.matmul %233, %150, %cst_136 {dimension_numbers = #tpu.dot_dimension_numbers<[1], [0], [0], [1], [0, 0, 1, 1], [], []>} : vector<16x512xbf16>, vector<512x128xbf16>, vector<16x128xf32> -> vector<16x128xf32>
    %235 = vector.broadcast %152 : vector<1x128xf32> to vector<16x128xf32>
    %236 = arith.addf %234, %235 : vector<16x128xf32>
    %cst_137 = arith.constant 0.000000e+00 : f32
    %237 = vector.broadcast %cst_137 : f32 to vector<16x128xf32>
    %238 = arith.maximumf %236, %237 : vector<16x128xf32>
    %239 = arith.truncf %238 : vector<16x128xf32> to vector<16x128xbf16>
    %cst_138 = arith.constant dense<0.000000e+00> : vector<16x32xf32>
    %240 = tpu.matmul %239, %154, %cst_138 {dimension_numbers = #tpu.dot_dimension_numbers<[1], [0], [0], [1], [0, 0, 1, 1], [], []>} : vector<16x128xbf16>, vector<128x32xbf16>, vector<16x32xf32> -> vector<16x32xf32>
    %241 = vector.broadcast %156 : vector<1x32xf32> to vector<16x32xf32>
    %242 = arith.addf %240, %241 : vector<16x32xf32>
    %cst_139 = arith.constant -1.000000e+00 : f32
    %cst_140 = arith.constant 0.9921875 : f32
    %243 = vector.broadcast %cst_139 : f32 to vector<16x32xf32>
    %244 = arith.maximumf %243, %242 : vector<16x32xf32>
    %245 = vector.broadcast %cst_140 : f32 to vector<16x32xf32>
    %246 = arith.minimumf %245, %244 : vector<16x32xf32>
    %cst_141 = arith.constant 1.280000e+02 : f32
    %247 = vector.broadcast %cst_141 : f32 to vector<16x32xf32>
    %248 = arith.mulf %246, %247 : vector<16x32xf32>
    %249 = math.roundeven %248 : vector<16x32xf32>
    %cst_142 = arith.constant 7.812500e-03 : f32
    %250 = vector.broadcast %cst_142 : f32 to vector<16x32xf32>
    %251 = arith.mulf %249, %250 : vector<16x32xf32>
    %252 = tpu.iota {dimensions = array<i32: 1>} : vector<2x16xi32>
    %253 = tpu.iota {dimensions = array<i32: 0>} : vector<2x16xi32>
    %c8_i32 = arith.constant 8 : i32
    %254 = vector.broadcast %c8_i32 : i32 to vector<2x16xi32>
    %255 = arith.muli %253, %254 : vector<2x16xi32>
    %256 = arith.cmpi sge, %252, %255 : vector<2x16xi32>
    %c1_i32_143 = arith.constant 1 : i32
    %257 = vector.broadcast %c1_i32_143 : i32 to vector<2x16xi32>
    %258 = arith.addi %253, %257 : vector<2x16xi32>
    %c8_i32_144 = arith.constant 8 : i32
    %259 = vector.broadcast %c8_i32_144 : i32 to vector<2x16xi32>
    %260 = arith.muli %258, %259 : vector<2x16xi32>
    %261 = arith.cmpi slt, %252, %260 : vector<2x16xi32>
    %262 = arith.andi %256, %261 : vector<2x16xi1>
    %263 = arith.extui %262 : vector<2x16xi1> to vector<2x16xi32>
    %264 = arith.sitofp %263 : vector<2x16xi32> to vector<2x16xf32>
    %265 = arith.truncf %264 : vector<2x16xf32> to vector<2x16xbf16>
    %266 = arith.truncf %251 : vector<16x32xf32> to vector<16x32xbf16>
    %cst_145 = arith.constant dense<0.000000e+00> : vector<2x32xf32>
    %267 = tpu.matmul %265, %266, %cst_145 {dimension_numbers = #tpu.dot_dimension_numbers<[1], [0], [0], [1], [0, 0, 1, 1], [], []>} : vector<2x16xbf16>, vector<16x32xbf16>, vector<2x32xf32> -> vector<2x32xf32>
    %268 = arith.addf %134, %267 : vector<2x32xf32>
    %c2_146 = arith.constant 2 : index
    %c0_147 = arith.constant 0 : index
    %c0_148 = arith.constant 0 : index
    %269 = vector.load %arg4[%c2_146, %c0_147, %c0_148] : memref<3x8x128xbf16, #tpu.memory_space<vmem>>, vector<1x8x128xbf16>
    %270 = vector.shape_cast %269 : vector<1x8x128xbf16> to vector<8x128xbf16>
    %c2_149 = arith.constant 2 : index
    %c0_150 = arith.constant 0 : index
    %c0_151 = arith.constant 0 : index
    %271 = vector.load %arg5[%c2_149, %c0_150, %c0_151] : memref<3x128x128xbf16, #tpu.memory_space<vmem>>, vector<1x128x128xbf16>
    %272 = vector.shape_cast %271 : vector<1x128x128xbf16> to vector<128x128xbf16>
    %c2_152 = arith.constant 2 : index
    %c0_153 = arith.constant 0 : index
    %c0_154 = arith.constant 0 : index
    %273 = vector.load %arg6[%c2_152, %c0_153, %c0_154] : memref<3x1x128xf32, #tpu.memory_space<vmem>>, vector<1x1x128xf32>
    %274 = vector.shape_cast %273 : vector<1x1x128xf32> to vector<1x128xf32>
    %c2_155 = arith.constant 2 : index
    %c0_156 = arith.constant 0 : index
    %c0_157 = arith.constant 0 : index
    %275 = vector.load %arg7[%c2_155, %c0_156, %c0_157] : memref<3x512x128xbf16, #tpu.memory_space<vmem>>, vector<1x512x128xbf16>
    %276 = vector.shape_cast %275 : vector<1x512x128xbf16> to vector<512x128xbf16>
    %c2_158 = arith.constant 2 : index
    %c0_159 = arith.constant 0 : index
    %c0_160 = arith.constant 0 : index
    %277 = vector.load %arg8[%c2_158, %c0_159, %c0_160] : memref<3x1x128xf32, #tpu.memory_space<vmem>>, vector<1x1x128xf32>
    %278 = vector.shape_cast %277 : vector<1x1x128xf32> to vector<1x128xf32>
    %c2_161 = arith.constant 2 : index
    %c0_162 = arith.constant 0 : index
    %c0_163 = arith.constant 0 : index
    %279 = vector.load %arg9[%c2_161, %c0_162, %c0_163] : memref<3x128x128xbf16, #tpu.memory_space<vmem>>, vector<1x128x128xbf16>
    %280 = vector.shape_cast %279 : vector<1x128x128xbf16> to vector<128x128xbf16>
    %c2_164 = arith.constant 2 : index
    %c0_165 = arith.constant 0 : index
    %c0_166 = arith.constant 0 : index
    %281 = vector.load %arg10[%c2_164, %c0_165, %c0_166] : memref<3x1x128xf32, #tpu.memory_space<vmem>>, vector<1x1x128xf32>
    %282 = vector.shape_cast %281 : vector<1x1x128xf32> to vector<1x128xf32>
    %c2_167 = arith.constant 2 : index
    %c0_168 = arith.constant 0 : index
    %c0_169 = arith.constant 0 : index
    %283 = vector.load %arg11[%c2_167, %c0_168, %c0_169] : memref<3x512x128xbf16, #tpu.memory_space<vmem>>, vector<1x512x128xbf16>
    %284 = vector.shape_cast %283 : vector<1x512x128xbf16> to vector<512x128xbf16>
    %c2_170 = arith.constant 2 : index
    %c0_171 = arith.constant 0 : index
    %c0_172 = arith.constant 0 : index
    %285 = vector.load %arg12[%c2_170, %c0_171, %c0_172] : memref<3x1x128xf32, #tpu.memory_space<vmem>>, vector<1x1x128xf32>
    %286 = vector.shape_cast %285 : vector<1x1x128xf32> to vector<1x128xf32>
    %c2_173 = arith.constant 2 : index
    %c0_174 = arith.constant 0 : index
    %c0_175 = arith.constant 0 : index
    %287 = vector.load %arg13[%c2_173, %c0_174, %c0_175] : memref<3x128x32xbf16, #tpu.memory_space<vmem>>, vector<1x128x32xbf16>
    %288 = vector.shape_cast %287 : vector<1x128x32xbf16> to vector<128x32xbf16>
    %c2_176 = arith.constant 2 : index
    %c0_177 = arith.constant 0 : index
    %c0_178 = arith.constant 0 : index
    %289 = vector.load %arg14[%c2_176, %c0_177, %c0_178] : memref<3x1x32xf32, #tpu.memory_space<vmem>>, vector<1x1x32xf32>
    %290 = vector.shape_cast %289 : vector<1x1x32xf32> to vector<1x32xf32>
    %c0_179 = arith.constant 0 : index
    %c0_180 = arith.constant 0 : index
    %c0_181 = arith.constant 0 : index
    %291 = vector.load %arg3[%c0_179, %c0_180, %c0_181] : memref<9x8x8xbf16, #tpu.memory_space<vmem>>, vector<1x8x8xbf16>
    %292 = vector.shape_cast %291 : vector<1x8x8xbf16> to vector<8x8xbf16>
    %293 = arith.extf %292 : vector<8x8xbf16> to vector<8x8xf32>
    %c1_182 = arith.constant 1 : index
    %c0_183 = arith.constant 0 : index
    %c0_184 = arith.constant 0 : index
    %294 = vector.load %arg3[%c1_182, %c0_183, %c0_184] : memref<9x8x8xbf16, #tpu.memory_space<vmem>>, vector<1x8x8xbf16>
    %295 = vector.shape_cast %294 : vector<1x8x8xbf16> to vector<8x8xbf16>
    %296 = arith.extf %295 : vector<8x8xbf16> to vector<8x8xf32>
    %c2_185 = arith.constant 2 : index
    %c0_186 = arith.constant 0 : index
    %c0_187 = arith.constant 0 : index
    %297 = vector.load %arg3[%c2_185, %c0_186, %c0_187] : memref<9x8x8xbf16, #tpu.memory_space<vmem>>, vector<1x8x8xbf16>
    %298 = vector.shape_cast %297 : vector<1x8x8xbf16> to vector<8x8xbf16>
    %299 = arith.extf %298 : vector<8x8xbf16> to vector<8x8xf32>
    %c3_188 = arith.constant 3 : index
    %c0_189 = arith.constant 0 : index
    %c0_190 = arith.constant 0 : index
    %300 = vector.load %arg3[%c3_188, %c0_189, %c0_190] : memref<9x8x8xbf16, #tpu.memory_space<vmem>>, vector<1x8x8xbf16>
    %301 = vector.shape_cast %300 : vector<1x8x8xbf16> to vector<8x8xbf16>
    %302 = arith.extf %301 : vector<8x8xbf16> to vector<8x8xf32>
    %c4_191 = arith.constant 4 : index
    %c0_192 = arith.constant 0 : index
    %c0_193 = arith.constant 0 : index
    %303 = vector.load %arg3[%c4_191, %c0_192, %c0_193] : memref<9x8x8xbf16, #tpu.memory_space<vmem>>, vector<1x8x8xbf16>
    %304 = vector.shape_cast %303 : vector<1x8x8xbf16> to vector<8x8xbf16>
    %305 = arith.extf %304 : vector<8x8xbf16> to vector<8x8xf32>
    %c5_194 = arith.constant 5 : index
    %c0_195 = arith.constant 0 : index
    %c0_196 = arith.constant 0 : index
    %306 = vector.load %arg3[%c5_194, %c0_195, %c0_196] : memref<9x8x8xbf16, #tpu.memory_space<vmem>>, vector<1x8x8xbf16>
    %307 = vector.shape_cast %306 : vector<1x8x8xbf16> to vector<8x8xbf16>
    %308 = arith.extf %307 : vector<8x8xbf16> to vector<8x8xf32>
    %c6_197 = arith.constant 6 : index
    %c0_198 = arith.constant 0 : index
    %c0_199 = arith.constant 0 : index
    %309 = vector.load %arg3[%c6_197, %c0_198, %c0_199] : memref<9x8x8xbf16, #tpu.memory_space<vmem>>, vector<1x8x8xbf16>
    %310 = vector.shape_cast %309 : vector<1x8x8xbf16> to vector<8x8xbf16>
    %311 = arith.extf %310 : vector<8x8xbf16> to vector<8x8xf32>
    %c7_200 = arith.constant 7 : index
    %c0_201 = arith.constant 0 : index
    %c0_202 = arith.constant 0 : index
    %312 = vector.load %arg3[%c7_200, %c0_201, %c0_202] : memref<9x8x8xbf16, #tpu.memory_space<vmem>>, vector<1x8x8xbf16>
    %313 = vector.shape_cast %312 : vector<1x8x8xbf16> to vector<8x8xbf16>
    %314 = arith.extf %313 : vector<8x8xbf16> to vector<8x8xf32>
    %c8_203 = arith.constant 8 : index
    %c0_204 = arith.constant 0 : index
    %c0_205 = arith.constant 0 : index
    %315 = vector.load %arg3[%c8_203, %c0_204, %c0_205] : memref<9x8x8xbf16, #tpu.memory_space<vmem>>, vector<1x8x8xbf16>
    %316 = vector.shape_cast %315 : vector<1x8x8xbf16> to vector<8x8xbf16>
    %317 = arith.extf %316 : vector<8x8xbf16> to vector<8x8xf32>
    %318 = tpu.concatenate %293, %296, %299, %302, %305, %308, %311, %314, %317 in 0 : vector<8x8xf32>, vector<8x8xf32>, vector<8x8xf32>, vector<8x8xf32>, vector<8x8xf32>, vector<8x8xf32>, vector<8x8xf32>, vector<8x8xf32>, vector<8x8xf32> -> vector<72x8xf32>
    %319 = arith.truncf %318 : vector<72x8xf32> to vector<72x8xbf16>
    %cst_206 = arith.constant dense<0.000000e+00> : vector<72x128xf32>
    %320 = tpu.matmul %319, %270, %cst_206 {dimension_numbers = #tpu.dot_dimension_numbers<[1], [0], [0], [1], [0, 0, 1, 1], [], []>} : vector<72x8xbf16>, vector<8x128xbf16>, vector<72x128xf32> -> vector<72x128xf32>
    %cst_207 = arith.constant 0.000000e+00 : f32
    %321 = vector.broadcast %cst_207 : f32 to vector<72x128xf32>
    %322 = arith.maximumf %320, %321 : vector<72x128xf32>
    %323 = arith.truncf %322 : vector<72x128xf32> to vector<72x128xbf16>
    %cst_208 = arith.constant dense<0.000000e+00> : vector<72x128xf32>
    %324 = tpu.matmul %323, %272, %cst_208 {dimension_numbers = #tpu.dot_dimension_numbers<[1], [0], [0], [1], [0, 0, 1, 1], [], []>} : vector<72x128xbf16>, vector<128x128xbf16>, vector<72x128xf32> -> vector<72x128xf32>
    %325 = vector.broadcast %274 : vector<1x128xf32> to vector<72x128xf32>
    %326 = arith.addf %324, %325 : vector<72x128xf32>
    %cst_209 = arith.constant 0.000000e+00 : f32
    %327 = vector.broadcast %cst_209 : f32 to vector<72x128xf32>
    %328 = arith.maximumf %326, %327 : vector<72x128xf32>
    %329 = vector.extract_strided_slice %328 {offsets = [0, 0], sizes = [8, 128], strides = [1, 1]} : vector<72x128xf32> to vector<8x128xf32>
    %330 = vector.extract_strided_slice %328 {offsets = [8, 0], sizes = [8, 128], strides = [1, 1]} : vector<72x128xf32> to vector<8x128xf32>
    %331 = vector.extract_strided_slice %328 {offsets = [24, 0], sizes = [8, 128], strides = [1, 1]} : vector<72x128xf32> to vector<8x128xf32>
    %332 = vector.extract_strided_slice %328 {offsets = [32, 0], sizes = [8, 128], strides = [1, 1]} : vector<72x128xf32> to vector<8x128xf32>
    %333 = tpu.concatenate %329, %330, %331, %332 in 1 : vector<8x128xf32>, vector<8x128xf32>, vector<8x128xf32>, vector<8x128xf32> -> vector<8x512xf32>
    %334 = vector.extract_strided_slice %328 {offsets = [8, 0], sizes = [8, 128], strides = [1, 1]} : vector<72x128xf32> to vector<8x128xf32>
    %335 = vector.extract_strided_slice %328 {offsets = [16, 0], sizes = [8, 128], strides = [1, 1]} : vector<72x128xf32> to vector<8x128xf32>
    %336 = vector.extract_strided_slice %328 {offsets = [32, 0], sizes = [8, 128], strides = [1, 1]} : vector<72x128xf32> to vector<8x128xf32>
    %337 = vector.extract_strided_slice %328 {offsets = [40, 0], sizes = [8, 128], strides = [1, 1]} : vector<72x128xf32> to vector<8x128xf32>
    %338 = tpu.concatenate %334, %335, %336, %337 in 1 : vector<8x128xf32>, vector<8x128xf32>, vector<8x128xf32>, vector<8x128xf32> -> vector<8x512xf32>
    %339 = vector.extract_strided_slice %328 {offsets = [24, 0], sizes = [8, 128], strides = [1, 1]} : vector<72x128xf32> to vector<8x128xf32>
    %340 = vector.extract_strided_slice %328 {offsets = [32, 0], sizes = [8, 128], strides = [1, 1]} : vector<72x128xf32> to vector<8x128xf32>
    %341 = vector.extract_strided_slice %328 {offsets = [48, 0], sizes = [8, 128], strides = [1, 1]} : vector<72x128xf32> to vector<8x128xf32>
    %342 = vector.extract_strided_slice %328 {offsets = [56, 0], sizes = [8, 128], strides = [1, 1]} : vector<72x128xf32> to vector<8x128xf32>
    %343 = tpu.concatenate %339, %340, %341, %342 in 1 : vector<8x128xf32>, vector<8x128xf32>, vector<8x128xf32>, vector<8x128xf32> -> vector<8x512xf32>
    %344 = vector.extract_strided_slice %328 {offsets = [32, 0], sizes = [8, 128], strides = [1, 1]} : vector<72x128xf32> to vector<8x128xf32>
    %345 = vector.extract_strided_slice %328 {offsets = [40, 0], sizes = [8, 128], strides = [1, 1]} : vector<72x128xf32> to vector<8x128xf32>
    %346 = vector.extract_strided_slice %328 {offsets = [56, 0], sizes = [8, 128], strides = [1, 1]} : vector<72x128xf32> to vector<8x128xf32>
    %347 = vector.extract_strided_slice %328 {offsets = [64, 0], sizes = [8, 128], strides = [1, 1]} : vector<72x128xf32> to vector<8x128xf32>
    %348 = tpu.concatenate %344, %345, %346, %347 in 1 : vector<8x128xf32>, vector<8x128xf32>, vector<8x128xf32>, vector<8x128xf32> -> vector<8x512xf32>
    %349 = tpu.concatenate %333, %338, %343, %348 in 0 : vector<8x512xf32>, vector<8x512xf32>, vector<8x512xf32>, vector<8x512xf32> -> vector<32x512xf32>
    %350 = arith.truncf %349 : vector<32x512xf32> to vector<32x512xbf16>
    %cst_210 = arith.constant dense<0.000000e+00> : vector<32x128xf32>
    %351 = tpu.matmul %350, %276, %cst_210 {dimension_numbers = #tpu.dot_dimension_numbers<[1], [0], [0], [1], [0, 0, 1, 1], [], []>} : vector<32x512xbf16>, vector<512x128xbf16>, vector<32x128xf32> -> vector<32x128xf32>
    %352 = vector.broadcast %278 : vector<1x128xf32> to vector<32x128xf32>
    %353 = arith.addf %351, %352 : vector<32x128xf32>
    %cst_211 = arith.constant 0.000000e+00 : f32
    %354 = vector.broadcast %cst_211 : f32 to vector<32x128xf32>
    %355 = arith.maximumf %353, %354 : vector<32x128xf32>
    %356 = arith.truncf %355 : vector<32x128xf32> to vector<32x128xbf16>
    %cst_212 = arith.constant dense<0.000000e+00> : vector<32x128xf32>
    %357 = tpu.matmul %356, %280, %cst_212 {dimension_numbers = #tpu.dot_dimension_numbers<[1], [0], [0], [1], [0, 0, 1, 1], [], []>} : vector<32x128xbf16>, vector<128x128xbf16>, vector<32x128xf32> -> vector<32x128xf32>
    %358 = vector.broadcast %282 : vector<1x128xf32> to vector<32x128xf32>
    %359 = arith.addf %357, %358 : vector<32x128xf32>
    %cst_213 = arith.constant 0.000000e+00 : f32
    %360 = vector.broadcast %cst_213 : f32 to vector<32x128xf32>
    %361 = arith.maximumf %359, %360 : vector<32x128xf32>
    %362 = vector.extract_strided_slice %361 {offsets = [0, 0], sizes = [8, 128], strides = [1, 1]} : vector<32x128xf32> to vector<8x128xf32>
    %363 = vector.extract_strided_slice %361 {offsets = [8, 0], sizes = [8, 128], strides = [1, 1]} : vector<32x128xf32> to vector<8x128xf32>
    %364 = vector.extract_strided_slice %361 {offsets = [16, 0], sizes = [8, 128], strides = [1, 1]} : vector<32x128xf32> to vector<8x128xf32>
    %365 = vector.extract_strided_slice %361 {offsets = [24, 0], sizes = [8, 128], strides = [1, 1]} : vector<32x128xf32> to vector<8x128xf32>
    %366 = tpu.concatenate %362, %363, %364, %365 in 1 : vector<8x128xf32>, vector<8x128xf32>, vector<8x128xf32>, vector<8x128xf32> -> vector<8x512xf32>
    %367 = arith.truncf %366 : vector<8x512xf32> to vector<8x512xbf16>
    %cst_214 = arith.constant dense<0.000000e+00> : vector<8x128xf32>
    %368 = tpu.matmul %367, %284, %cst_214 {dimension_numbers = #tpu.dot_dimension_numbers<[1], [0], [0], [1], [0, 0, 1, 1], [], []>} : vector<8x512xbf16>, vector<512x128xbf16>, vector<8x128xf32> -> vector<8x128xf32>
    %369 = vector.broadcast %286 : vector<1x128xf32> to vector<8x128xf32>
    %370 = arith.addf %368, %369 : vector<8x128xf32>
    %cst_215 = arith.constant 0.000000e+00 : f32
    %371 = vector.broadcast %cst_215 : f32 to vector<8x128xf32>
    %372 = arith.maximumf %370, %371 : vector<8x128xf32>
    %373 = arith.truncf %372 : vector<8x128xf32> to vector<8x128xbf16>
    %cst_216 = arith.constant dense<0.000000e+00> : vector<8x32xf32>
    %374 = tpu.matmul %373, %288, %cst_216 {dimension_numbers = #tpu.dot_dimension_numbers<[1], [0], [0], [1], [0, 0, 1, 1], [], []>} : vector<8x128xbf16>, vector<128x32xbf16>, vector<8x32xf32> -> vector<8x32xf32>
    %375 = vector.broadcast %290 : vector<1x32xf32> to vector<8x32xf32>
    %376 = arith.addf %374, %375 : vector<8x32xf32>
    %cst_217 = arith.constant -1.000000e+00 : f32
    %cst_218 = arith.constant 0.9921875 : f32
    %377 = vector.broadcast %cst_217 : f32 to vector<8x32xf32>
    %378 = arith.maximumf %377, %376 : vector<8x32xf32>
    %379 = vector.broadcast %cst_218 : f32 to vector<8x32xf32>
    %380 = arith.minimumf %379, %378 : vector<8x32xf32>
    %cst_219 = arith.constant 1.280000e+02 : f32
    %381 = vector.broadcast %cst_219 : f32 to vector<8x32xf32>
    %382 = arith.mulf %380, %381 : vector<8x32xf32>
    %383 = math.roundeven %382 : vector<8x32xf32>
    %cst_220 = arith.constant 7.812500e-03 : f32
    %384 = vector.broadcast %cst_220 : f32 to vector<8x32xf32>
    %385 = arith.mulf %383, %384 : vector<8x32xf32>
    %386 = tpu.iota {dimensions = array<i32: 1>} : vector<2x8xi32>
    %387 = tpu.iota {dimensions = array<i32: 0>} : vector<2x8xi32>
    %c4_i32_221 = arith.constant 4 : i32
    %388 = vector.broadcast %c4_i32_221 : i32 to vector<2x8xi32>
    %389 = arith.muli %387, %388 : vector<2x8xi32>
    %390 = arith.cmpi sge, %386, %389 : vector<2x8xi32>
    %c1_i32_222 = arith.constant 1 : i32
    %391 = vector.broadcast %c1_i32_222 : i32 to vector<2x8xi32>
    %392 = arith.addi %387, %391 : vector<2x8xi32>
    %c4_i32_223 = arith.constant 4 : i32
    %393 = vector.broadcast %c4_i32_223 : i32 to vector<2x8xi32>
    %394 = arith.muli %392, %393 : vector<2x8xi32>
    %395 = arith.cmpi slt, %386, %394 : vector<2x8xi32>
    %396 = arith.andi %390, %395 : vector<2x8xi1>
    %397 = arith.extui %396 : vector<2x8xi1> to vector<2x8xi32>
    %398 = arith.sitofp %397 : vector<2x8xi32> to vector<2x8xf32>
    %399 = arith.truncf %398 : vector<2x8xf32> to vector<2x8xbf16>
    %400 = arith.truncf %385 : vector<8x32xf32> to vector<8x32xbf16>
    %cst_224 = arith.constant dense<0.000000e+00> : vector<2x32xf32>
    %401 = tpu.matmul %399, %400, %cst_224 {dimension_numbers = #tpu.dot_dimension_numbers<[1], [0], [0], [1], [0, 0, 1, 1], [], []>} : vector<2x8xbf16>, vector<8x32xbf16>, vector<2x32xf32> -> vector<2x32xf32>
    %402 = arith.addf %268, %401 : vector<2x32xf32>
    %cst_225 = arith.constant -1.000000e+00 : f32
    %cst_226 = arith.constant 0.9921875 : f32
    %403 = vector.broadcast %cst_225 : f32 to vector<2x32xf32>
    %404 = arith.maximumf %403, %402 : vector<2x32xf32>
    %405 = vector.broadcast %cst_226 : f32 to vector<2x32xf32>
    %406 = arith.minimumf %405, %404 : vector<2x32xf32>
    %407 = arith.truncf %406 : vector<2x32xf32> to vector<2x32xbf16>
    %c0_227 = arith.constant 0 : index
    %c0_228 = arith.constant 0 : index
    %408 = vector.load %arg15[%c0_227, %c0_228] : memref<32x32xbf16, #tpu.memory_space<vmem>>, vector<32x32xbf16>
    %cst_229 = arith.constant dense<0.000000e+00> : vector<2x32xf32>
    %409 = tpu.matmul %407, %408, %cst_229 {dimension_numbers = #tpu.dot_dimension_numbers<[1], [0], [0], [1], [0, 0, 1, 1], [], []>} : vector<2x32xbf16>, vector<32x32xbf16>, vector<2x32xf32> -> vector<2x32xf32>
    %c0_230 = arith.constant 0 : index
    %c0_231 = arith.constant 0 : index
    %410 = vector.load %arg16[%c0_230, %c0_231] : memref<1x32xf32, #tpu.memory_space<vmem>>, vector<1x32xf32>
    %411 = vector.broadcast %410 : vector<1x32xf32> to vector<2x32xf32>
    %412 = arith.addf %409, %411 : vector<2x32xf32>
    %cst_232 = arith.constant 0.000000e+00 : f32
    %cst_233 = arith.constant 0.9921875 : f32
    %413 = vector.broadcast %cst_232 : f32 to vector<2x32xf32>
    %414 = arith.maximumf %413, %412 : vector<2x32xf32>
    %415 = vector.broadcast %cst_233 : f32 to vector<2x32xf32>
    %416 = arith.minimumf %415, %414 : vector<2x32xf32>
    %417 = arith.truncf %416 : vector<2x32xf32> to vector<2x32xbf16>
    %c0_234 = arith.constant 0 : index
    %c0_235 = arith.constant 0 : index
    %418 = vector.load %arg17[%c0_234, %c0_235] : memref<32x32xbf16, #tpu.memory_space<vmem>>, vector<32x32xbf16>
    %cst_236 = arith.constant dense<0.000000e+00> : vector<2x32xf32>
    %419 = tpu.matmul %417, %418, %cst_236 {dimension_numbers = #tpu.dot_dimension_numbers<[1], [0], [0], [1], [0, 0, 1, 1], [], []>} : vector<2x32xbf16>, vector<32x32xbf16>, vector<2x32xf32> -> vector<2x32xf32>
    %c0_237 = arith.constant 0 : index
    %c0_238 = arith.constant 0 : index
    %420 = vector.load %arg18[%c0_237, %c0_238] : memref<1x32xf32, #tpu.memory_space<vmem>>, vector<1x32xf32>
    %421 = vector.broadcast %420 : vector<1x32xf32> to vector<2x32xf32>
    %422 = arith.addf %419, %421 : vector<2x32xf32>
    %cst_239 = arith.constant 0.000000e+00 : f32
    %cst_240 = arith.constant 0.9921875 : f32
    %423 = vector.broadcast %cst_239 : f32 to vector<2x32xf32>
    %424 = arith.maximumf %423, %422 : vector<2x32xf32>
    %425 = vector.broadcast %cst_240 : f32 to vector<2x32xf32>
    %426 = arith.minimumf %425, %424 : vector<2x32xf32>
    %427 = arith.truncf %426 : vector<2x32xf32> to vector<2x32xbf16>
    %c0_241 = arith.constant 0 : index
    %c0_242 = arith.constant 0 : index
    %428 = vector.load %arg19[%c0_241, %c0_242] : memref<32x128xbf16, #tpu.memory_space<vmem>>, vector<32x128xbf16>
    %cst_243 = arith.constant dense<0.000000e+00> : vector<2x128xf32>
    %429 = tpu.matmul %427, %428, %cst_243 {dimension_numbers = #tpu.dot_dimension_numbers<[1], [0], [0], [1], [0, 0, 1, 1], [], []>} : vector<2x32xbf16>, vector<32x128xbf16>, vector<2x128xf32> -> vector<2x128xf32>
    %c0_244 = arith.constant 0 : index
    %c0_245 = arith.constant 0 : index
    %430 = vector.load %arg20[%c0_244, %c0_245] : memref<1x128xf32, #tpu.memory_space<vmem>>, vector<1x128xf32>
    %431 = vector.broadcast %430 : vector<1x128xf32> to vector<2x128xf32>
    %432 = arith.addf %429, %431 : vector<2x128xf32>
    %c0_246 = arith.constant 0 : index
    %c0_247 = arith.constant 0 : index
    %433 = vector.load %arg21[%c0_246, %c0_247] : memref<2x128xf32, #tpu.memory_space<vmem>>, vector<2x128xf32>
    tpu.vector_store %arg21[%c0_246, %c0_247], %432 {strides = array<i32>} : memref<2x128xf32, #tpu.memory_space<vmem>>, vector<2x128xf32>,
    return
  }
  func.func @transform_0(%arg0: i32) -> (i32, i32, i32) {
    %c0_i32 = arith.constant 0 : i32
    %c0_i32_0 = arith.constant 0 : i32
    %c0_i32_1 = arith.constant 0 : i32
    return %c0_i32, %arg0, %c0_i32_0 : i32, i32, i32
  }
  func.func @transform_1(%arg0: i32) -> (i32, i32, i32) {
    %c0_i32 = arith.constant 0 : i32
    %c0_i32_0 = arith.constant 0 : i32
    %c0_i32_1 = arith.constant 0 : i32
    return %c0_i32, %arg0, %c0_i32_0 : i32, i32, i32
  }
  func.func @transform_2(%arg0: i32) -> (i32, i32, i32) {
    %c0_i32 = arith.constant 0 : i32
    %c0_i32_0 = arith.constant 0 : i32
    %c0_i32_1 = arith.constant 0 : i32
    return %c0_i32, %arg0, %c0_i32_0 : i32, i32, i32
  }
  func.func @transform_3(%arg0: i32) -> (i32, i32, i32) {
    %c0_i32 = arith.constant 0 : i32
    %c0_i32_0 = arith.constant 0 : i32
    %c0_i32_1 = arith.constant 0 : i32
    %c0_i32_2 = arith.constant 0 : i32
    return %c0_i32, %c0_i32_0, %c0_i32_1 : i32, i32, i32
  }
  func.func @transform_4(%arg0: i32) -> (i32, i32, i32) {
    %c0_i32 = arith.constant 0 : i32
    %c0_i32_0 = arith.constant 0 : i32
    %c0_i32_1 = arith.constant 0 : i32
    %c0_i32_2 = arith.constant 0 : i32
    return %c0_i32, %c0_i32_0, %c0_i32_1 : i32, i32, i32
  }
  func.func @transform_5(%arg0: i32) -> (i32, i32, i32) {
    %c0_i32 = arith.constant 0 : i32
    %c0_i32_0 = arith.constant 0 : i32
    %c0_i32_1 = arith.constant 0 : i32
    %c0_i32_2 = arith.constant 0 : i32
    return %c0_i32, %c0_i32_0, %c0_i32_1 : i32, i32, i32
  }
  func.func @transform_6(%arg0: i32) -> (i32, i32, i32) {
    %c0_i32 = arith.constant 0 : i32
    %c0_i32_0 = arith.constant 0 : i32
    %c0_i32_1 = arith.constant 0 : i32
    %c0_i32_2 = arith.constant 0 : i32
    return %c0_i32, %c0_i32_0, %c0_i32_1 : i32, i32, i32
  }
  func.func @transform_7(%arg0: i32) -> (i32, i32, i32) {
    %c0_i32 = arith.constant 0 : i32
    %c0_i32_0 = arith.constant 0 : i32
    %c0_i32_1 = arith.constant 0 : i32
    %c0_i32_2 = arith.constant 0 : i32
    return %c0_i32, %c0_i32_0, %c0_i32_1 : i32, i32, i32
  }
  func.func @transform_8(%arg0: i32) -> (i32, i32, i32) {
    %c0_i32 = arith.constant 0 : i32
    %c0_i32_0 = arith.constant 0 : i32
    %c0_i32_1 = arith.constant 0 : i32
    %c0_i32_2 = arith.constant 0 : i32
    return %c0_i32, %c0_i32_0, %c0_i32_1 : i32, i32, i32
  }
  func.func @transform_9(%arg0: i32) -> (i32, i32, i32) {
    %c0_i32 = arith.constant 0 : i32
    %c0_i32_0 = arith.constant 0 : i32
    %c0_i32_1 = arith.constant 0 : i32
    %c0_i32_2 = arith.constant 0 : i32
    return %c0_i32, %c0_i32_0, %c0_i32_1 : i32, i32, i32
  }
  func.func @transform_10(%arg0: i32) -> (i32, i32, i32) {
    %c0_i32 = arith.constant 0 : i32
    %c0_i32_0 = arith.constant 0 : i32
    %c0_i32_1 = arith.constant 0 : i32
    %c0_i32_2 = arith.constant 0 : i32
    return %c0_i32, %c0_i32_0, %c0_i32_1 : i32, i32, i32
  }
  func.func @transform_11(%arg0: i32) -> (i32, i32, i32) {
    %c0_i32 = arith.constant 0 : i32
    %c0_i32_0 = arith.constant 0 : i32
    %c0_i32_1 = arith.constant 0 : i32
    %c0_i32_2 = arith.constant 0 : i32
    return %c0_i32, %c0_i32_0, %c0_i32_1 : i32, i32, i32
  }
  func.func @transform_12(%arg0: i32) -> (i32, i32, i32) {
    %c0_i32 = arith.constant 0 : i32
    %c0_i32_0 = arith.constant 0 : i32
    %c0_i32_1 = arith.constant 0 : i32
    %c0_i32_2 = arith.constant 0 : i32
    return %c0_i32, %c0_i32_0, %c0_i32_1 : i32, i32, i32
  }
  func.func @transform_13(%arg0: i32) -> (i32, i32, i32) {
    %c0_i32 = arith.constant 0 : i32
    %c0_i32_0 = arith.constant 0 : i32
    %c0_i32_1 = arith.constant 0 : i32
    %c0_i32_2 = arith.constant 0 : i32
    return %c0_i32, %c0_i32_0, %c0_i32_1 : i32, i32, i32
  }
  func.func @transform_14(%arg0: i32) -> (i32, i32) {
    %c0_i32 = arith.constant 0 : i32
    %c0_i32_0 = arith.constant 0 : i32
    %c0_i32_1 = arith.constant 0 : i32
    return %c0_i32, %c0_i32_0 : i32, i32
  }
  func.func @transform_15(%arg0: i32) -> (i32, i32) {
    %c0_i32 = arith.constant 0 : i32
    %c0_i32_0 = arith.constant 0 : i32
    %c0_i32_1 = arith.constant 0 : i32
    return %c0_i32, %c0_i32_0 : i32, i32
  }
  func.func @transform_16(%arg0: i32) -> (i32, i32) {
    %c0_i32 = arith.constant 0 : i32
    %c0_i32_0 = arith.constant 0 : i32
    %c0_i32_1 = arith.constant 0 : i32
    return %c0_i32, %c0_i32_0 : i32, i32
  }
  func.func @transform_17(%arg0: i32) -> (i32, i32) {
    %c0_i32 = arith.constant 0 : i32
    %c0_i32_0 = arith.constant 0 : i32
    %c0_i32_1 = arith.constant 0 : i32
    return %c0_i32, %c0_i32_0 : i32, i32
  }
  func.func @transform_18(%arg0: i32) -> (i32, i32) {
    %c0_i32 = arith.constant 0 : i32
    %c0_i32_0 = arith.constant 0 : i32
    %c0_i32_1 = arith.constant 0 : i32
    return %c0_i32, %c0_i32_0 : i32, i32
  }
  func.func @transform_19(%arg0: i32) -> (i32, i32) {
    %c0_i32 = arith.constant 0 : i32
    %c0_i32_0 = arith.constant 0 : i32
    %c0_i32_1 = arith.constant 0 : i32
    return %c0_i32, %c0_i32_0 : i32, i32
  }
  func.func @transform_20(%arg0: i32) -> (i32, i32) {
    %c0_i32 = arith.constant 0 : i32
    %c0_i32_0 = arith.constant 0 : i32
    return %arg0, %c0_i32 : i32, i32
  }
}

</mosaic_0001>

<bundles_post_ra>
// kernel: flat_square7x7_nnue_v4_forward.1
= control target key start
LH: loop header
LB: loop body
LE: loop exit
PB: predicated region body
PF: predicated region fallthrough
CT: control target
= control target key end

     0   :  { %s7227_s0 = inlined_call_operand.vmem [shape: bf16[9,8,8], index: 0, kind: input, shape index: {}]   ;;  %s7228_s1 = inlined_call_operand.vmem [shape: bf16[9,16,8], index: 1, kind: input, shape index: {}]   ;;  %s7229_s2 = inlined_call_operand.vmem [shape: bf16[9,8,8], index: 2, kind: input, shape index: {}]   ;;  %s7230_s3 = inlined_call_operand.vmem [shape: bf16[3,8,128], index: 3, kind: input, shape index: {}]   ;;  %s7231_s4 = inlined_call_operand.vmem [shape: bf16[3,128,128], index: 4, kind: input, shape index: {}]   ;;  %s7232_s5 = inlined_call_operand.vmem [shape: f32[3,1,128], index: 5, kind: input, shape index: {}]   ;;  %s7233_s6 = inlined_call_operand.vmem [shape: bf16[3,512,128], index: 6, kind: input, shape index: {}]   ;;  %s7234_s7 = inlined_call_operand.vmem [shape: f32[3,1,128], index: 7, kind: input, shape index: {}]   ;;  %s7235_s8 = inlined_call_operand.vmem [shape: bf16[3,128,128], index: 8, kind: input, shape index: {}]   ;;  %s7236_s9 = inlined_call_operand.vmem [shape: f32[3,1,128], index: 9, kind: input, shape index: {}]   ;;  %s7237_s10 = inlined_call_operand.hbm [shape: bf16[3,512,128], index: 10, kind: input, shape index: {}]   ;;  %s7238_s11 = inlined_call_operand.vmem [shape: f32[3,1,128], index: 11, kind: input, shape index: {}]   ;;  %s7239_s12 = inlined_call_operand.vmem [shape: bf16[3,128,32], index: 12, kind: input, shape index: {}]   ;;  %s7240_s13 = inlined_call_operand.vmem [shape: f32[3,1,32], index: 13, kind: input, shape index: {}]   ;;  %s7241_s14 = inlined_call_operand.vmem [shape: bf16[32,32], index: 14, kind: input, shape index: {}]   ;;  %s7242_s15 = inlined_call_operand.vmem [shape: f32[1,32], index: 15, kind: input, shape index: {}]   ;;  %s7243_s16 = inlined_call_operand.vmem [shape: bf16[32,32], index: 16, kind: input, shape index: {}]   ;;  %s7244_s17 = inlined_call_operand.vmem [shape: f32[1,32], index: 17, kind: input, shape index: {}]   ;;  %s7245_s18 = inlined_call_operand.vmem [shape: bf16[32,128], index: 18, kind: input, shape index: {}]   ;;  %s7246_s19 = inlined_call_operand.vmem [shape: f32[1,128], index: 19, kind: input, shape index: {}]   ;;  %s7247_s20 = inlined_call_operand.hbm [shape: f32[2,128], index: 20, kind: output, shape index: {}]  }
   0x1   :  { %7253 = sst [smem:[#allocation8_spill]] %s7227_s0 }
   0x2   :  { %7254 = sst [smem:[#allocation9_spill]] %s7228_s1 }
   0x3   :  { %7255 = sst [smem:[#allocation10_spill]] %s7229_s2 }
   0x4   :  { %7256 = sst [smem:[#allocation11_spill]] %s7230_s3 }
   0x5   :  { %7257 = sst [smem:[#allocation12_spill]] %s7231_s4 }
   0x6   :  { %25 = vsyncpa [#allocation3], 0 }
   0x7   :  { %26 = vsyncpa [#allocation4], 0  ;;  %s6218_s1 = smov [#allocation2]   ;;  %s6170_s2 = scalar_lea.hbm %s7237_s10, 12288 }
   0x8   :  { %s52_s22 = sshll.u32 %s6218_s1, 4  ;;  %p6171_p0 = scmp.ne.s32.totalorder %s7237_s10, %s6170_s2  ;;  %s53_s22 = int_to_ptr.vmem [resolvable:$true] %s52_s22 }
   0x9   :  { %p6174_p1 = scmp.lt.u32.totalorder %s6170_s2, %s7237_s10 }
   0xb   :  { %p6176_p2 = pnand %p6174_p1, %p6171_p0 }
   0xd   :  { %6179 = shalt.err (!%p6176_p2)
}
   0xe   :  { %s6180_s28 = scalar_lea.vmem %s53_s22, 12288  ;;  %p6185_p4 = scmp.lt.s32.totalorder %s53_s22, %s53_s22 }
   0xf   :  { %p6181_p3 = scmp.ne.s32.totalorder %s53_s22, %s6180_s28  ;;  %p6186_p5 = scmp.lt.s32.totalorder %s6180_s28, %s6180_s28 }
  0x11   :  { %p6187_p6 = por %p6186_p5, %p6185_p4 }
  0x13   :  { %p6188_p7 = pnand %p6187_p6, %p6181_p3 }
  0x15   :  { %6191 = shalt.err (!%p6188_p7)
}
  0x16   :  { %s6219_s4 = smov 64   ;;  %s6220_s29 = smov 4  }
  0x17   :  { %58 = dma.hbm_to_vmem [thread:$0]  %s7237_s10, 12288, %s53_s22, [#allocation3], %s6219_s4, %s6219_s4, %s6220_s29  }
  0x18   :  { %6214 = dma.done.wait [#allocation3], 12288  }
  0x19   :  { %6215 = vsyncadd [#allocation3], 4294955008  ;;  %v6221_v0 = vmov 0.0   ;;  %vm6222_vm0 = vmmov 0   ;;  %vm310_vm1 = vcmask 1043456   ;;  %s7258_s23 = sld [smem:[#allocation11_spill]] }
  0x1a   :  { %5494 = vmatprep.subr.bf16.mxu0 %v6221_v0  ;;  %5496 = vmatprep.mubr.msk.bf16.mxu0 %vm6222_vm0, %v6221_v0  ;;  %s7259_s24 = sld [smem:[#allocation8_spill]]  ;;  %vm294_vm2 = vcmask 64512   ;;  %s7260_s3 = sld [smem:[#allocation12_spill]]  ;;  %v5894_v16 = vld [vmem:[%s7233_s6 + $0x40] sm:$0xff]   ;;  %v5896_v18 = vld [vmem:[%s7233_s6 + $0x48] sm:$0xff]   ;;  %v5898_v21 = vld [vmem:[%s7233_s6 + $0x50] sm:$0xff]  }
  0x1b   :  { %5516 = vmatprep.subr.bf16.mxu1 %v6221_v0  ;;  %5532 = vmatprep.mubr.msk.bf16.mxu1 %vm6222_vm0, %v6221_v0  ;;  %v5895_v17 = vld [vmem:[%s7233_s6] sm:$0xff]   ;;  %v5897_v20 = vld [vmem:[%s7233_s6 + $0x8] sm:$0xff]   ;;  %v5899_v22 = vld [vmem:[%s7233_s6 + $0x10] sm:$0xff]   ;;  %s7261_s30 = sld [smem:[#allocation9_spill]]  ;;  %vm2809_vm9 = vcmask 130048   ;;  %s7266_s0 = sld [smem:[#allocation10_spill]] }
  0x1c   :  { %v5900_v19 = vld [vmem:[%s7233_s6 + $0xc0] sm:$0xff]   ;;  %v5902_v23 = vld [vmem:[%s7233_s6 + $0x58] sm:$0xff]   ;;  %v5904_v33 = vld [vmem:[%s7233_s6 + $0xc8] sm:$0xff]   ;;  %vm4231_vm10 = vcmask 261120  }
  0x1d   :  { %v5903_v24 = vld [vmem:[%s7233_s6 + $0x18] sm:$0xff]   ;;  %v5901_v31 = vld [vmem:[%s7233_s6 + $0x80] sm:$0xff]   ;;  %v5905_v35 = vld [vmem:[%s7233_s6 + $0x88] sm:$0xff]  }
  0x1e   :  { %v5906_v62 = vld [vmem:[%s7233_s6 + $0x60] sm:$0xff]  }
  0x1f   :  { %v81_v1 = vld [vmem:[%s7258_s23] sm:$0xf] }
  0x20   :  { %v312_v2 = vsel %vm310_vm1, %v81_v1, 0  ;;  %v5881_v3 = vld [vmem:[%s7259_s24] sm:$0xff]   ;;  %v5887_v5 = vld [vmem:[%s7260_s3 + $0x8] sm:$0xff]   ;;  %v5888_v7 = vld [vmem:[%s7260_s3 + $0x10] sm:$0xff]  }
  0x21   :  { %5495 = vmatpush3.bf16.msra.mxu0 %v312_v2  ;;  %v5886_v4 = vld [vmem:[%s7260_s3] sm:$0xff]   ;;  %v5882_v6 = vld [vmem:[%s7259_s24 + $0x8] sm:$0xff]   ;;  %v5889_v8 = vld [vmem:[%s7260_s3 + $0x18] sm:$0xff]  }
  0x22   :  { %5517 = vmatpush3.bf16.msra.mxu1 %v5886_v4  ;;  %v5883_v9 = vld [vmem:[%s7259_s24 + $0x10] sm:$0xff]   ;;  %v5890_v10 = vld [vmem:[%s7260_s3 + $0x20] sm:$0xff]   ;;  %v5891_v11 = vld [vmem:[%s7260_s3 + $0x28] sm:$0xff]   ;;  %5050 = vmatprep.subr.bf16.mxu0 %v5894_v16 }
  0x23   :  { %5518 = vmatprep.subr.bf16.mxu1 %v6221_v0  ;;  %v5884_v12 = vld [vmem:[%s7259_s24 + $0x18] sm:$0xff]   ;;  %v5885_v13 = vld [vmem:[%s7259_s24 + $0x20] ss:$0 sps:$4 sm:$0xff]   ;;  %v5892_v14 = vld [vmem:[%s7260_s3 + $0x30] sm:$0xff]  }
  0x24   :  { %5497 = vmatmul.mubr.msk.bf16.vlgmr.msra.gmra.mrb[0].mxu0 %vm294_vm2, %v5881_v3  ;;  %v5893_v15 = vld [vmem:[%s7260_s3 + $0x38] sm:$0xff]   ;;  %v5907_v63 = vld [vmem:[%s7233_s6 + $0x20] sm:$0xff]   ;;  %v5908_v1 = vld [vmem:[%s7233_s6 + $0xd0] sm:$0xff]  }
  0x25   :  { %5500 = vmatprep.mubr.msk.bf16.mxu0 %vm6222_vm0, %v6221_v0  ;;  %5051 = vmatpush3.bf16.msra.mxu0 %v5895_v17  ;;  %v5909_v2 = vld [vmem:[%s7233_s6 + $0x90] sm:$0xff]   ;;  %v5910_v3 = vld [vmem:[%s7233_s6 + $0x68] sm:$0xff]   ;;  %v5924_v17 = vld [vmem:[%s7233_s6 + $0xf8] sm:$0xff]  }
  0x26   :  { %5519 = vmatpush3.bf16.msra.mxu1 %v5887_v5  ;;  %5052 = vmatprep.subr.bf16.mxu0 %v5896_v18  ;;  %v5911_v4 = vld [vmem:[%s7233_s6 + $0x28] sm:$0xff]   ;;  %v5912_v5 = vld [vmem:[%s7233_s6 + $0xd8] sm:$0xff]   ;;  %v5923_v16 = vld [vmem:[%s7233_s6 + $0xb0] sm:$0xff]  }
  0x27   :  { %5520 = vmatprep.subr.bf16.mxu1 %v6221_v0  ;;  %v5925_v18 = vld [vmem:[%s7233_s6 + $0xb8] sm:$0xff]  }
  0x29   :  { %5053 = vmatpush3.bf16.msra.mxu0 %v5897_v20 }
  0x2a   :  { %5521 = vmatpush3.bf16.msra.mxu1 %v5888_v7  ;;  %5054 = vmatprep.subr.bf16.mxu0 %v5898_v21  ;;  %v5914_v7 = vld [vmem:[%s7233_s6 + $0x70] sm:$0xff]  }
  0x2b   :  { %5522 = vmatprep.subr.bf16.mxu1 %v6221_v0 }
  0x2c   :  { %5501 = vmatmul.mubr.msk.bf16.gmra.mrb[4].mxu0 %vm294_vm2, %v5882_v6  ;;  %v5913_v6 = vld [vmem:[%s7233_s6 + $0x98] sm:$0xff]  }
  0x2d   :  { %5504 = vmatprep.mubr.msk.bf16.mxu0 %vm6222_vm0, %v6221_v0  ;;  %5055 = vmatpush3.bf16.msra.mxu0 %v5899_v22 }
  0x2e   :  { %5523 = vmatpush3.bf16.msra.mxu1 %v5889_v8  ;;  %5056 = vmatprep.subr.bf16.mxu0 %v5902_v23  ;;  %v5915_v8 = vld [vmem:[%s7233_s6 + $0x30] sm:$0xff]  }
  0x2f   :  { %5524 = vmatprep.subr.bf16.mxu1 %v6221_v0 }
  0x31   :  { %5057 = vmatpush3.bf16.msra.mxu0 %v5903_v24 }
  0x32   :  { %5525 = vmatpush3.bf16.msra.mxu1 %v5890_v10  ;;  %5058 = vmatprep.subr.bf16.mxu0 %v5906_v62  ;;  %v5917_v10 = vld [vmem:[%s7233_s6 + $0xa0] sm:$0xff]  }
  0x33   :  { %5526 = vmatprep.subr.bf16.mxu1 %v6221_v0 }
  0x34   :  { %5505 = vmatmul.mubr.msk.bf16.gmra.mrb[8].mxu0 %vm294_vm2, %v5883_v9  ;;  %v5916_v9 = vld [vmem:[%s7233_s6 + $0xe0] sm:$0xff]  }
  0x35   :  { %5508 = vmatprep.mubr.msk.bf16.mxu0 %vm6222_vm0, %v6221_v0  ;;  %5059 = vmatpush3.bf16.msra.mxu0 %v5907_v63 }
  0x36   :  { %5527 = vmatpush3.bf16.msra.mxu1 %v5891_v11  ;;  %5060 = vmatprep.subr.bf16.mxu0 %v5910_v3  ;;  %v5918_v11 = vld [vmem:[%s7233_s6 + $0x78] sm:$0xff]   ;;  %v5928_v3 = vld [vmem:[%s7235_s8 + $0x10] sm:$0xff]  }
  0x37   :  { %5528 = vmatprep.subr.bf16.mxu1 %v6221_v0 }
  0x39   :  { %5061 = vmatpush3.bf16.msra.mxu0 %v5911_v4  ;;  %v5929_v4 = vld [vmem:[%s7235_s8 + $0x18] sm:$0xff]  }
  0x3a   :  { %5529 = vmatpush3.bf16.msra.mxu1 %v5892_v14  ;;  %5062 = vmatprep.subr.bf16.mxu0 %v5914_v7  ;;  %v5921_v14 = vld [vmem:[%s7233_s6 + $0xa8] sm:$0xff]   ;;  %v5932_v7 = vld [vmem:[%s7235_s8 + $0x30] sm:$0xff]  }
  0x3b   :  { %5530 = vmatprep.subr.bf16.mxu1 %v6221_v0 }
  0x3c   :  { %5509 = vmatmul.mubr.msk.bf16.gmra.mrb[12].mxu0 %vm294_vm2, %v5884_v12  ;;  %v5919_v12 = vld [vmem:[%s7233_s6 + $0x38] sm:$0xff]  }
  0x3d   :  { %5512 = vmatprep.mubr.msk.bf16.mxu0 %vm6222_vm0, %v6221_v0  ;;  %5063 = vmatpush3.bf16.msra.mxu0 %v5915_v8  ;;  %v5933_v8 = vld [vmem:[%s7235_s8 + $0x38] sm:$0xff]  }
  0x3e   :  { %5531 = vmatpush3.bf16.msra.mxu1 %v5893_v15  ;;  %5064 = vmatprep.subr.bf16.mxu0 %v5918_v11  ;;  %v5922_v15 = vld [vmem:[%s7233_s6 + $0xf0] sm:$0xff]   ;;  %v5937_v11 = vld [vmem:[#allocation2] sm:$0xff]  }
  0x3f   :  { %5078 = vmatprep.subr.bf16.mxu1 %v5900_v19  ;;  %v4447_v19 = vld [vmem:[%s7232_s5] ss:$0 sm:$0xff] }
  0x41   :  { %5065 = vmatpush3.bf16.msra.mxu0 %v5919_v12  ;;  %v5939_v12 = vld [vmem:[#allocation2 + $0x48] sm:$0xff]  }
  0x44   :  { %5513 = vmatmul.mubr.msk.bf16.gmra.mrb[16].mxu0 %vm294_vm2, %v5885_v13  ;;  %v5920_v13 = vld [vmem:[%s7233_s6 + $0xe8] sm:$0xff]  }
  0xf7   :  { %v348_v25 = vpop.f32.mrb[0].mxu0 }
  0xf8   :  { %v5498_v26 = vpop.f32.mrb[1].mxu0  ;;  %v386_v28 = vmax.f32 %v348_v25, 0.0 }
  0xf9   :  { %v351_v27 = vpop.f32.mrb[2].mxu0 }
  0xfa   :  { %v387_v29 = vmax.f32 %v351_v27, 0.0  ;;  %v5499_v30 = vpop.f32.mrb[3].mxu0 }
  0xfc   :  { %v395_v32 = vpack.c.bf16 %v387_v29, %v386_v28 }
  0xfe   :  { %5533 = vmatmul.mubr.bf16.vlgmr.msra.gmra.mrb[0].mxu1 %v395_v32 }
  0xff   :  { %v356_v34 = vpop.f32.mrb[4].mxu0  ;;  %5536 = vmatprep.mubr.msk.bf16.mxu1 %vm6222_vm0, %v6221_v0  ;;  %5079 = vmatpush3.bf16.msra.mxu1 %v5901_v31 }
 0x100   :  { %v5502_v36 = vpop.f32.mrb[5].mxu0  ;;  %5080 = vmatprep.subr.bf16.mxu1 %v5904_v33  ;;  %v388_v38 = vmax.f32 %v356_v34, 0.0 }
 0x101   :  { %v359_v37 = vpop.f32.mrb[6].mxu0 }
 0x102   :  { %v389_v39 = vmax.f32 %v359_v37, 0.0  ;;  %v5503_v40 = vpop.f32.mrb[7].mxu0 }
 0x103   :  { %5081 = vmatpush3.bf16.msra.mxu1 %v5905_v35 }
 0x104   :  { %v396_v41 = vpack.c.bf16 %v389_v39, %v388_v38  ;;  %5082 = vmatprep.subr.bf16.mxu1 %v5908_v1  ;;  %v5926_v1 = vld [vmem:[%s7235_s8] sm:$0xff]  }
 0x105   :  { %5552 = vmatprep.subr.bf16.mxu0 %v5926_v1 }
 0x106   :  { %5537 = vmatmul.mubr.bf16.gmra.mrb[4].mxu1 %v396_v41 }
 0x107   :  { %v364_v42 = vpop.f32.mrb[8].mxu0  ;;  %5540 = vmatprep.mubr.msk.bf16.mxu1 %vm6222_vm0, %v6221_v0  ;;  %5083 = vmatpush3.bf16.msra.mxu1 %v5909_v2  ;;  %v5927_v2 = vld [vmem:[%s7235_s8 + $0x8] sm:$0xff]  }
 0x108   :  { %v5506_v43 = vpop.f32.mrb[9].mxu0  ;;  %v390_v45 = vmax.f32 %v364_v42, 0.0  ;;  %5084 = vmatprep.subr.bf16.mxu1 %v5912_v5  ;;  %v5930_v5 = vld [vmem:[%s7235_s8 + $0x20] sm:$0xff]  }
 0x109   :  { %v367_v44 = vpop.f32.mrb[10].mxu0 }
 0x10a   :  { %v391_v46 = vmax.f32 %v367_v44, 0.0  ;;  %v5507_v47 = vpop.f32.mrb[11].mxu0 }
 0x10b   :  { %5085 = vmatpush3.bf16.msra.mxu1 %v5913_v6  ;;  %v5931_v6 = vld [vmem:[%s7235_s8 + $0x28] sm:$0xff]  }
 0x10c   :  { %v397_v48 = vpack.c.bf16 %v391_v46, %v390_v45  ;;  %5086 = vmatprep.subr.bf16.mxu1 %v5916_v9  ;;  %v5934_v9 = vld [vmem:[#allocation2 + $0xc0] sm:$0xff]  }
 0x10e   :  { %5541 = vmatmul.mubr.bf16.gmra.mrb[8].mxu1 %v397_v48 }
 0x10f   :  { %v372_v49 = vpop.f32.mrb[12].mxu0  ;;  %5544 = vmatprep.mubr.msk.bf16.mxu1 %vm6222_vm0, %v6221_v0  ;;  %5087 = vmatpush3.bf16.msra.mxu1 %v5917_v10  ;;  %v5935_v10 = vld [vmem:[#allocation2 + $0x40] sm:$0xff]  }
 0x110   :  { %v5510_v50 = vpop.f32.mrb[13].mxu0  ;;  %v392_v52 = vmax.f32 %v372_v49, 0.0  ;;  %5088 = vmatprep.subr.bf16.mxu1 %v5920_v13  ;;  %v5941_v13 = vld [vmem:[#allocation2 + $0x8] sm:$0xff]  }
 0x111   :  { %v375_v51 = vpop.f32.mrb[14].mxu0 }
 0x112   :  { %v393_v53 = vmax.f32 %v375_v51, 0.0  ;;  %v5511_v54 = vpop.f32.mrb[15].mxu0 }
 0x113   :  { %5089 = vmatpush3.bf16.msra.mxu1 %v5921_v14  ;;  %v5943_v14 = vld [vmem:[#allocation2 + $0x50] sm:$0xff]  }
 0x114   :  { %v398_v55 = vpack.c.bf16 %v393_v53, %v392_v52  ;;  %5090 = vmatprep.subr.bf16.mxu1 %v5922_v15  ;;  %v5945_v15 = vld [vmem:[#allocation2 + $0x10] sm:$0xff]  }
 0x116   :  { %5545 = vmatmul.mubr.bf16.gmra.mrb[12].mxu1 %v398_v55 }
 0x117   :  { %v380_v56 = vpop.f32.mrb[16].mxu0  ;;  %5548 = vmatprep.mubr.msk.bf16.mxu1 %vm6222_vm0, %v6221_v0  ;;  %5091 = vmatpush3.bf16.msra.mxu1 %v5923_v16  ;;  %v5947_v16 = vld [vmem:[#allocation2 + $0x58] sm:$0xff]  }
 0x118   :  { %v394_v57 = vmax.f32 %v380_v56, 0.0  ;;  %v5514_v58 = vpop.f32.mrb[17].mxu0  ;;  %5092 = vmatprep.subr.bf16.mxu1 %v5924_v17  ;;  %v5949_v17 = vld [vmem:[#allocation2 + $0x18] sm:$0xff]  }
 0x119   :  { %v383_v59 = vpop.f32.mrb[18].mxu0 }
 0x11a   :  { %v399_v60 = vpack.c.bf16 %v394_v57, %v394_v57  ;;  %v5515_v61 = vpop.f32.mrb[19].mxu0 }
 0x11b   :  { %5093 = vmatpush3.bf16.msra.mxu1 %v5925_v18  ;;  %v5951_v18 = vld [vmem:[#allocation2 + $0x60] sm:$0xff]  }
 0x11c   :  { %5116 = vmatprep.subr.bf16.mxu1 %v5935_v10  ;;  %v5959_v10 = vld [vmem:[#allocation2 + $0x70] sm:$0xff]  }
 0x11e   :  { %5549 = vmatmul.mubr.bf16.gmra.mrb[16].mxu1 %v399_v60 }
 0x1d1   :  { %v488_v20 = vpop.f32.mrb[0].mxu1 }
 0x1d2   :  { %v489_v21 = vadd.f32 %v4447_v19, %v488_v20  ;;  %v5534_v22 = vpop.f32.mrb[1].mxu1  ;;  %v5955_v20 = vld [vmem:[#allocation2 + $0x68] sm:$0xff]  }
 0x1d3   :  { %v491_v23 = vpop.f32.mrb[2].mxu1 }
 0x1d4   :  { %v492_v24 = vadd.f32 %v4447_v19, %v491_v23  ;;  %v5535_v25 = vpop.f32.mrb[3].mxu1  ;;  %v526_v26 = vmax.f32 %v489_v21, 0.0 }
 0x1d6   :  { %v527_v27 = vmax.f32 %v492_v24, 0.0 }
 0x1d8   :  { %v535_v28 = vpack.c.bf16 %v527_v27, %v526_v26 }
 0x1d9   :  { %v496_v29 = vpop.f32.mrb[4].mxu1 }
 0x1da   :  { %v497_v30 = vadd.f32 %v4447_v19, %v496_v29  ;;  %v5538_v31 = vpop.f32.mrb[5].mxu1 }
 0x1db   :  { %v499_v32 = vpop.f32.mrb[6].mxu1 }
 0x1dc   :  { %v528_v33 = vmax.f32 %v497_v30, 0.0  ;;  %v5539_v34 = vpop.f32.mrb[7].mxu1  ;;  %v500_v36 = vadd.f32 %v4447_v19, %v499_v32 }
 0x1de   :  { %v536_v35 = vpack.c.bf16 %v528_v33, %v527_v27  ;;  %v529_v41 = vmax.f32 %v500_v36, 0.0  ;;  %v4456_v27 = vld [vmem:[%s7234_s7] ss:$0 sm:$0xff] }
 0x1e0   :  { %771 = vmatprep.mubr.bf16.mxu0 %v536_v35 }
 0x1e1   :  { %v504_v37 = vpop.f32.mrb[8].mxu1  ;;  %772 = vmatmul.mubr.bf16.vlgmr.msra.gmra.mrb[20].mxu0 %v535_v28 }
 0x1e2   :  { %v505_v38 = vadd.f32 %v4447_v19, %v504_v37  ;;  %v5542_v39 = vpop.f32.mrb[9].mxu1  ;;  %5553 = vmatpush3.bf16.msra.mxu0 %v5926_v1  ;;  %v5944_v1 = vld [vmem:[#allocation2 + $0x90] sm:$0xff]  }
 0x1e3   :  { %v507_v40 = vpop.f32.mrb[10].mxu1  ;;  %5554 = vmatprep.subr.bf16.mxu0 %v5927_v2 }
 0x1e4   :  { %v530_v42 = vmax.f32 %v505_v38, 0.0  ;;  %v508_v43 = vadd.f32 %v4447_v19, %v507_v40  ;;  %v5543_v44 = vpop.f32.mrb[11].mxu1 }
 0x1e6   :  { %v537_v45 = vpack.c.bf16 %v530_v42, %v529_v41  ;;  %v531_v46 = vmax.f32 %v508_v43, 0.0  ;;  %5555 = vmatpush3.bf16.msra.mxu0 %v5927_v2  ;;  %v5946_v2 = vld [vmem:[#allocation2 + $0xd8] sm:$0xff]  }
 0x1e7   :  { %5556 = vmatprep.subr.bf16.mxu0 %v5928_v3 }
 0x1e8   :  { %v538_v47 = vpack.c.bf16 %v531_v46, %v530_v42 }
 0x1e9   :  { %v512_v48 = vpop.f32.mrb[12].mxu1 }
 0x1ea   :  { %v513_v49 = vadd.f32 %v4447_v19, %v512_v48  ;;  %v5546_v50 = vpop.f32.mrb[13].mxu1  ;;  %779 = vmatprep.mubr.bf16.mxu0 %v538_v47  ;;  %820 = vmatprep.mubr.bf16.mxu1 %v538_v47 }
 0x1eb   :  { %v515_v51 = vpop.f32.mrb[14].mxu1  ;;  %780 = vmatmul.mubr.bf16.gmra.mrb[24].mxu0 %v537_v45  ;;  %821 = vmatmul.mubr.bf16.vlgmr.msra.gmra.mrb[20].mxu1 %v537_v45 }
 0x1ec   :  { %v516_v52 = vadd.f32 %v4447_v19, %v515_v51  ;;  %v5547_v53 = vpop.f32.mrb[15].mxu1  ;;  %v532_v54 = vmax.f32 %v513_v49, 0.0  ;;  %5557 = vmatpush3.bf16.msra.mxu0 %v5928_v3  ;;  %5117 = vmatpush3.bf16.msra.mxu1 %v5937_v11  ;;  %v5948_v3 = vld [vmem:[#allocation2 + $0x98] sm:$0xff]   ;;  %v5960_v11 = vld [vmem:[#allocation2 + $0xb0] sm:$0xff]  }
 0x1ed   :  { %5558 = vmatprep.subr.bf16.mxu0 %v5929_v4  ;;  %5118 = vmatprep.subr.bf16.mxu1 %v5939_v12  ;;  %v5961_v12 = vld [vmem:[#allocation2 + $0x30] sm:$0xff]  }
 0x1ee   :  { %v533_v55 = vmax.f32 %v516_v52, 0.0 }
 0x1f0   :  { %v539_v56 = vpack.c.bf16 %v533_v55, %v532_v54  ;;  %5559 = vmatpush3.bf16.msra.mxu0 %v5929_v4  ;;  %5119 = vmatpush3.bf16.msra.mxu1 %v5941_v13  ;;  %v5950_v4 = vld [vmem:[#allocation2 + $0xe0] sm:$0xff]   ;;  %v5962_v13 = vld [vmem:[#allocation2 + $0xf8] sm:$0xff]  }
 0x1f1   :  { %v520_v57 = vpop.f32.mrb[16].mxu1  ;;  %5560 = vmatprep.subr.bf16.mxu0 %v5930_v5  ;;  %5120 = vmatprep.subr.bf16.mxu1 %v5943_v14  ;;  %v5963_v14 = vld [vmem:[#allocation2 + $0x78] sm:$0xff]  }
 0x1f2   :  { %v521_v58 = vadd.f32 %v4447_v19, %v520_v57  ;;  %v5550_v59 = vpop.f32.mrb[17].mxu1  ;;  %v5953_v19 = vld [vmem:[#allocation2 + $0x20] sm:$0xff]  }
 0x1f3   :  { %v523_v60 = vpop.f32.mrb[18].mxu1  ;;  %v5936_v59 = vld [vmem:[#allocation2 + $0x80] sm:$0xff]  }
 0x1f4   :  { %v534_v61 = vmax.f32 %v521_v58, 0.0  ;;  %v5551_v62 = vpop.f32.mrb[19].mxu1  ;;  %5561 = vmatpush3.bf16.msra.mxu0 %v5930_v5  ;;  %5121 = vmatpush3.bf16.msra.mxu1 %v5945_v15  ;;  %v5952_v5 = vld [vmem:[#allocation2 + $0xa0] sm:$0xff]   ;;  %v5964_v15 = vld [vmem:[#allocation2 + $0xb8] sm:$0xff]  }
 0x1f5   :  { %5562 = vmatprep.subr.bf16.mxu0 %v5931_v6  ;;  %5122 = vmatprep.subr.bf16.mxu1 %v5947_v16  ;;  %v5940_v62 = vld [vmem:[#allocation2 + $0x88] sm:$0xff]   ;;  %v5965_v16 = vld [vmem:[#allocation2 + $0x38] sm:$0xff]  }
 0x1f6   :  { %v540_v63 = vpack.c.bf16 %v534_v61, %v533_v55  ;;  %v5938_v61 = vld [vmem:[#allocation2 + $0xc8] sm:$0xff]  }
 0x1f8   :  { %828 = vmatprep.mubr.bf16.mxu1 %v540_v63  ;;  %5563 = vmatpush3.bf16.msra.mxu0 %v5931_v6  ;;  %v5942_v63 = vld [vmem:[#allocation2 + $0xd0] sm:$0xff]   ;;  %v5954_v6 = vld [vmem:[#allocation2 + $0xe8] sm:$0xff]  }
 0x1f9   :  { %829 = vmatmul.mubr.bf16.gmra.mrb[24].mxu1 %v539_v56  ;;  %5564 = vmatprep.subr.bf16.mxu0 %v5932_v7 }
 0x1fa   :  { %5123 = vmatpush3.bf16.msra.mxu1 %v5949_v17  ;;  %v4489_v17 = vld [vmem:[%s7236_s9] ss:$0 sm:$0xff] }
 0x1fb   :  { %5124 = vmatprep.subr.bf16.mxu1 %v5951_v18 }
 0x1fc   :  { %5565 = vmatpush3.bf16.msra.mxu0 %v5932_v7  ;;  %v5956_v7 = vld [vmem:[#allocation2 + $0xa8] sm:$0xff]  }
 0x1fd   :  { %5566 = vmatprep.subr.bf16.mxu0 %v5933_v8 }
 0x1fe   :  { %5125 = vmatpush3.bf16.msra.mxu1 %v5953_v19 }
 0x1ff   :  { %5126 = vmatprep.subr.bf16.mxu1 %v5955_v20 }
 0x200   :  { %5567 = vmatpush3.bf16.msra.mxu0 %v5933_v8  ;;  %v5957_v8 = vld [vmem:[#allocation2 + $0x28] sm:$0xff]  }
 0x201   :  { %5138 = vmatprep.subr.bf16.mxu0 %v5934_v9  ;;  %v5958_v9 = vld [vmem:[#allocation2 + $0xf0] sm:$0xff]  }
 0x202   :  { %5127 = vmatpush3.bf16.msra.mxu1 %v5957_v8 }
 0x203   :  { %5128 = vmatprep.subr.bf16.mxu1 %v5959_v10 }
 0x206   :  { %5129 = vmatpush3.bf16.msra.mxu1 %v5961_v12 }
 0x207   :  { %5130 = vmatprep.subr.bf16.mxu1 %v5963_v14 }
 0x20a   :  { %5131 = vmatpush3.bf16.msra.mxu1 %v5965_v16 }
 0x20b   :  { %5572 = vmatprep.subr.bf16.mxu1 %v6221_v0 }
 0x2b4   :  { %v5066_v21 = vpop.f32.mrb[20].mxu0 }
 0x2b5   :  { %v5067_v22 = vpop.f32.mrb[21].mxu0 }
 0x2b6   :  { %v5068_v23 = vadd.f32 %v5067_v22, %v5066_v21  ;;  %v5069_v24 = vpop.f32.mrb[22].mxu0 }
 0x2b7   :  { %v5070_v25 = vpop.f32.mrb[23].mxu0 }
 0x2b8   :  { %v5071_v26 = vadd.f32 %v5070_v25, %v5069_v24  ;;  %v774_v32 = vadd.f32 %v5068_v23, %v4456_v27 }
 0x2ba   :  { %v777_v39 = vadd.f32 %v5071_v26, %v4456_v27 }
 0x2be   :  { %v5072_v28 = vpop.f32.mrb[24].mxu0  ;;  %v5094_v29 = vpop.f32.mrb[20].mxu1 }
 0x2bf   :  { %v5073_v30 = vpop.f32.mrb[25].mxu0  ;;  %v5095_v31 = vpop.f32.mrb[21].mxu1 }
 0x2c0   :  { %v5074_v33 = vadd.f32 %v5073_v30, %v5072_v28  ;;  %v5096_v34 = vadd.f32 %v5095_v31, %v5094_v29  ;;  %v5075_v35 = vpop.f32.mrb[26].mxu0  ;;  %v5097_v36 = vpop.f32.mrb[22].mxu1  ;;  %v4541_v29 = vld [vmem:[%s7258_s23 + $0x4] sm:$0xf] }
 0x2c1   :  { %v5076_v37 = vpop.f32.mrb[27].mxu0  ;;  %v5098_v38 = vpop.f32.mrb[23].mxu1 }
 0x2c2   :  { %v823_v40 = vadd.f32 %v5096_v34, %v774_v32  ;;  %v5077_v41 = vadd.f32 %v5076_v37, %v5075_v35  ;;  %v5099_v42 = vadd.f32 %v5098_v38, %v5097_v36  ;;  %v782_v49 = vadd.f32 %v5074_v33, %v4456_v27  ;;  %v5975_v35 = vld [vmem:[%s7239_s12] sm:$0xff]   ;;  %v5976_v37 = vld [vmem:[%s7239_s12 + $0x8] sm:$0xff]  }
 0x2c3   :  { %v1621_v34 = vsel %vm310_vm1, %v4541_v29, 0  ;;  %v5966_v38 = vld [vmem:[%s7261_s30] sm:$0xff]  }
 0x2c4   :  { %v826_v43 = vadd.f32 %v5099_v42, %v777_v39  ;;  %v837_v44 = vmax.f32 %v823_v40, 0.0  ;;  %v785_v53 = vadd.f32 %v5077_v41, %v4456_v27  ;;  %v5977_v39 = vld [vmem:[%s7239_s12 + $0x10] sm:$0xff]   ;;  %v5978_v40 = vld [vmem:[%s7239_s12 + $0x18] sm:$0xff]   ;;  %v5967_v41 = vld [vmem:[%s7261_s30 + $0x8] sm:$0xff]  }
 0x2c5   :  { %v5979_v42 = vld [vmem:[%s7239_s12 + $0x20] sm:$0xff]  }
 0x2c6   :  { %v838_v45 = vmax.f32 %v826_v43, 0.0  ;;  %v5968_v43 = vld [vmem:[%s7261_s30 + $0x10] sm:$0xff]  }
 0x2c8   :  { %v841_v46 = vpack.c.bf16 %v838_v45, %v837_v44  ;;  %v5969_v44 = vld [vmem:[%s7261_s30 + $0x18] sm:$0xff]   ;;  %v5970_v45 = vld [vmem:[%s7261_s30 + $0x20] sm:$0xff]  }
 0x2ca   :  { %5568 = vmatprep.mubr.bf16.mxu0 %v841_v46  ;;  %v5971_v46 = vld [vmem:[%s7261_s30 + $0x28] sm:$0xff]  }
 0x2cc   :  { %v5100_v47 = vpop.f32.mrb[24].mxu1 }
 0x2cd   :  { %v5101_v48 = vpop.f32.mrb[25].mxu1 }
 0x2ce   :  { %v5102_v50 = vadd.f32 %v5101_v48, %v5100_v47  ;;  %v5103_v51 = vpop.f32.mrb[26].mxu1  ;;  %v5972_v47 = vld [vmem:[%s7261_s30 + $0x30] sm:$0xff]   ;;  %v5973_v48 = vld [vmem:[%s7261_s30 + $0x38] sm:$0xff]  }
 0x2cf   :  { %v5104_v52 = vpop.f32.mrb[27].mxu1 }
 0x2d0   :  { %v831_v54 = vadd.f32 %v5102_v50, %v782_v49  ;;  %v5105_v55 = vadd.f32 %v5104_v52, %v5103_v51  ;;  %v5974_v49 = vld [vmem:[%s7261_s30 + $0x40] sm:$0xff]   ;;  %v5980_v50 = vld [vmem:[%s7239_s12 + $0x28] sm:$0xff]   ;;  %v5981_v51 = vld [vmem:[%s7239_s12 + $0x30] sm:$0xff]  }
 0x2d1   :  { %v5982_v52 = vld [vmem:[%s7239_s12 + $0x38] sm:$0xff]  }
 0x2d2   :  { %v834_v56 = vadd.f32 %v5105_v55, %v785_v53  ;;  %v839_v57 = vmax.f32 %v831_v54, 0.0  ;;  %v5991_v53 = vld [vmem:[%s7233_s6 + $0x140] sm:$0xff]   ;;  %v5993_v55 = vld [vmem:[%s7233_s6 + $0x148] sm:$0xff]  }
 0x2d3   :  { %v5992_v54 = vld [vmem:[%s7233_s6 + $0x100] sm:$0xff]  }
 0x2d4   :  { %v840_v58 = vmax.f32 %v834_v56, 0.0  ;;  %v5994_v56 = vld [vmem:[%s7233_s6 + $0x108] sm:$0xff]  }
 0x2d6   :  { %v842_v60 = vpack.c.bf16 %v840_v58, %v839_v57 }
 0x2d8   :  { %5569 = vmatmul.mubr.bf16.vlgmr.msra.gmra.mrb[28].mxu0 %v842_v60 }
 0x2d9   :  { %5139 = vmatpush3.bf16.msra.mxu0 %v5936_v59 }
 0x2da   :  { %5140 = vmatprep.subr.bf16.mxu0 %v5938_v61  ;;  %v4498_v61 = vld [vmem:[%s7238_s11] ss:$0 sm:$0xff] }
 0x2dd   :  { %5141 = vmatpush3.bf16.msra.mxu0 %v5940_v62 }
 0x2de   :  { %5142 = vmatprep.subr.bf16.mxu0 %v5942_v63 }
 0x2e1   :  { %5143 = vmatpush3.bf16.msra.mxu0 %v5944_v1 }
 0x2e2   :  { %5144 = vmatprep.subr.bf16.mxu0 %v5946_v2 }
 0x2e5   :  { %5145 = vmatpush3.bf16.msra.mxu0 %v5948_v3 }
 0x2e6   :  { %5146 = vmatprep.subr.bf16.mxu0 %v5950_v4 }
 0x2e9   :  { %5147 = vmatpush3.bf16.msra.mxu0 %v5952_v5 }
 0x2ea   :  { %5148 = vmatprep.subr.bf16.mxu0 %v5954_v6 }
 0x2ed   :  { %5149 = vmatpush3.bf16.msra.mxu0 %v5956_v7 }
 0x2ee   :  { %5150 = vmatprep.subr.bf16.mxu0 %v5958_v9 }
 0x2f1   :  { %5151 = vmatpush3.bf16.msra.mxu0 %v5960_v11  ;;  %v5983_v11 = vld [vmem:[%s7260_s3 + $0x40] sm:$0xff]  }
 0x2f2   :  { %5152 = vmatprep.subr.bf16.mxu0 %v5962_v13 }
 0x2f5   :  { %5153 = vmatpush3.bf16.msra.mxu0 %v5964_v15 }
 0x2f6   :  { %5592 = vmatprep.subr.bf16.mxu0 %v6221_v0 }
 0x3ab   :  { %v5570_v18 = vpop.f32.mrb[28].mxu0 }
 0x3ac   :  { %v940_v19 = vadd.f32 %v5570_v18, %v4489_v17  ;;  %v931_v20 = vpop.f32.mrb[29].mxu0 }
 0x3ad   :  { %v932_v21 = vadd.f32 %v4489_v17, %v931_v20  ;;  %v5571_v22 = vpop.f32.mrb[30].mxu0 }
 0x3ae   :  { %v943_v23 = vadd.f32 %v5571_v22, %v4489_v17  ;;  %v934_v24 = vpop.f32.mrb[31].mxu0  ;;  %v948_v25 = vmax.f32 %v940_v19, 0.0 }
 0x3af   :  { %v935_v26 = vadd.f32 %v4489_v17, %v934_v24  ;;  %v946_v27 = vmax.f32 %v932_v21, 0.0  ;;  %v5984_v17 = vld [vmem:[%s7260_s3 + $0x48] sm:$0xff]   ;;  %v5985_v21 = vld [vmem:[%s7260_s3 + $0x50] sm:$0xff]  }
 0x3b0   :  { %v949_v28 = vmax.f32 %v943_v23, 0.0  ;;  %v952_v32 = vpack.c.bf16 %v948_v25, %v948_v25 }
 0x3b1   :  { %v947_v30 = vmax.f32 %v935_v26, 0.0  ;;  %v950_v36 = vpack.c.bf16 %v946_v27, %v946_v27  ;;  %v5986_v26 = vld [vmem:[%s7260_s3 + $0x58] sm:$0xff]  }
 0x3b2   :  { %v953_v31 = vpack.c.bf16 %v949_v28, %v949_v28 }
 0x3b3   :  { %v951_v33 = vpack.c.bf16 %v947_v30, %v947_v30  ;;  %v5987_v30 = vld [vmem:[%s7260_s3 + $0x60] sm:$0xff]  }
 0x3b4   :  { %1224 = vmatprep.mubr.bf16.mxu0 %v953_v31 }
 0x3b5   :  { %1184 = vmatprep.mubr.bf16.mxu1 %v951_v33  ;;  %1225 = vmatmul.mubr.bf16.vlgmr.msra.gmra.mrb[32].mxu0 %v952_v32 }
 0x3b6   :  { %1185 = vmatmul.mubr.bf16.vlgmr.msra.gmra.mrb[28].mxu1 %v950_v36  ;;  %5593 = vmatpush3.bf16.msra.mxu0 %v1621_v34 }
 0x3b7   :  { %5594 = vmatprep.mubr.msk.bf16.mxu0 %vm6222_vm0, %v6221_v0  ;;  %5573 = vmatpush3.bf16.msra.mxu1 %v5975_v35  ;;  %v5988_v35 = vld [vmem:[%s7260_s3 + $0x68] sm:$0xff]  }
 0x3b8   :  { %5574 = vmatprep.subr.bf16.mxu1 %v6221_v0  ;;  %5588 = vmatprep.mubr.msk.bf16.mxu1 %vm6222_vm0, %v6221_v0 }
 0x3b9   :  { %5196 = vmatprep.subr.bf16.mxu0 %v5991_v53 }
 0x3bb   :  { %5575 = vmatpush3.bf16.msra.mxu1 %v5976_v37 }
 0x3bc   :  { %5576 = vmatprep.subr.bf16.mxu1 %v6221_v0 }
 0x3bd   :  { %5595 = vmatmul.mubr.msk.bf16.vlgmr.msra.gmra.mrb[36].mxu0 %vm294_vm2, %v5966_v38 }
 0x3be   :  { %5598 = vmatprep.mubr.msk.bf16.mxu0 %vm6222_vm0, %v6221_v0  ;;  %5197 = vmatpush3.bf16.msra.mxu0 %v5992_v54 }
 0x3bf   :  { %5577 = vmatpush3.bf16.msra.mxu1 %v5977_v39  ;;  %5198 = vmatprep.subr.bf16.mxu0 %v5993_v55  ;;  %v5989_v39 = vld [vmem:[%s7260_s3 + $0x70] sm:$0xff]  }
 0x3c0   :  { %5578 = vmatprep.subr.bf16.mxu1 %v6221_v0 }
 0x3c2   :  { %5199 = vmatpush3.bf16.msra.mxu0 %v5994_v56 }
 0x3c3   :  { %5579 = vmatpush3.bf16.msra.mxu1 %v5978_v40 }
 0x3c4   :  { %5580 = vmatprep.subr.bf16.mxu1 %v6221_v0 }
 0x3c5   :  { %5599 = vmatmul.mubr.msk.bf16.gmra.mrb[40].mxu0 %vm294_vm2, %v5967_v41 }
 0x3c6   :  { %5602 = vmatprep.mubr.msk.bf16.mxu0 %vm6222_vm0, %v6221_v0 }
 0x3c7   :  { %5581 = vmatpush3.bf16.msra.mxu1 %v5979_v42 }
 0x3c8   :  { %5582 = vmatprep.subr.bf16.mxu1 %v6221_v0 }
 0x3cb   :  { %5583 = vmatpush3.bf16.msra.mxu1 %v5980_v50 }
 0x3cc   :  { %5584 = vmatprep.subr.bf16.mxu1 %v6221_v0 }
 0x3cd   :  { %5603 = vmatmul.mubr.msk.bf16.gmra.mrb[44].mxu0 %vm294_vm2, %v5968_v43 }
 0x3ce   :  { %5606 = vmatprep.mubr.msk.bf16.mxu0 %vm6222_vm0, %v6221_v0 }
 0x3cf   :  { %5585 = vmatpush3.bf16.msra.mxu1 %v5981_v51 }
 0x3d0   :  { %5586 = vmatprep.subr.bf16.mxu1 %v6221_v0 }
 0x3d3   :  { %5587 = vmatpush3.bf16.msra.mxu1 %v5982_v52 }
 0x3d4   :  { %5630 = vmatprep.subr.bf16.mxu1 %v6221_v0 }
 0x3d5   :  { %5607 = vmatmul.mubr.msk.bf16.gmra.mrb[48].mxu0 %vm294_vm2, %v5969_v44  ;;  %v5990_v44 = vld [vmem:[%s7260_s3 + $0x78] sm:$0xff]  }
 0x3d6   :  { %5610 = vmatprep.mubr.msk.bf16.mxu0 %vm6222_vm0, %v6221_v0 }
 0x3dd   :  { %5611 = vmatmul.mubr.msk.bf16.gmra.mrb[52].mxu0 %vm294_vm2, %v5970_v45 }
 0x3de   :  { %5614 = vmatprep.mubr.msk.bf16.mxu0 %vm6222_vm0, %v6221_v0 }
 0x3e5   :  { %5615 = vmatmul.mubr.msk.bf16.gmra.mrb[56].mxu0 %vm294_vm2, %v5971_v46 }
 0x3e6   :  { %5618 = vmatprep.mubr.msk.bf16.mxu0 %vm6222_vm0, %v6221_v0 }
 0x3ed   :  { %5619 = vmatmul.mubr.msk.bf16.gmra.mrb[60].mxu0 %vm294_vm2, %v5972_v47 }
 0x3ee   :  { %5622 = vmatprep.mubr.msk.bf16.mxu0 %vm6222_vm0, %v6221_v0 }
 0x3f5   :  { %5623 = vmatmul.mubr.msk.bf16.gmra.mrb[64].mxu0 %vm294_vm2, %v5973_v48 }
 0x3f6   :  { %5626 = vmatprep.mubr.msk.bf16.mxu0 %vm6222_vm0, %v6221_v0 }
 0x3fd   :  { %5627 = vmatmul.mubr.msk.bf16.gmra.mrb[68].mxu0 %vm294_vm2, %v5974_v49 }
 0x488   :  { %v5154_v57 = vpop.f32.mrb[32].mxu0 }
 0x489   :  { %v5132_v58 = vpop.f32.mrb[28].mxu1  ;;  %v5155_v59 = vpop.f32.mrb[33].mxu0 }
 0x48a   :  { %v5156_v60 = vadd.f32 %v5155_v59, %v5154_v57  ;;  %v5133_v62 = vpop.f32.mrb[29].mxu1  ;;  %v5157_v63 = vpop.f32.mrb[34].mxu0 }
 0x48b   :  { %v5134_v1 = vadd.f32 %v5133_v62, %v5132_v58  ;;  %v5135_v2 = vpop.f32.mrb[30].mxu1  ;;  %v5158_v3 = vpop.f32.mrb[35].mxu0 }
 0x48c   :  { %v5136_v4 = vpop.f32.mrb[31].mxu1 }
 0x48d   :  { %v1187_v5 = vadd.f32 %v5134_v1, %v4498_v61 }
 0x48f   :  { %v1227_v6 = vadd.f32 %v5156_v60, %v1187_v5 }
 0x490   :  { %v1657_v7 = vpop.f32.mrb[36].mxu0 }
 0x491   :  { %v1232_v8 = vmax.f32 %v1227_v6, 0.0  ;;  %v1728_v9 = vmax.f32 %v1657_v7, 0.0  ;;  %v5596_v10 = vpop.f32.mrb[37].mxu0 }
 0x492   :  { %v1660_v12 = vpop.f32.mrb[38].mxu0 }
 0x493   :  { %v1233_v13 = vpack.c.bf16 %v1232_v8, %v1232_v8  ;;  %v1729_v14 = vmax.f32 %v1660_v12, 0.0  ;;  %v5597_v15 = vpop.f32.mrb[39].mxu0 }
 0x495   :  { %5589 = vmatmul.mubr.bf16.vlgmr.msra.gmra.mrb[32].mxu1 %v1233_v13  ;;  %v1746_v16 = vpack.c.bf16 %v1729_v14, %v1728_v9 }
 0x496   :  { %5631 = vmatpush3.bf16.msra.mxu1 %v5983_v11  ;;  %5646 = vmatprep.mubr.msk.bf16.mxu1 %vm6222_vm0, %v6221_v0 }
 0x497   :  { %5632 = vmatprep.subr.bf16.mxu1 %v6221_v0 }
 0x498   :  { %v1665_v18 = vpop.f32.mrb[40].mxu0 }
 0x499   :  { %v1730_v19 = vmax.f32 %v1665_v18, 0.0  ;;  %v5600_v20 = vpop.f32.mrb[41].mxu0  ;;  %v5996_v18 = vld [vmem:[%s7233_s6 + $0x110] sm:$0xff]  }
 0x49a   :  { %5633 = vmatpush3.bf16.msra.mxu1 %v5984_v17  ;;  %v1668_v22 = vpop.f32.mrb[42].mxu0  ;;  %v5995_v17 = vld [vmem:[%s7233_s6 + $0x150] sm:$0xff]   ;;  %v5998_v20 = vld [vmem:[%s7233_s6 + $0x118] sm:$0xff]  }
 0x49b   :  { %5634 = vmatprep.subr.bf16.mxu1 %v6221_v0  ;;  %v1731_v23 = vmax.f32 %v1668_v22, 0.0  ;;  %v5601_v24 = vpop.f32.mrb[43].mxu0  ;;  %5200 = vmatprep.subr.bf16.mxu0 %v5995_v17  ;;  %v6000_v22 = vld [vmem:[%s7233_s6 + $0x120] sm:$0xff]  }
 0x49c   :  { %5201 = vmatpush3.bf16.msra.mxu0 %v5996_v18  ;;  %v6002_v24 = vld [vmem:[%s7233_s6 + $0x128] sm:$0xff]  }
 0x49d   :  { %v1747_v25 = vpack.c.bf16 %v1731_v23, %v1730_v19  ;;  %v5997_v19 = vld [vmem:[%s7233_s6 + $0x158] sm:$0xff]   ;;  %v6001_v23 = vld [vmem:[%s7233_s6 + $0x168] sm:$0xff]  }
 0x49e   :  { %5635 = vmatpush3.bf16.msra.mxu1 %v5985_v21  ;;  %5202 = vmatprep.subr.bf16.mxu0 %v5997_v19  ;;  %v5999_v21 = vld [vmem:[%s7233_s6 + $0x160] sm:$0xff]   ;;  %v6017_v18 = vld [vmem:[%s7233_s6 + $0x1e8] sm:$0xff]  }
 0x49f   :  { %5636 = vmatprep.subr.bf16.mxu1 %v6221_v0 }
 0x4a0   :  { %v1673_v27 = vpop.f32.mrb[44].mxu0  ;;  %5203 = vmatpush3.bf16.msra.mxu0 %v5998_v20 }
 0x4a1   :  { %v1732_v28 = vmax.f32 %v1673_v27, 0.0  ;;  %v5604_v29 = vpop.f32.mrb[45].mxu0  ;;  %5204 = vmatprep.subr.bf16.mxu0 %v5999_v21  ;;  %v6005_v27 = vld [vmem:[%s7233_s6 + $0x178] sm:$0xff]  }
 0x4a2   :  { %5637 = vmatpush3.bf16.msra.mxu1 %v5986_v26  ;;  %v1676_v31 = vpop.f32.mrb[46].mxu0  ;;  %v6004_v26 = vld [vmem:[%s7233_s6 + $0x130] sm:$0xff]   ;;  %v6007_v29 = vld [vmem:[%s7233_s6 + $0x1c0] sm:$0xff]  }
 0x4a3   :  { %5638 = vmatprep.subr.bf16.mxu1 %v6221_v0  ;;  %v1733_v32 = vmax.f32 %v1676_v31, 0.0  ;;  %v5605_v33 = vpop.f32.mrb[47].mxu0 }
 0x4a4   :  { %5205 = vmatpush3.bf16.msra.mxu0 %v6000_v22 }
 0x4a5   :  { %v1748_v34 = vpack.c.bf16 %v1733_v32, %v1732_v28  ;;  %5206 = vmatprep.subr.bf16.mxu0 %v6001_v23  ;;  %v6006_v28 = vld [vmem:[%s7233_s6 + $0x138] sm:$0xff]  }
 0x4a6   :  { %5639 = vmatpush3.bf16.msra.mxu1 %v5987_v30 }
 0x4a7   :  { %5640 = vmatprep.subr.bf16.mxu1 %v6221_v0 }
 0x4a8   :  { %v1681_v36 = vpop.f32.mrb[48].mxu0  ;;  %5207 = vmatpush3.bf16.msra.mxu0 %v6002_v24  ;;  %v6018_v24 = vld [vmem:[%s7233_s6 + $0x1a8] sm:$0xff]  }
 0x4a9   :  { %v1734_v37 = vmax.f32 %v1681_v36, 0.0  ;;  %v5608_v38 = vpop.f32.mrb[49].mxu0 }
 0x4aa   :  { %5641 = vmatpush3.bf16.msra.mxu1 %v5988_v35  ;;  %v1684_v40 = vpop.f32.mrb[50].mxu0 }
 0x4ab   :  { %5642 = vmatprep.subr.bf16.mxu1 %v6221_v0  ;;  %v1735_v41 = vmax.f32 %v1684_v40, 0.0  ;;  %v5609_v42 = vpop.f32.mrb[51].mxu0 }
 0x4ad   :  { %v1749_v43 = vpack.c.bf16 %v1735_v41, %v1734_v37 }
 0x4ae   :  { %5643 = vmatpush3.bf16.msra.mxu1 %v5989_v39 }
 0x4af   :  { %5644 = vmatprep.subr.bf16.mxu1 %v6221_v0 }
 0x4b0   :  { %v1689_v45 = vpop.f32.mrb[52].mxu0 }
 0x4b1   :  { %v1736_v46 = vmax.f32 %v1689_v45, 0.0  ;;  %v5612_v47 = vpop.f32.mrb[53].mxu0 }
 0x4b2   :  { %5645 = vmatpush3.bf16.msra.mxu1 %v5990_v44  ;;  %v1692_v48 = vpop.f32.mrb[54].mxu0 }
 0x4b3   :  { %v1737_v49 = vmax.f32 %v1692_v48, 0.0  ;;  %v5613_v50 = vpop.f32.mrb[55].mxu0 }
 0x4b5   :  { %5647 = vmatmul.mubr.bf16.vlgmr.msra.gmra.mrb[36].mxu1 %v1746_v16  ;;  %v1750_v51 = vpack.c.bf16 %v1737_v49, %v1736_v46 }
 0x4b6   :  { %5650 = vmatprep.mubr.msk.bf16.mxu1 %vm6222_vm0, %v6221_v0 }
 0x4b8   :  { %v1697_v52 = vpop.f32.mrb[56].mxu0 }
 0x4b9   :  { %v1738_v53 = vmax.f32 %v1697_v52, 0.0  ;;  %v5616_v54 = vpop.f32.mrb[57].mxu0 }
 0x4ba   :  { %v1700_v55 = vpop.f32.mrb[58].mxu0 }
 0x4bb   :  { %v1739_v56 = vmax.f32 %v1700_v55, 0.0  ;;  %v5617_v57 = vpop.f32.mrb[59].mxu0  ;;  %v6009_v55 = vld [vmem:[%s7233_s6 + $0x1c8] sm:$0xff]  }
 0x4bd   :  { %5651 = vmatmul.mubr.bf16.gmra.mrb[40].mxu1 %v1747_v25  ;;  %v1751_v58 = vpack.c.bf16 %v1739_v56, %v1738_v53  ;;  %v6003_v25 = vld [vmem:[%s7233_s6 + $0x170] sm:$0xff]   ;;  %v6008_v53 = vld [vmem:[%s7233_s6 + $0x180] sm:$0xff]  }
 0x4be   :  { %5654 = vmatprep.mubr.msk.bf16.mxu1 %vm6222_vm0, %v6221_v0  ;;  %5208 = vmatprep.subr.bf16.mxu0 %v6003_v25  ;;  %v6019_v25 = vld [vmem:[%s7233_s6 + $0x1f0] sm:$0xff]  }
 0x4bf   :  { %5209 = vmatpush3.bf16.msra.mxu0 %v6004_v26 }
 0x4c0   :  { %v1705_v59 = vpop.f32.mrb[60].mxu0  ;;  %5210 = vmatprep.subr.bf16.mxu0 %v6005_v27 }
 0x4c1   :  { %v1740_v60 = vmax.f32 %v1705_v59, 0.0  ;;  %v5620_v61 = vpop.f32.mrb[61].mxu0 }
 0x4c2   :  { %v1708_v62 = vpop.f32.mrb[62].mxu0  ;;  %v6010_v61 = vld [vmem:[%s7233_s6 + $0x188] sm:$0xff]  }
 0x4c3   :  { %v1741_v63 = vmax.f32 %v1708_v62, 0.0  ;;  %v5621_v1 = vpop.f32.mrb[63].mxu0  ;;  %5211 = vmatpush3.bf16.msra.mxu0 %v6006_v28  ;;  %v6011_v62 = vld [vmem:[%s7233_s6 + $0x1d0] sm:$0xff]  }
 0x4c4   :  { %5236 = vmatprep.subr.bf16.mxu0 %v6007_v29  ;;  %v6020_v29 = vld [vmem:[%s7233_s6 + $0x1b0] sm:$0xff]  }
 0x4c5   :  { %5655 = vmatmul.mubr.bf16.gmra.mrb[44].mxu1 %v1748_v34  ;;  %v1752_v2 = vpack.c.bf16 %v1741_v63, %v1740_v60  ;;  %v6749_v34 = vld [vmem:[%s7232_s5 + $0x1] ss:$0 sm:$0xff] }
 0x4c6   :  { %5658 = vmatprep.mubr.msk.bf16.mxu1 %vm6222_vm0, %v6221_v0 }
 0x4c8   :  { %v1713_v3 = vpop.f32.mrb[64].mxu0 }
 0x4c9   :  { %v1742_v4 = vmax.f32 %v1713_v3, 0.0  ;;  %v5624_v5 = vpop.f32.mrb[65].mxu0  ;;  %v6012_v3 = vld [vmem:[%s7233_s6 + $0x190] sm:$0xff]  }
 0x4ca   :  { %v1716_v6 = vpop.f32.mrb[66].mxu0  ;;  %v6013_v5 = vld [vmem:[%s7233_s6 + $0x1d8] sm:$0xff]  }
 0x4cb   :  { %v1743_v7 = vmax.f32 %v1716_v6, 0.0  ;;  %v5625_v8 = vpop.f32.mrb[67].mxu0 }
 0x4cd   :  { %5659 = vmatmul.mubr.bf16.gmra.mrb[48].mxu1 %v1749_v43  ;;  %v1753_v9 = vpack.c.bf16 %v1743_v7, %v1742_v4 }
 0x4ce   :  { %5662 = vmatprep.mubr.msk.bf16.mxu1 %vm6222_vm0, %v6221_v0 }
 0x4d0   :  { %v1721_v10 = vpop.f32.mrb[68].mxu0 }
 0x4d1   :  { %v1744_v11 = vmax.f32 %v1721_v10, 0.0  ;;  %v5628_v12 = vpop.f32.mrb[69].mxu0 }
 0x4d2   :  { %v1724_v13 = vpop.f32.mrb[70].mxu0  ;;  %v6015_v12 = vld [vmem:[%s7233_s6 + $0x1e0] sm:$0xff]  }
 0x4d3   :  { %v1745_v14 = vmax.f32 %v1724_v13, 0.0  ;;  %v5629_v15 = vpop.f32.mrb[71].mxu0 }
 0x4d5   :  { %5663 = vmatmul.mubr.bf16.gmra.mrb[52].mxu1 %v1750_v51  ;;  %v1754_v16 = vpack.c.bf16 %v1745_v14, %v1744_v11  ;;  %v6014_v11 = vld [vmem:[%s7233_s6 + $0x198] sm:$0xff]  }
 0x4d6   :  { %5666 = vmatprep.mubr.msk.bf16.mxu1 %vm6222_vm0, %v6221_v0 }
 0x4dd   :  { %5667 = vmatmul.mubr.bf16.gmra.mrb[56].mxu1 %v1751_v58 }
 0x4de   :  { %5670 = vmatprep.mubr.msk.bf16.mxu1 %vm6222_vm0, %v6221_v0 }
 0x4e5   :  { %5671 = vmatmul.mubr.bf16.gmra.mrb[60].mxu1 %v1752_v2 }
 0x4e6   :  { %5674 = vmatprep.mubr.msk.bf16.mxu1 %vm6222_vm0, %v6221_v0 }
 0x4ed   :  { %5675 = vmatmul.mubr.bf16.gmra.mrb[64].mxu1 %v1753_v9 }
 0x4ee   :  { %5678 = vmatprep.mubr.msk.bf16.mxu1 %vm6222_vm0, %v6221_v0 }
 0x4f5   :  { %5679 = vmatmul.mubr.bf16.gmra.mrb[68].mxu1 %v1754_v16  ;;  %v6016_v16 = vld [vmem:[%s7233_s6 + $0x1a0] sm:$0xff]  }
 0x568   :  { %v6744_v30 = vpop.f32.mrb[32].mxu1 }
 0x569   :  { %v5590_v31 = vpop.f32.mrb[33].mxu1 }
 0x56a   :  { %v1325_v32 = vpop.f32.mrb[34].mxu1 }
 0x56b   :  { %v5591_v33 = vpop.f32.mrb[35].mxu1  ;;  %v6021_v32 = vld [vmem:[%s7233_s6 + $0x1f8] sm:$0xff]  }
 0x588   :  { %v1843_v35 = vpop.f32.mrb[36].mxu1 }
 0x589   :  { %v1844_v36 = vadd.f32 %v6749_v34, %v1843_v35  ;;  %v5648_v37 = vpop.f32.mrb[37].mxu1 }
 0x58a   :  { %v1846_v38 = vpop.f32.mrb[38].mxu1 }
 0x58b   :  { %v1847_v39 = vadd.f32 %v6749_v34, %v1846_v38  ;;  %v5649_v40 = vpop.f32.mrb[39].mxu1  ;;  %v1914_v41 = vmax.f32 %v1844_v36, 0.0 }
 0x58d   :  { %v1915_v42 = vmax.f32 %v1847_v39, 0.0  ;;  %v6022_v39 = vld [vmem:[%s7233_s6 + $0x1b8] sm:$0xff]  }
 0x58f   :  { %v1932_v43 = vpack.c.bf16 %v1915_v42, %v1914_v41 }
 0x590   :  { %v1851_v44 = vpop.f32.mrb[40].mxu1 }
 0x591   :  { %v1852_v45 = vadd.f32 %v6749_v34, %v1851_v44  ;;  %v5652_v46 = vpop.f32.mrb[41].mxu1 }
 0x592   :  { %v1854_v47 = vpop.f32.mrb[42].mxu1 }
 0x593   :  { %v1855_v48 = vadd.f32 %v6749_v34, %v1854_v47  ;;  %v5653_v49 = vpop.f32.mrb[43].mxu1  ;;  %v1916_v50 = vmax.f32 %v1852_v45, 0.0 }
 0x595   :  { %v1917_v51 = vmax.f32 %v1855_v48, 0.0 }
 0x597   :  { %v1933_v52 = vpack.c.bf16 %v1917_v51, %v1916_v50 }
 0x598   :  { %v1859_v54 = vpop.f32.mrb[44].mxu1 }
 0x599   :  { %v1860_v56 = vadd.f32 %v6749_v34, %v1859_v54  ;;  %v5656_v57 = vpop.f32.mrb[45].mxu1  ;;  %2171 = vmatprep.mubr.bf16.mxu0 %v1933_v52 }
 0x59a   :  { %v1862_v58 = vpop.f32.mrb[46].mxu1  ;;  %2172 = vmatmul.mubr.bf16.vlgmr.msra.gmra.mrb[72].mxu0 %v1932_v43 }
 0x59b   :  { %v1863_v59 = vadd.f32 %v6749_v34, %v1862_v58  ;;  %v5657_v60 = vpop.f32.mrb[47].mxu1  ;;  %5237 = vmatpush3.bf16.msra.mxu0 %v6008_v53  ;;  %v1918_v63 = vmax.f32 %v1860_v56, 0.0 }
 0x59c   :  { %5238 = vmatprep.subr.bf16.mxu0 %v6009_v55 }
 0x59d   :  { %v1919_v1 = vmax.f32 %v1863_v59, 0.0 }
 0x59f   :  { %v1936_v2 = vpack.c.bf16 %v1919_v1, %v1918_v63  ;;  %5239 = vmatpush3.bf16.msra.mxu0 %v6010_v61 }
 0x5a0   :  { %v1867_v4 = vpop.f32.mrb[48].mxu1  ;;  %5240 = vmatprep.subr.bf16.mxu0 %v6011_v62 }
 0x5a1   :  { %v1868_v6 = vadd.f32 %v6749_v34, %v1867_v4  ;;  %v5660_v7 = vpop.f32.mrb[49].mxu1  ;;  %2179 = vmatprep.mubr.bf16.mxu0 %v1936_v2 }
 0x5a2   :  { %v1870_v8 = vpop.f32.mrb[50].mxu1  ;;  %2180 = vmatmul.mubr.bf16.gmra.mrb[76].mxu0 %v1933_v52  ;;  %v6023_v7 = vld [vmem:[%s7235_s8 + $0x40] sm:$0xff]  }
 0x5a3   :  { %v1871_v9 = vadd.f32 %v6749_v34, %v1870_v8  ;;  %v5661_v10 = vpop.f32.mrb[51].mxu1  ;;  %5241 = vmatpush3.bf16.msra.mxu0 %v6012_v3  ;;  %v1920_v13 = vmax.f32 %v1868_v6, 0.0  ;;  %5682 = vmatprep.subr.bf16.mxu1 %v6023_v7  ;;  %v6024_v8 = vld [vmem:[%s7235_s8 + $0x48] sm:$0xff]  }
 0x5a4   :  { %5242 = vmatprep.subr.bf16.mxu0 %v6013_v5  ;;  %5683 = vmatpush3.bf16.msra.mxu1 %v6023_v7  ;;  %v6027_v10 = vld [vmem:[%s7235_s8 + $0x60] sm:$0xff]  }
 0x5a5   :  { %v1921_v14 = vmax.f32 %v1871_v9, 0.0  ;;  %5684 = vmatprep.subr.bf16.mxu1 %v6024_v8  ;;  %v6026_v9 = vld [vmem:[%s7235_s8 + $0x58] sm:$0xff]  }
 0x5a7   :  { %v1934_v15 = vpack.c.bf16 %v1921_v14, %v1920_v13  ;;  %5243 = vmatpush3.bf16.msra.mxu0 %v6014_v11  ;;  %v6028_v11 = vld [vmem:[%s7235_s8 + $0x68] sm:$0xff]   ;;  %v6030_v13 = vld [vmem:[%s7235_s8 + $0x78] sm:$0xff]   ;;  %v6031_v14 = vld [vmem:[#allocation2 + $0x140] sm:$0xff]  }
 0x5a8   :  { %v1875_v17 = vpop.f32.mrb[52].mxu1  ;;  %5244 = vmatprep.subr.bf16.mxu0 %v6015_v12  ;;  %5685 = vmatpush3.bf16.msra.mxu1 %v6024_v8  ;;  %v6029_v12 = vld [vmem:[%s7235_s8 + $0x70] sm:$0xff]  }
 0x5a9   :  { %v1876_v19 = vadd.f32 %v6749_v34, %v1875_v17  ;;  %v5664_v20 = vpop.f32.mrb[53].mxu1  ;;  %v6039_v17 = vld [vmem:[#allocation2 + $0x1c0] sm:$0xff]  }
 0x5aa   :  { %v1878_v21 = vpop.f32.mrb[54].mxu1  ;;  %v6036_v20 = vld [vmem:[#allocation2 + $0x110] sm:$0xff]  }
 0x5ab   :  { %v1879_v22 = vadd.f32 %v6749_v34, %v1878_v21  ;;  %v5665_v23 = vpop.f32.mrb[55].mxu1  ;;  %5245 = vmatpush3.bf16.msra.mxu0 %v6016_v16  ;;  %v1922_v26 = vmax.f32 %v1876_v19, 0.0  ;;  %v6033_v16 = vld [vmem:[#allocation2 + $0x148] sm:$0xff]   ;;  %v6035_v19 = vld [vmem:[#allocation2 + $0x150] sm:$0xff]   ;;  %v6037_v21 = vld [vmem:[#allocation2 + $0x158] sm:$0xff]  }
 0x5ac   :  { %5246 = vmatprep.subr.bf16.mxu0 %v6017_v18  ;;  %v6034_v18 = vld [vmem:[#allocation2 + $0x108] sm:$0xff]   ;;  %v6040_v23 = vld [vmem:[#allocation2 + $0x160] sm:$0xff]  }
 0x5ad   :  { %v1923_v27 = vmax.f32 %v1879_v22, 0.0  ;;  %v6038_v22 = vld [vmem:[#allocation2 + $0x118] sm:$0xff]  }
 0x5af   :  { %v1935_v28 = vpack.c.bf16 %v1923_v27, %v1922_v26  ;;  %5247 = vmatpush3.bf16.msra.mxu0 %v6018_v24  ;;  %v6042_v24 = vld [vmem:[#allocation2 + $0x120] sm:$0xff]   ;;  %v6046_v26 = vld [vmem:[#allocation2 + $0x128] sm:$0xff]  }
 0x5b0   :  { %v1883_v31 = vpop.f32.mrb[56].mxu1  ;;  %5248 = vmatprep.subr.bf16.mxu0 %v6019_v25  ;;  %v6044_v25 = vld [vmem:[#allocation2 + $0x168] sm:$0xff]  }
 0x5b1   :  { %v1884_v33 = vadd.f32 %v6749_v34, %v1883_v31  ;;  %v5668_v35 = vpop.f32.mrb[57].mxu1  ;;  %2187 = vmatprep.mubr.bf16.mxu0 %v1935_v28 }
 0x5b2   :  { %v1886_v36 = vpop.f32.mrb[58].mxu1  ;;  %2188 = vmatmul.mubr.bf16.gmra.mrb[80].mxu0 %v1934_v15 }
 0x5b3   :  { %v1887_v37 = vadd.f32 %v6749_v34, %v1886_v36  ;;  %v5669_v38 = vpop.f32.mrb[59].mxu1  ;;  %5249 = vmatpush3.bf16.msra.mxu0 %v6020_v29  ;;  %v1924_v40 = vmax.f32 %v1884_v33, 0.0 }
 0x5b4   :  { %5250 = vmatprep.subr.bf16.mxu0 %v6021_v32 }
 0x5b5   :  { %v1925_v41 = vmax.f32 %v1887_v37, 0.0 }
 0x5b7   :  { %v1937_v42 = vpack.c.bf16 %v1925_v41, %v1924_v40  ;;  %5251 = vmatpush3.bf16.msra.mxu0 %v6022_v39 }
 0x5b8   :  { %v1891_v43 = vpop.f32.mrb[60].mxu1  ;;  %5288 = vmatprep.subr.bf16.mxu0 %v6031_v14 }
 0x5b9   :  { %2195 = vmatprep.mubr.bf16.mxu0 %v1937_v42  ;;  %v1892_v44 = vadd.f32 %v6749_v34, %v1891_v43  ;;  %v5672_v45 = vpop.f32.mrb[61].mxu1 }
 0x5ba   :  { %2196 = vmatmul.mubr.bf16.gmra.mrb[84].mxu0 %v1935_v28  ;;  %v1894_v46 = vpop.f32.mrb[62].mxu1 }
 0x5bb   :  { %v1926_v47 = vmax.f32 %v1892_v44, 0.0  ;;  %2236 = vmatprep.mubr.bf16.mxu0 %v1935_v28  ;;  %v1895_v48 = vadd.f32 %v6749_v34, %v1894_v46  ;;  %v5673_v49 = vpop.f32.mrb[63].mxu1 }
 0x5bd   :  { %v1927_v50 = vmax.f32 %v1895_v48, 0.0 }
 0x5bf   :  { %v1938_v51 = vpack.c.bf16 %v1927_v50, %v1926_v47 }
 0x5c0   :  { %v1899_v52 = vpop.f32.mrb[64].mxu1 }
 0x5c1   :  { %v1900_v53 = vadd.f32 %v6749_v34, %v1899_v52  ;;  %v5676_v54 = vpop.f32.mrb[65].mxu1 }
 0x5c2   :  { %2237 = vmatmul.mubr.bf16.vlgmr.msra.gmra.mrb[88].mxu0 %v1934_v15  ;;  %v1902_v55 = vpop.f32.mrb[66].mxu1  ;;  %v6032_v15 = vld [vmem:[#allocation2 + $0x100] sm:$0xff]  }
 0x5c3   :  { %v1928_v56 = vmax.f32 %v1900_v53, 0.0  ;;  %2244 = vmatprep.mubr.bf16.mxu0 %v1937_v42  ;;  %v1903_v57 = vadd.f32 %v6749_v34, %v1902_v55  ;;  %v5677_v58 = vpop.f32.mrb[67].mxu1  ;;  %5289 = vmatpush3.bf16.msra.mxu0 %v6032_v15  ;;  %v4702_v53 = vld [vmem:[%s7234_s7 + $0x1] ss:$0 sm:$0xff] }
 0x5c4   :  { %5290 = vmatprep.subr.bf16.mxu0 %v6033_v16 }
 0x5c5   :  { %v1929_v59 = vmax.f32 %v1903_v57, 0.0 }
 0x5c7   :  { %v1939_v60 = vpack.c.bf16 %v1929_v59, %v1928_v56  ;;  %5291 = vmatpush3.bf16.msra.mxu0 %v6034_v18 }
 0x5c8   :  { %v1907_v61 = vpop.f32.mrb[68].mxu1  ;;  %5292 = vmatprep.subr.bf16.mxu0 %v6035_v19 }
 0x5c9   :  { %v1908_v62 = vadd.f32 %v6749_v34, %v1907_v61  ;;  %v5680_v63 = vpop.f32.mrb[69].mxu1 }
 0x5ca   :  { %2245 = vmatmul.mubr.bf16.gmra.mrb[92].mxu0 %v1935_v28  ;;  %v1910_v1 = vpop.f32.mrb[70].mxu1 }
 0x5cb   :  { %v1930_v2 = vmax.f32 %v1908_v62, 0.0  ;;  %v1911_v3 = vadd.f32 %v6749_v34, %v1910_v1  ;;  %2252 = vmatprep.mubr.bf16.mxu0 %v1939_v60  ;;  %v5681_v4 = vpop.f32.mrb[71].mxu1  ;;  %v6025_v34 = vld [vmem:[%s7235_s8 + $0x50] sm:$0xff]   ;;  %5293 = vmatpush3.bf16.msra.mxu0 %v6036_v20 }
 0x5cc   :  { %5686 = vmatprep.subr.bf16.mxu1 %v6025_v34  ;;  %5294 = vmatprep.subr.bf16.mxu0 %v6037_v21 }
 0x5cd   :  { %v1931_v5 = vmax.f32 %v1911_v3, 0.0  ;;  %5687 = vmatpush3.bf16.msra.mxu1 %v6025_v34 }
 0x5ce   :  { %5688 = vmatprep.subr.bf16.mxu1 %v6026_v9 }
 0x5cf   :  { %v1940_v6 = vpack.c.bf16 %v1931_v5, %v1930_v2  ;;  %5295 = vmatpush3.bf16.msra.mxu0 %v6038_v22  ;;  %v6043_v22 = vld [vmem:[#allocation2 + $0x1c8] sm:$0xff]  }
 0x5d0   :  { %5296 = vmatprep.subr.bf16.mxu0 %v6040_v23 }
 0x5d1   :  { %5689 = vmatpush3.bf16.msra.mxu1 %v6026_v9 }
 0x5d2   :  { %2253 = vmatmul.mubr.bf16.gmra.mrb[96].mxu0 %v1938_v51  ;;  %5690 = vmatprep.subr.bf16.mxu1 %v6027_v10 }
 0x5d3   :  { %2260 = vmatprep.mubr.bf16.mxu0 %v1940_v6  ;;  %5297 = vmatpush3.bf16.msra.mxu0 %v6042_v24 }
 0x5d4   :  { %5298 = vmatprep.subr.bf16.mxu0 %v6044_v25 }
 0x5d5   :  { %5691 = vmatpush3.bf16.msra.mxu1 %v6027_v10 }
 0x5d6   :  { %5692 = vmatprep.subr.bf16.mxu1 %v6028_v11 }
 0x5d7   :  { %5299 = vmatpush3.bf16.msra.mxu0 %v6046_v26 }
 0x5d9   :  { %5693 = vmatpush3.bf16.msra.mxu1 %v6028_v11 }
 0x5da   :  { %2261 = vmatmul.mubr.bf16.gmra.mrb[100].mxu0 %v1939_v60  ;;  %5694 = vmatprep.subr.bf16.mxu1 %v6029_v12 }
 0x5dd   :  { %5695 = vmatpush3.bf16.msra.mxu1 %v6029_v12 }
 0x5de   :  { %5696 = vmatprep.subr.bf16.mxu1 %v6030_v13 }
 0x5e1   :  { %5697 = vmatpush3.bf16.msra.mxu1 %v6030_v13 }
 0x5e2   :  { %5310 = vmatprep.subr.bf16.mxu1 %v6039_v17  ;;  %v6041_v17 = vld [vmem:[#allocation2 + $0x180] sm:$0xff]  }
 0x66d   :  { %v5212_v27 = vpop.f32.mrb[72].mxu0 }
 0x66e   :  { %v5213_v28 = vpop.f32.mrb[73].mxu0 }
 0x66f   :  { %v5214_v29 = vadd.f32 %v5213_v28, %v5212_v27  ;;  %v5215_v31 = vpop.f32.mrb[74].mxu0  ;;  %v6045_v27 = vld [vmem:[#allocation2 + $0x188] sm:$0xff]  }
 0x670   :  { %v5216_v32 = vpop.f32.mrb[75].mxu0 }
 0x671   :  { %v5217_v33 = vadd.f32 %v5216_v32, %v5215_v31  ;;  %v2174_v56 = vadd.f32 %v5214_v29, %v4702_v53 }
 0x673   :  { %v2177_v60 = vadd.f32 %v5217_v33, %v4702_v53 }
 0x675   :  { %v5218_v35 = vpop.f32.mrb[76].mxu0 }
 0x676   :  { %v5219_v36 = vpop.f32.mrb[77].mxu0 }
 0x677   :  { %v5220_v37 = vadd.f32 %v5219_v36, %v5218_v35  ;;  %v5221_v38 = vpop.f32.mrb[78].mxu0 }
 0x678   :  { %v5222_v39 = vpop.f32.mrb[79].mxu0 }
 0x679   :  { %v5223_v40 = vadd.f32 %v5222_v39, %v5221_v38  ;;  %v2182_v5 = vadd.f32 %v5220_v37, %v4702_v53 }
 0x67b   :  { %v2185_v9 = vadd.f32 %v5223_v40, %v4702_v53 }
 0x685   :  { %v5224_v41 = vpop.f32.mrb[80].mxu0 }
 0x686   :  { %v5225_v42 = vpop.f32.mrb[81].mxu0 }
 0x687   :  { %v5226_v43 = vadd.f32 %v5225_v42, %v5224_v41  ;;  %v5227_v44 = vpop.f32.mrb[82].mxu0 }
 0x688   :  { %v5228_v45 = vpop.f32.mrb[83].mxu0 }
 0x689   :  { %v5229_v46 = vadd.f32 %v5228_v45, %v5227_v44  ;;  %v2190_v18 = vadd.f32 %v5226_v43, %v4702_v53 }
 0x68b   :  { %v2193_v24 = vadd.f32 %v5229_v46, %v4702_v53 }
 0x68d   :  { %v5230_v47 = vpop.f32.mrb[84].mxu0 }
 0x68e   :  { %v5231_v48 = vpop.f32.mrb[85].mxu0 }
 0x68f   :  { %v5232_v49 = vadd.f32 %v5231_v48, %v5230_v47  ;;  %v5233_v50 = vpop.f32.mrb[86].mxu0  ;;  %v6047_v47 = vld [vmem:[#allocation2 + $0x1d0] sm:$0xff]  }
 0x690   :  { %v5234_v51 = vpop.f32.mrb[87].mxu0  ;;  %v6048_v48 = vld [vmem:[#allocation2 + $0x170] sm:$0xff]  }
 0x691   :  { %v5235_v52 = vadd.f32 %v5234_v51, %v5233_v50  ;;  %v2198_v35 = vadd.f32 %v5232_v49, %v4702_v53  ;;  %v6049_v50 = vld [vmem:[#allocation2 + $0x190] sm:$0xff]   ;;  %5300 = vmatprep.subr.bf16.mxu0 %v6048_v48  ;;  %v6051_v49 = vld [vmem:[#allocation2 + $0x1d8] sm:$0xff]  }
 0x692   :  { %v6050_v51 = vld [vmem:[#allocation2 + $0x130] sm:$0xff]  }
 0x693   :  { %v2201_v40 = vadd.f32 %v5235_v52, %v4702_v53  ;;  %5301 = vmatpush3.bf16.msra.mxu0 %v6050_v51  ;;  %v6054_v52 = vld [vmem:[#allocation2 + $0x138] sm:$0xff]   ;;  %v6055_v53 = vld [vmem:[#allocation2 + $0x1e0] sm:$0xff]  }
 0x695   :  { %v5252_v54 = vpop.f32.mrb[88].mxu0 }
 0x696   :  { %v5253_v55 = vpop.f32.mrb[89].mxu0 }
 0x697   :  { %v5254_v57 = vadd.f32 %v5253_v55, %v5252_v54  ;;  %v5255_v58 = vpop.f32.mrb[90].mxu0  ;;  %v6052_v54 = vld [vmem:[#allocation2 + $0x178] sm:$0xff]  }
 0x698   :  { %v5256_v59 = vpop.f32.mrb[91].mxu0  ;;  %v6053_v55 = vld [vmem:[#allocation2 + $0x198] sm:$0xff]   ;;  %5302 = vmatprep.subr.bf16.mxu0 %v6052_v54  ;;  %v4744_v54 = vld [vmem:[%s7238_s11 + $0x1] ss:$0 sm:$0xff] }
 0x699   :  { %v2239_v61 = vadd.f32 %v5254_v57, %v2174_v56  ;;  %v5257_v62 = vadd.f32 %v5256_v59, %v5255_v58  ;;  %5303 = vmatpush3.bf16.msra.mxu0 %v6054_v52  ;;  %v6056_v56 = vld [vmem:[#allocation2 + $0x1a0] sm:$0xff]   ;;  %v6057_v57 = vld [vmem:[#allocation2 + $0x1e8] sm:$0xff]   ;;  %v6059_v59 = vld [vmem:[#allocation2 + $0x1f0] sm:$0xff]  }
 0x69a   :  { %5706 = vmatprep.subr.bf16.mxu0 %v6221_v0  ;;  %v6058_v58 = vld [vmem:[#allocation2 + $0x1a8] sm:$0xff]  }
 0x69b   :  { %v2242_v63 = vadd.f32 %v5257_v62, %v2177_v60  ;;  %v2269_v1 = vmax.f32 %v2239_v61, 0.0  ;;  %v6060_v60 = vld [vmem:[#allocation2 + $0x1b0] sm:$0xff]   ;;  %v6061_v61 = vld [vmem:[#allocation2 + $0x1f8] sm:$0xff]  }
 0x69c   :  { %v6062_v62 = vld [vmem:[#allocation2 + $0x1b8] sm:$0xff]  }
 0x69d   :  { %v2270_v2 = vmax.f32 %v2242_v63, 0.0  ;;  %v5258_v3 = vpop.f32.mrb[92].mxu0  ;;  %v4531_v63 = vld [vmem:[%s7240_s13] ss:$0 sm:$0xff] }
 0x69e   :  { %v5259_v4 = vpop.f32.mrb[93].mxu0 }
 0x69f   :  { %v5260_v6 = vadd.f32 %v5259_v4, %v5258_v3  ;;  %v5261_v7 = vpop.f32.mrb[94].mxu0  ;;  %v2277_v8 = vpack.c.bf16 %v2270_v2, %v2269_v1  ;;  %v1323_v1 = vadd.f32 %v4531_v63, %v6744_v30  ;;  %v4735_v2 = vld [vmem:[%s7236_s9 + $0x1] ss:$0 sm:$0xff] }
 0x6a0   :  { %v5262_v34 = vpop.f32.mrb[95].mxu0  ;;  %v6063_v30 = vld [vmem:[%s7239_s12 + $0x40] sm:$0xff]  }
 0x6a1   :  { %v2247_v10 = vadd.f32 %v5260_v6, %v2182_v5  ;;  %v5263_v11 = vadd.f32 %v5262_v34, %v5261_v7  ;;  %5698 = vmatprep.mubr.bf16.mxu1 %v2277_v8  ;;  %v1328_v6 = vmax.f32 %v1323_v1, -1.0 }
 0x6a3   :  { %v2250_v12 = vadd.f32 %v5263_v11, %v2185_v9  ;;  %v2271_v13 = vmax.f32 %v2247_v10, 0.0 }
 0x6a5   :  { %v2272_v14 = vmax.f32 %v2250_v12, 0.0  ;;  %v5264_v15 = vpop.f32.mrb[96].mxu0 }
 0x6a6   :  { %v5265_v16 = vpop.f32.mrb[97].mxu0 }
 0x6a7   :  { %v2278_v19 = vpack.c.bf16 %v2272_v14, %v2271_v13  ;;  %v5266_v20 = vadd.f32 %v5265_v16, %v5264_v15  ;;  %v5267_v21 = vpop.f32.mrb[98].mxu0  ;;  %v1329_v13 = vmin.f32 %v1328_v6, 0.9921875 }
 0x6a8   :  { %v5268_v23 = vpop.f32.mrb[99].mxu0 }
 0x6a9   :  { %v2255_v25 = vadd.f32 %v5266_v20, %v2190_v18  ;;  %v5269_v26 = vadd.f32 %v5268_v23, %v5267_v21  ;;  %5699 = vmatmul.mubr.bf16.vlgmr.msra.gmra.mrb[72].mxu1 %v2278_v19  ;;  %v1330_v18 = vmul.f32 128.0, %v1329_v13  ;;  %v6076_v13 = vld [vmem:[%s7260_s3 + $0x80] sm:$0xff]  }
 0x6aa   :  { %5311 = vmatpush3.bf16.msra.mxu1 %v6041_v17 }
 0x6ab   :  { %v2258_v28 = vadd.f32 %v5269_v26, %v2193_v24  ;;  %5312 = vmatprep.subr.bf16.mxu1 %v6043_v22  ;;  %v2273_v29 = vmax.f32 %v2255_v25, 0.0  ;;  %v5871_v19 = vround.rtne.f32 %v1330_v18 }
 0x6ad   :  { %v2274_v31 = vmax.f32 %v2258_v28, 0.0  ;;  %v5270_v32 = vpop.f32.mrb[100].mxu0  ;;  %v1332_v23 = vmul.f32 0.0078125, %v5871_v19 }
 0x6ae   :  { %v5271_v33 = vpop.f32.mrb[101].mxu0  ;;  %5313 = vmatpush3.bf16.msra.mxu1 %v6045_v27 }
 0x6af   :  { %v5272_v36 = vadd.f32 %v5271_v33, %v5270_v32  ;;  %v5273_v37 = vpop.f32.mrb[102].mxu0  ;;  %v2279_v38 = vpack.c.bf16 %v2274_v31, %v2273_v29  ;;  %5314 = vmatprep.subr.bf16.mxu1 %v6047_v47  ;;  %v1346_v32 = vpack.c.bf16 %v1332_v23, %v1332_v23 }
 0x6b0   :  { %v5274_v39 = vpop.f32.mrb[103].mxu0 }
 0x6b1   :  { %v2263_v41 = vadd.f32 %v5272_v36, %v2198_v35  ;;  %v5275_v42 = vadd.f32 %v5274_v39, %v5273_v37  ;;  %5702 = vmatprep.mubr.bf16.mxu1 %v2279_v38  ;;  %v2857_v38 = vsel %vm310_vm1, %v1346_v32, 0  ;;  %v6064_v39 = vld [vmem:[%s7239_s12 + $0x48] sm:$0xff]  }
 0x6b2   :  { %5315 = vmatpush3.bf16.msra.mxu1 %v6049_v50 }
 0x6b3   :  { %v2266_v43 = vadd.f32 %v5275_v42, %v2201_v40  ;;  %v2275_v44 = vmax.f32 %v2263_v41, 0.0  ;;  %5316 = vmatprep.subr.bf16.mxu1 %v6051_v49  ;;  %v6065_v40 = vld [vmem:[%s7239_s12 + $0x50] sm:$0xff]   ;;  %v6066_v41 = vld [vmem:[%s7239_s12 + $0x58] sm:$0xff]   ;;  %v6067_v42 = vld [vmem:[%s7239_s12 + $0x60] sm:$0xff]  }
 0x6b5   :  { %v2276_v45 = vmax.f32 %v2266_v43, 0.0  ;;  %v6068_v43 = vld [vmem:[%s7239_s12 + $0x68] sm:$0xff]  }
 0x6b6   :  { %5317 = vmatpush3.bf16.msra.mxu1 %v6053_v55 }
 0x6b7   :  { %v2280_v46 = vpack.c.bf16 %v2276_v45, %v2275_v44  ;;  %5318 = vmatprep.subr.bf16.mxu1 %v6055_v53  ;;  %v6069_v44 = vld [vmem:[%s7239_s12 + $0x70] sm:$0xff]   ;;  %v6070_v45 = vld [vmem:[%s7239_s12 + $0x78] sm:$0xff]  }
 0x6b9   :  { %5703 = vmatmul.mubr.bf16.gmra.mrb[76].mxu1 %v2280_v46 }
 0x6ba   :  { %5319 = vmatpush3.bf16.msra.mxu1 %v6056_v56 }
 0x6bb   :  { %5320 = vmatprep.subr.bf16.mxu1 %v6057_v57 }
 0x6be   :  { %5321 = vmatpush3.bf16.msra.mxu1 %v6058_v58 }
 0x6bf   :  { %5322 = vmatprep.subr.bf16.mxu1 %v6059_v59 }
 0x6c2   :  { %5323 = vmatpush3.bf16.msra.mxu1 %v6060_v60 }
 0x6c3   :  { %5324 = vmatprep.subr.bf16.mxu1 %v6061_v61 }
 0x6c6   :  { %5325 = vmatpush3.bf16.msra.mxu1 %v6062_v62 }
 0x6c7   :  { %5732 = vmatprep.subr.bf16.mxu1 %v6221_v0 }
 0x77c   :  { %v5700_v3 = vpop.f32.mrb[72].mxu1 }
 0x77d   :  { %v2378_v4 = vadd.f32 %v5700_v3, %v4735_v2  ;;  %v2369_v5 = vpop.f32.mrb[73].mxu1  ;;  %v1333_v3 = vlaneseq }
 0x77e   :  { %v2370_v7 = vadd.f32 %v4735_v2, %v2369_v5  ;;  %v5701_v8 = vpop.f32.mrb[74].mxu1 }
 0x77f   :  { %v2381_v34 = vadd.f32 %v5701_v8, %v4735_v2  ;;  %v2372_v9 = vpop.f32.mrb[75].mxu1  ;;  %v2402_v11 = vmax.f32 %v2378_v4, 0.0  ;;  %v1336_v4 = vshrl.u32 %v1333_v3, 7  ;;  %v1334_v6 = vand.u32 127, %v1333_v3 }
 0x780   :  { %v2373_v10 = vadd.f32 %v4735_v2, %v2372_v9  ;;  %v2400_v14 = vmax.f32 %v2370_v7, 0.0  ;;  %v6095_v9 = vld [vmem:[%s7233_s6 + $0x288] sm:$0xff]  }
 0x781   :  { %v2403_v12 = vmax.f32 %v2381_v34, 0.0  ;;  %v1339_v5 = vadd.s32 1, %v1336_v4  ;;  %v2800_v7 = vmul.u32 8, %v1336_v4 }
 0x782   :  { %v2401_v15 = vmax.f32 %v2373_v10, 0.0  ;;  %v1337_v10 = vmul.u32 4, %v1336_v4 }
 0x783   :  { %v2409_v16 = vpack.c.bf16 %v2403_v12, %v2402_v11  ;;  %v2802_v8 = vmul.u32 8, %v1339_v5  ;;  %vm6893_vm3 = vcmp.ge.s32.totalorder %v1334_v6, %v2800_v7  ;;  %v1340_v11 = vmul.u32 4, %v1339_v5 }
 0x784   :  { %v2408_v17 = vpack.c.bf16 %v2401_v15, %v2400_v14  ;;  %vm1338_vm6 = vcmp.ge.s32.totalorder %v1334_v6, %v1337_v10  ;;  %v6077_v15 = vld [vmem:[%s7260_s3 + $0x88] sm:$0xff]  }
 0x785   :  { %2642 = vmatprep.mubr.bf16.mxu0 %v2409_v16  ;;  %vm6897_vm4 = vcmp.lt.s32.totalorder %v1334_v6, %v2802_v8  ;;  %vm1341_vm7 = vcmp.lt.s32.totalorder %v1334_v6, %v1340_v11  ;;  %v6078_v16 = vld [vmem:[%s7260_s3 + $0x90] sm:$0xff]   ;;  %v6091_v6 = vld [vmem:[%s7233_s6 + $0x280] sm:$0xff]   ;;  %v6094_v8 = vld [vmem:[%s7233_s6 + $0x2c8] sm:$0xff]  }
 0x786   :  { %2643 = vmatmul.mubr.bf16.vlgmr.msra.gmra.mrb[104].mxu0 %v2408_v17  ;;  %vm2804_vm5 = vmand %vm6893_vm3, %vm6897_vm4  ;;  %v4777_v17 = vld [vmem:[%s7240_s13 + $0x1] ss:$0 sm:$0xff] }
 0x787   :  { %5707 = vmatpush3.bf16.msra.mxu0 %v6063_v30  ;;  %5722 = vmatprep.mubr.msk.bf16.mxu0 %vm6222_vm0, %v6221_v0  ;;  %vm1342_vm8 = vmand %vm1338_vm6, %vm1341_vm7  ;;  %v6079_v30 = vld [vmem:[%s7260_s3 + $0x98] sm:$0xff]  }
 0x788   :  { %5708 = vmatprep.subr.bf16.mxu0 %v6221_v0  ;;  %v4540_v12 = vsel %vm1342_vm8, 1.0, %v6221_v0 }
 0x789   :  { %v6909_v14 = vpack.c.bf16 %v4540_v12, %v4540_v12 }
 0x78b   :  { %5709 = vmatpush3.bf16.msra.mxu0 %v6064_v39 }
 0x78c   :  { %v5704_v20 = vpop.f32.mrb[76].mxu1  ;;  %5710 = vmatprep.subr.bf16.mxu0 %v6221_v0 }
 0x78d   :  { %v2394_v21 = vadd.f32 %v5704_v20, %v4735_v2  ;;  %v2385_v22 = vpop.f32.mrb[77].mxu1 }
 0x78e   :  { %v2386_v24 = vadd.f32 %v4735_v2, %v2385_v22  ;;  %v5705_v25 = vpop.f32.mrb[78].mxu1 }
 0x78f   :  { %v2397_v26 = vadd.f32 %v5705_v25, %v4735_v2  ;;  %v2388_v27 = vpop.f32.mrb[79].mxu1  ;;  %v2406_v29 = vmax.f32 %v2394_v21, 0.0  ;;  %5711 = vmatpush3.bf16.msra.mxu0 %v6065_v40 }
 0x790   :  { %v2389_v28 = vadd.f32 %v4735_v2, %v2388_v27  ;;  %v2404_v33 = vmax.f32 %v2386_v24, 0.0  ;;  %5712 = vmatprep.subr.bf16.mxu0 %v6221_v0 }
 0x791   :  { %v2407_v31 = vmax.f32 %v2397_v26, 0.0 }
 0x792   :  { %v2405_v35 = vmax.f32 %v2389_v28, 0.0 }
 0x793   :  { %v2411_v36 = vpack.c.bf16 %v2407_v31, %v2406_v29  ;;  %5713 = vmatpush3.bf16.msra.mxu0 %v6066_v41  ;;  %v6071_v41 = vld [vmem:[%s7266_s0] sm:$0xff]  }
 0x794   :  { %v2410_v37 = vpack.c.bf16 %v2405_v35, %v2404_v33  ;;  %5714 = vmatprep.subr.bf16.mxu0 %v6221_v0 }
 0x795   :  { %2683 = vmatprep.mubr.bf16.mxu1 %v2411_v36  ;;  %v4786_v36 = vsel %vm2804_vm5, 1.0, %v6221_v0 }
 0x796   :  { %2684 = vmatmul.mubr.bf16.vlgmr.msra.gmra.mrb[80].mxu1 %v2410_v37  ;;  %v2807_v39 = vpack.c.bf16 %v4786_v36, %v4786_v36 }
 0x797   :  { %5733 = vmatpush3.bf16.msra.mxu1 %v2857_v38  ;;  %5734 = vmatprep.mubr.msk.bf16.mxu1 %vm6222_vm0, %v6221_v0  ;;  %v4789_v38 = vld [vmem:[%s7258_s23 + $0x8] sm:$0xf] }
 0x798   :  { %5760 = vmatprep.subr.bf16.mxu1 %v6221_v0  ;;  %5715 = vmatpush3.bf16.msra.mxu0 %v6067_v42  ;;  %v3139_v40 = vsel %vm310_vm1, %v4789_v38, 0  ;;  %v6072_v42 = vld [vmem:[%s7266_s0 + $0x8] sm:$0xff]   ;;  %v6096_v38 = vld [vmem:[%s7233_s6 + $0x260] sm:$0xff]  }
 0x799   :  { %5716 = vmatprep.subr.bf16.mxu0 %v6221_v0 }
 0x79c   :  { %5717 = vmatpush3.bf16.msra.mxu0 %v6068_v43  ;;  %v6073_v43 = vld [vmem:[%s7266_s0 + $0x10] sm:$0xff]  }
 0x79d   :  { %5718 = vmatprep.subr.bf16.mxu0 %v6221_v0 }
 0x79e   :  { %5735 = vmatmul.mubr.msk.bf16.vlgmr.msra.gmra.mrb[84].mxu1 %vm294_vm2, %v6909_v14 }
 0x79f   :  { %5761 = vmatpush3.bf16.msra.mxu1 %v6076_v13  ;;  %5776 = vmatprep.mubr.msk.bf16.mxu1 %vm6222_vm0, %v6221_v0 }
 0x7a0   :  { %5719 = vmatpush3.bf16.msra.mxu0 %v6069_v44  ;;  %5762 = vmatprep.subr.bf16.mxu1 %v6221_v0  ;;  %v6074_v44 = vld [vmem:[%s7266_s0 + $0x18] sm:$0xff]  }
 0x7a1   :  { %5720 = vmatprep.subr.bf16.mxu0 %v6221_v0 }
 0x7a3   :  { %5763 = vmatpush3.bf16.msra.mxu1 %v6077_v15 }
 0x7a4   :  { %5721 = vmatpush3.bf16.msra.mxu0 %v6070_v45  ;;  %5764 = vmatprep.subr.bf16.mxu1 %v6221_v0  ;;  %v6075_v45 = vld [vmem:[%s7266_s0 + $0x20] ss:$0 sps:$4 sm:$0xff]  }
 0x7a5   :  { %5726 = vmatprep.subr.bf16.mxu0 %v6221_v0 }
 0x7a7   :  { %5765 = vmatpush3.bf16.msra.mxu1 %v6078_v16 }
 0x7a8   :  { %5766 = vmatprep.subr.bf16.mxu1 %v6221_v0 }
 0x7ab   :  { %5767 = vmatpush3.bf16.msra.mxu1 %v6079_v30 }
 0x7ac   :  { %5768 = vmatprep.subr.bf16.mxu1 %v6221_v0 }
 0x859   :  { %v5304_v46 = vpop.f32.mrb[104].mxu0 }
 0x85a   :  { %v5305_v47 = vpop.f32.mrb[105].mxu0 }
 0x85b   :  { %v5306_v48 = vadd.f32 %v5305_v47, %v5304_v46  ;;  %v5307_v50 = vpop.f32.mrb[106].mxu0  ;;  %v6080_v46 = vld [vmem:[%s7260_s3 + $0xa0] sm:$0xff]   ;;  %v6081_v47 = vld [vmem:[%s7260_s3 + $0xa8] sm:$0xff]  }
 0x85c   :  { %v5308_v51 = vpop.f32.mrb[107].mxu0  ;;  %5769 = vmatpush3.bf16.msra.mxu1 %v6080_v46  ;;  %v6104_v46 = vld [vmem:[%s7233_s6 + $0x270] sm:$0xff]  }
 0x85d   :  { %v5309_v49 = vadd.f32 %v5308_v51, %v5307_v50  ;;  %v2645_v53 = vadd.f32 %v5306_v48, %v4744_v54  ;;  %5770 = vmatprep.subr.bf16.mxu1 %v6221_v0  ;;  %v6082_v48 = vld [vmem:[%s7260_s3 + $0xb0] sm:$0xff]   ;;  %v6083_v50 = vld [vmem:[%s7260_s3 + $0xb8] sm:$0xff]   ;;  %v6084_v51 = vld [vmem:[%s7233_s6 + $0x240] sm:$0xff]  }
 0x85f   :  { %v2648_v59 = vadd.f32 %v5309_v49, %v4744_v54  ;;  %v6085_v49 = vld [vmem:[%s7233_s6 + $0x200] sm:$0xff]   ;;  %v6086_v54 = vld [vmem:[%s7233_s6 + $0x248] sm:$0xff]  }
 0x860   :  { %5771 = vmatpush3.bf16.msra.mxu1 %v6081_v47  ;;  %v6105_v47 = vld [vmem:[%s7233_s6 + $0x230] sm:$0xff]  }
 0x861   :  { %5772 = vmatprep.subr.bf16.mxu1 %v6221_v0 }
 0x864   :  { %5773 = vmatpush3.bf16.msra.mxu1 %v6082_v48  ;;  %v6106_v48 = vld [vmem:[%s7233_s6 + $0x2e0] sm:$0xff]  }
 0x865   :  { %5774 = vmatprep.subr.bf16.mxu1 %v6221_v0 }
 0x868   :  { %5775 = vmatpush3.bf16.msra.mxu1 %v6083_v50  ;;  %v6107_v50 = vld [vmem:[%s7233_s6 + $0x2a0] sm:$0xff]  }
 0x869   :  { %v5326_v55 = vpop.f32.mrb[80].mxu1 }
 0x86a   :  { %v5327_v52 = vpop.f32.mrb[81].mxu1 }
 0x86b   :  { %v5328_v56 = vadd.f32 %v5327_v52, %v5326_v55  ;;  %v5329_v57 = vpop.f32.mrb[82].mxu1  ;;  %v6090_v55 = vld [vmem:[%s7233_s6 + $0x2c0] sm:$0xff]   ;;  %v6087_v52 = vld [vmem:[%s7233_s6 + $0x208] sm:$0xff]  }
 0x86c   :  { %v5330_v58 = vpop.f32.mrb[83].mxu1  ;;  %5392 = vmatprep.subr.bf16.mxu1 %v6090_v55  ;;  %v6111_v55 = vld [vmem:[%s7233_s6 + $0x2a8] sm:$0xff]  }
 0x86d   :  { %v2686_v60 = vadd.f32 %v5328_v56, %v2645_v53  ;;  %v5331_v61 = vadd.f32 %v5330_v58, %v5329_v57  ;;  %v6088_v53 = vld [vmem:[%s7233_s6 + $0x250] sm:$0xff]   ;;  %v6092_v57 = vld [vmem:[%s7233_s6 + $0x258] sm:$0xff]  }
 0x86e   :  { %v6089_v56 = vld [vmem:[%s7233_s6 + $0x210] sm:$0xff]   ;;  %v6093_v58 = vld [vmem:[%s7233_s6 + $0x218] sm:$0xff]  }
 0x86f   :  { %v2689_v62 = vadd.f32 %v5331_v61, %v2648_v59  ;;  %v2692_v63 = vmax.f32 %v2686_v60, 0.0 }
 0x871   :  { %v2693_v1 = vmax.f32 %v2689_v62, 0.0 }
 0x873   :  { %v2694_v2 = vpack.c.bf16 %v2693_v1, %v2692_v63 }
 0x875   :  { %5723 = vmatmul.mubr.bf16.vlgmr.msra.gmra.mrb[108].mxu0 %v2694_v2 }
 0x876   :  { %5728 = vmatprep.mubr.msk.bf16.mxu0 %vm6222_vm0, %v6221_v0 }
 0x948   :  { %v2783_v18 = vpop.f32.mrb[108].mxu0 }
 0x949   :  { %v2784_v19 = vadd.f32 %v4777_v17, %v2783_v18  ;;  %v5724_v20 = vpop.f32.mrb[109].mxu0 }
 0x94a   :  { %v2786_v21 = vpop.f32.mrb[110].mxu0 }
 0x94b   :  { %v2790_v22 = vmax.f32 %v2784_v19, -1.0  ;;  %v2787_v23 = vadd.f32 %v4777_v17, %v2786_v21  ;;  %v5725_v24 = vpop.f32.mrb[111].mxu0 }
 0x94d   :  { %v2792_v25 = vmin.f32 %v2790_v22, 0.9921875  ;;  %v2791_v26 = vmax.f32 %v2787_v23, -1.0 }
 0x94f   :  { %v2794_v27 = vmul.f32 128.0, %v2792_v25  ;;  %v2793_v28 = vmin.f32 %v2791_v26, 0.9921875 }
 0x951   :  { %v5872_v29 = vround.rtne.f32 %v2794_v27  ;;  %v2795_v31 = vmul.f32 128.0, %v2793_v28 }
 0x953   :  { %v5873_v32 = vround.rtne.f32 %v2795_v31  ;;  %v2798_v33 = vmul.f32 0.0078125, %v5872_v29 }
 0x955   :  { %v2799_v35 = vmul.f32 0.0078125, %v5873_v32 }
 0x957   :  { %v2808_v37 = vpack.c.bf16 %v2799_v35, %v2798_v33 }
 0x959   :  { %5727 = vmatpush3.bf16.msra.mxu0 %v2808_v37 }
 0x95a   :  { %5738 = vmatprep.subr.bf16.mxu0 %v6221_v0 }
 0x95c   :  { %5729 = vmatmul.mubr.msk.bf16.vlgmr.msra.gmra.mrb[112].mxu0 %vm2809_vm9, %v2807_v39  ;;  %v6097_v39 = vld [vmem:[%s7233_s6 + $0x220] sm:$0xff]  }
 0x95d   :  { %5739 = vmatpush3.bf16.msra.mxu0 %v3139_v40  ;;  %5740 = vmatprep.mubr.msk.bf16.mxu0 %vm6222_vm0, %v6221_v0  ;;  %v6098_v40 = vld [vmem:[%s7233_s6 + $0x2d0] sm:$0xff]  }
 0x95e   :  { %5364 = vmatprep.subr.bf16.mxu0 %v6084_v51  ;;  %v6108_v51 = vld [vmem:[%s7233_s6 + $0x278] sm:$0xff]  }
 0x964   :  { %5741 = vmatmul.mubr.msk.bf16.vlgmr.msra.gmra.mrb[116].mxu0 %vm294_vm2, %v6071_v41  ;;  %v6099_v41 = vld [vmem:[%s7233_s6 + $0x290] sm:$0xff]  }
 0x965   :  { %5744 = vmatprep.mubr.msk.bf16.mxu0 %vm6222_vm0, %v6221_v0  ;;  %5365 = vmatpush3.bf16.msra.mxu0 %v6085_v49  ;;  %v6109_v49 = vld [vmem:[%s7233_s6 + $0x238] sm:$0xff]  }
 0x966   :  { %5366 = vmatprep.subr.bf16.mxu0 %v6086_v54  ;;  %v6110_v54 = vld [vmem:[%s7233_s6 + $0x2e8] sm:$0xff]  }
 0x969   :  { %5367 = vmatpush3.bf16.msra.mxu0 %v6087_v52  ;;  %v6112_v52 = vld [vmem:[%s7233_s6 + $0x2f0] sm:$0xff]  }
 0x96a   :  { %5368 = vmatprep.subr.bf16.mxu0 %v6088_v53  ;;  %v6113_v53 = vld [vmem:[%s7233_s6 + $0x2b0] sm:$0xff]  }
 0x96c   :  { %5745 = vmatmul.mubr.msk.bf16.gmra.mrb[120].mxu0 %vm294_vm2, %v6072_v42  ;;  %v6100_v42 = vld [vmem:[%s7233_s6 + $0x268] sm:$0xff]  }
 0x96d   :  { %5748 = vmatprep.mubr.msk.bf16.mxu0 %vm6222_vm0, %v6221_v0  ;;  %5369 = vmatpush3.bf16.msra.mxu0 %v6089_v56  ;;  %v6114_v56 = vld [vmem:[%s7233_s6 + $0x2f8] sm:$0xff]  }
 0x96e   :  { %5370 = vmatprep.subr.bf16.mxu0 %v6092_v57  ;;  %v6115_v57 = vld [vmem:[%s7233_s6 + $0x2b8] sm:$0xff]  }
 0x971   :  { %5371 = vmatpush3.bf16.msra.mxu0 %v6093_v58  ;;  %v4925_v58 = vld [vmem:[%s7232_s5 + $0x2] ss:$0 sm:$0xff] }
 0x972   :  { %5372 = vmatprep.subr.bf16.mxu0 %v6096_v38 }
 0x974   :  { %5749 = vmatmul.mubr.msk.bf16.gmra.mrb[124].mxu0 %vm294_vm2, %v6073_v43  ;;  %v6101_v43 = vld [vmem:[%s7233_s6 + $0x228] sm:$0xff]  }
 0x975   :  { %5752 = vmatprep.mubr.msk.bf16.mxu0 %vm6222_vm0, %v6221_v0  ;;  %5373 = vmatpush3.bf16.msra.mxu0 %v6097_v39 }
 0x976   :  { %5374 = vmatprep.subr.bf16.mxu0 %v6100_v42  ;;  %v6116_v42 = vld [vmem:[%s7235_s8 + $0x80] sm:$0xff]  }
 0x979   :  { %5375 = vmatpush3.bf16.msra.mxu0 %v6101_v43  ;;  %v6117_v43 = vld [vmem:[%s7235_s8 + $0x88] sm:$0xff]  }
 0x97a   :  { %5376 = vmatprep.subr.bf16.mxu0 %v6104_v46  ;;  %v6120_v46 = vld [vmem:[%s7235_s8 + $0xa0] sm:$0xff]  }
 0x97c   :  { %5753 = vmatmul.mubr.msk.bf16.gmra.mrb[128].mxu0 %vm294_vm2, %v6074_v44  ;;  %v6102_v44 = vld [vmem:[%s7233_s6 + $0x2d8] sm:$0xff]  }
 0x97d   :  { %5756 = vmatprep.mubr.msk.bf16.mxu0 %vm6222_vm0, %v6221_v0  ;;  %5377 = vmatpush3.bf16.msra.mxu0 %v6105_v47  ;;  %v6121_v47 = vld [vmem:[%s7235_s8 + $0xa8] sm:$0xff]  }
 0x97e   :  { %5378 = vmatprep.subr.bf16.mxu0 %v6108_v51  ;;  %v6124_v51 = vld [vmem:[#allocation2 + $0x2c0] sm:$0xff]  }
 0x981   :  { %5379 = vmatpush3.bf16.msra.mxu0 %v6109_v49  ;;  %v6125_v49 = vld [vmem:[#allocation2 + $0x240] sm:$0xff]  }
 0x982   :  { %5796 = vmatprep.subr.bf16.mxu0 %v6116_v42 }
 0x984   :  { %5757 = vmatmul.mubr.msk.bf16.gmra.mrb[132].mxu0 %vm294_vm2, %v6075_v45  ;;  %v6103_v45 = vld [vmem:[%s7233_s6 + $0x298] sm:$0xff]  }
 0xa2f   :  { %v7014_v59 = vpop.f32.mrb[112].mxu0 }
 0xa30   :  { %v5730_v60 = vpop.f32.mrb[113].mxu0 }
 0xa31   :  { %v2850_v61 = vpop.f32.mrb[114].mxu0 }
 0xa32   :  { %v5731_v62 = vpop.f32.mrb[115].mxu0 }
 0xa37   :  { %v3175_v63 = vpop.f32.mrb[116].mxu0 }
 0xa38   :  { %v5742_v1 = vpop.f32.mrb[117].mxu0  ;;  %v3213_v3 = vmax.f32 %v3175_v63, 0.0 }
 0xa39   :  { %v3178_v2 = vpop.f32.mrb[118].mxu0 }
 0xa3a   :  { %v3214_v4 = vmax.f32 %v3178_v2, 0.0  ;;  %v5743_v5 = vpop.f32.mrb[119].mxu0 }
 0xa3c   :  { %v3222_v7 = vpack.c.bf16 %v3214_v4, %v3213_v3 }
 0xa3e   :  { %5777 = vmatmul.mubr.bf16.vlgmr.msra.gmra.mrb[88].mxu1 %v3222_v7 }
 0xa3f   :  { %v3183_v34 = vpop.f32.mrb[120].mxu0  ;;  %5780 = vmatprep.mubr.msk.bf16.mxu1 %vm6222_vm0, %v6221_v0  ;;  %5393 = vmatpush3.bf16.msra.mxu1 %v6091_v6 }
 0xa40   :  { %v5746_v10 = vpop.f32.mrb[121].mxu0  ;;  %5394 = vmatprep.subr.bf16.mxu1 %v6094_v8  ;;  %v3215_v12 = vmax.f32 %v3183_v34, 0.0 }
 0xa41   :  { %v3186_v11 = vpop.f32.mrb[122].mxu0 }
 0xa42   :  { %v3216_v13 = vmax.f32 %v3186_v11, 0.0  ;;  %v5747_v15 = vpop.f32.mrb[123].mxu0 }
 0xa43   :  { %5395 = vmatpush3.bf16.msra.mxu1 %v6095_v9 }
 0xa44   :  { %v3223_v16 = vpack.c.bf16 %v3216_v13, %v3215_v12  ;;  %5396 = vmatprep.subr.bf16.mxu1 %v6098_v40 }
 0xa46   :  { %5781 = vmatmul.mubr.bf16.gmra.mrb[92].mxu1 %v3223_v16 }
 0xa47   :  { %v3191_v30 = vpop.f32.mrb[124].mxu0  ;;  %5784 = vmatprep.mubr.msk.bf16.mxu1 %vm6222_vm0, %v6221_v0  ;;  %5397 = vmatpush3.bf16.msra.mxu1 %v6099_v41 }
 0xa48   :  { %v5750_v17 = vpop.f32.mrb[125].mxu0  ;;  %v3217_v19 = vmax.f32 %v3191_v30, 0.0  ;;  %5398 = vmatprep.subr.bf16.mxu1 %v6102_v44  ;;  %v6118_v44 = vld [vmem:[%s7235_s8 + $0x90] sm:$0xff]  }
 0xa49   :  { %v3194_v18 = vpop.f32.mrb[126].mxu0 }
 0xa4a   :  { %v3218_v20 = vmax.f32 %v3194_v18, 0.0  ;;  %v5751_v21 = vpop.f32.mrb[127].mxu0 }
 0xa4b   :  { %5399 = vmatpush3.bf16.msra.mxu1 %v6103_v45  ;;  %v6119_v45 = vld [vmem:[%s7235_s8 + $0x98] sm:$0xff]  }
 0xa4c   :  { %v3224_v22 = vpack.c.bf16 %v3218_v20, %v3217_v19  ;;  %5400 = vmatprep.subr.bf16.mxu1 %v6106_v48  ;;  %v6122_v48 = vld [vmem:[%s7235_s8 + $0xb0] sm:$0xff]  }
 0xa4e   :  { %5785 = vmatmul.mubr.bf16.gmra.mrb[96].mxu1 %v3224_v22 }
 0xa4f   :  { %v3199_v23 = vpop.f32.mrb[128].mxu0  ;;  %5788 = vmatprep.mubr.msk.bf16.mxu1 %vm6222_vm0, %v6221_v0  ;;  %5401 = vmatpush3.bf16.msra.mxu1 %v6107_v50  ;;  %v6123_v50 = vld [vmem:[%s7235_s8 + $0xb8] sm:$0xff]  }
 0xa50   :  { %v5754_v24 = vpop.f32.mrb[129].mxu0  ;;  %v3219_v26 = vmax.f32 %v3199_v23, 0.0  ;;  %5402 = vmatprep.subr.bf16.mxu1 %v6110_v54  ;;  %v6127_v54 = vld [vmem:[#allocation2 + $0x200] sm:$0xff]  }
 0xa51   :  { %v3202_v25 = vpop.f32.mrb[130].mxu0 }
 0xa52   :  { %v3220_v27 = vmax.f32 %v3202_v25, 0.0  ;;  %v5755_v28 = vpop.f32.mrb[131].mxu0 }
 0xa53   :  { %5403 = vmatpush3.bf16.msra.mxu1 %v6111_v55  ;;  %v6129_v55 = vld [vmem:[#allocation2 + $0x248] sm:$0xff]  }
 0xa54   :  { %v3225_v29 = vpack.c.bf16 %v3220_v27, %v3219_v26  ;;  %5404 = vmatprep.subr.bf16.mxu1 %v6112_v52  ;;  %v6131_v52 = vld [vmem:[#allocation2 + $0x208] sm:$0xff]  }
 0xa56   :  { %5789 = vmatmul.mubr.bf16.gmra.mrb[100].mxu1 %v3225_v29 }
 0xa57   :  { %v3207_v31 = vpop.f32.mrb[132].mxu0  ;;  %5792 = vmatprep.mubr.msk.bf16.mxu1 %vm6222_vm0, %v6221_v0  ;;  %5405 = vmatpush3.bf16.msra.mxu1 %v6113_v53  ;;  %v6133_v53 = vld [vmem:[#allocation2 + $0x250] sm:$0xff]  }
 0xa58   :  { %v3221_v32 = vmax.f32 %v3207_v31, 0.0  ;;  %v5758_v33 = vpop.f32.mrb[133].mxu0  ;;  %5406 = vmatprep.subr.bf16.mxu1 %v6114_v56  ;;  %v6135_v56 = vld [vmem:[#allocation2 + $0x210] sm:$0xff]  }
 0xa59   :  { %v3210_v35 = vpop.f32.mrb[134].mxu0 }
 0xa5a   :  { %v3226_v36 = vpack.c.bf16 %v3221_v32, %v3221_v32  ;;  %v5759_v37 = vpop.f32.mrb[135].mxu0 }
 0xa5b   :  { %5407 = vmatpush3.bf16.msra.mxu1 %v6115_v57  ;;  %v6137_v57 = vld [vmem:[#allocation2 + $0x258] sm:$0xff]  }
 0xa5c   :  { %5430 = vmatprep.subr.bf16.mxu1 %v6125_v49  ;;  %v6147_v49 = vld [vmem:[#allocation2 + $0x228] sm:$0xff]  }
 0xa5e   :  { %5793 = vmatmul.mubr.bf16.gmra.mrb[104].mxu1 %v3226_v36 }
 0xb11   :  { %v3315_v60 = vpop.f32.mrb[88].mxu1 }
 0xb12   :  { %v3316_v61 = vadd.f32 %v4925_v58, %v3315_v60  ;;  %v5778_v62 = vpop.f32.mrb[89].mxu1  ;;  %v6141_v60 = vld [vmem:[#allocation2 + $0x260] sm:$0xff]  }
 0xb13   :  { %v3318_v63 = vpop.f32.mrb[90].mxu1  ;;  %v6145_v62 = vld [vmem:[#allocation2 + $0x268] sm:$0xff]  }
 0xb14   :  { %v3319_v1 = vadd.f32 %v4925_v58, %v3318_v63  ;;  %v5779_v2 = vpop.f32.mrb[91].mxu1  ;;  %v3353_v3 = vmax.f32 %v3316_v61, 0.0  ;;  %v6143_v61 = vld [vmem:[#allocation2 + $0x220] sm:$0xff]  }
 0xb16   :  { %v3354_v4 = vmax.f32 %v3319_v1, 0.0 }
 0xb18   :  { %v3362_v5 = vpack.c.bf16 %v3354_v4, %v3353_v3 }
 0xb19   :  { %v3323_v6 = vpop.f32.mrb[92].mxu1 }
 0xb1a   :  { %v3324_v7 = vadd.f32 %v4925_v58, %v3323_v6  ;;  %v5782_v8 = vpop.f32.mrb[93].mxu1  ;;  %v4934_v6 = vld [vmem:[%s7234_s7 + $0x2] ss:$0 sm:$0xff] }
 0xb1b   :  { %v3326_v34 = vpop.f32.mrb[94].mxu1 }
 0xb1c   :  { %v3355_v9 = vmax.f32 %v3324_v7, 0.0  ;;  %v5783_v10 = vpop.f32.mrb[95].mxu1  ;;  %v3327_v12 = vadd.f32 %v4925_v58, %v3326_v34 }
 0xb1e   :  { %v3363_v11 = vpack.c.bf16 %v3355_v9, %v3354_v4  ;;  %v3356_v17 = vmax.f32 %v3327_v12, 0.0 }
 0xb20   :  { %3598 = vmatprep.mubr.bf16.mxu0 %v3363_v11 }
 0xb21   :  { %v3331_v13 = vpop.f32.mrb[96].mxu1  ;;  %3599 = vmatmul.mubr.bf16.vlgmr.msra.gmra.mrb[136].mxu0 %v3362_v5 }
 0xb22   :  { %v3332_v15 = vadd.f32 %v4925_v58, %v3331_v13  ;;  %v5786_v16 = vpop.f32.mrb[97].mxu1  ;;  %5797 = vmatpush3.bf16.msra.mxu0 %v6116_v42  ;;  %v6130_v42 = vld [vmem:[#allocation2 + $0x288] sm:$0xff]  }
 0xb23   :  { %v3334_v30 = vpop.f32.mrb[98].mxu1  ;;  %5798 = vmatprep.subr.bf16.mxu0 %v6117_v43 }
 0xb24   :  { %v3357_v18 = vmax.f32 %v3332_v15, 0.0  ;;  %v3335_v19 = vadd.f32 %v4925_v58, %v3334_v30  ;;  %v5787_v20 = vpop.f32.mrb[99].mxu1 }
 0xb26   :  { %v3364_v21 = vpack.c.bf16 %v3357_v18, %v3356_v17  ;;  %v3358_v22 = vmax.f32 %v3335_v19, 0.0  ;;  %5799 = vmatpush3.bf16.msra.mxu0 %v6117_v43  ;;  %v6132_v43 = vld [vmem:[#allocation2 + $0x2d0] sm:$0xff]  }
 0xb27   :  { %5800 = vmatprep.subr.bf16.mxu0 %v6118_v44 }
 0xb28   :  { %v3365_v23 = vpack.c.bf16 %v3358_v22, %v3357_v18 }
 0xb29   :  { %v3339_v24 = vpop.f32.mrb[100].mxu1 }
 0xb2a   :  { %v3340_v25 = vadd.f32 %v4925_v58, %v3339_v24  ;;  %v5790_v26 = vpop.f32.mrb[101].mxu1  ;;  %3606 = vmatprep.mubr.bf16.mxu0 %v3365_v23  ;;  %3647 = vmatprep.mubr.bf16.mxu1 %v3365_v23 }
 0xb2b   :  { %v3342_v27 = vpop.f32.mrb[102].mxu1  ;;  %3607 = vmatmul.mubr.bf16.gmra.mrb[140].mxu0 %v3364_v21  ;;  %3648 = vmatmul.mubr.bf16.vlgmr.msra.gmra.mrb[108].mxu1 %v3364_v21 }
 0xb2c   :  { %v3343_v28 = vadd.f32 %v4925_v58, %v3342_v27  ;;  %v5791_v29 = vpop.f32.mrb[103].mxu1  ;;  %v3359_v31 = vmax.f32 %v3340_v25, 0.0  ;;  %5801 = vmatpush3.bf16.msra.mxu0 %v6118_v44  ;;  %5431 = vmatpush3.bf16.msra.mxu1 %v6127_v54  ;;  %v6134_v44 = vld [vmem:[#allocation2 + $0x290] sm:$0xff]  }
 0xb2d   :  { %5802 = vmatprep.subr.bf16.mxu0 %v6119_v45  ;;  %5432 = vmatprep.subr.bf16.mxu1 %v6129_v55  ;;  %v6148_v54 = vld [vmem:[#allocation2 + $0x2f0] sm:$0xff]  }
 0xb2e   :  { %v3360_v32 = vmax.f32 %v3343_v28, 0.0  ;;  %v6149_v55 = vld [vmem:[#allocation2 + $0x270] sm:$0xff]  }
 0xb30   :  { %v3366_v33 = vpack.c.bf16 %v3360_v32, %v3359_v31  ;;  %5803 = vmatpush3.bf16.msra.mxu0 %v6119_v45  ;;  %5433 = vmatpush3.bf16.msra.mxu1 %v6131_v52  ;;  %v6136_v45 = vld [vmem:[#allocation2 + $0x2d8] sm:$0xff]   ;;  %v6150_v52 = vld [vmem:[#allocation2 + $0x2b0] sm:$0xff]  }
 0xb31   :  { %v3347_v35 = vpop.f32.mrb[104].mxu1  ;;  %5804 = vmatprep.subr.bf16.mxu0 %v6120_v46  ;;  %5434 = vmatprep.subr.bf16.mxu1 %v6133_v53  ;;  %v6151_v53 = vld [vmem:[#allocation2 + $0x230] sm:$0xff]  }
 0xb32   :  { %v3348_v36 = vadd.f32 %v4925_v58, %v3347_v35  ;;  %v5794_v37 = vpop.f32.mrb[105].mxu1  ;;  %v6139_v58 = vld [vmem:[#allocation2 + $0x218] sm:$0xff]  }
 0xb33   :  { %v3350_v38 = vpop.f32.mrb[106].mxu1 }
 0xb34   :  { %v3361_v39 = vmax.f32 %v3348_v36, 0.0  ;;  %v5795_v40 = vpop.f32.mrb[107].mxu1  ;;  %5805 = vmatpush3.bf16.msra.mxu0 %v6120_v46  ;;  %5435 = vmatpush3.bf16.msra.mxu1 %v6135_v56  ;;  %v6138_v46 = vld [vmem:[#allocation2 + $0x298] sm:$0xff]  }
 0xb35   :  { %5806 = vmatprep.subr.bf16.mxu0 %v6121_v47  ;;  %5436 = vmatprep.subr.bf16.mxu1 %v6137_v57  ;;  %v6152_v56 = vld [vmem:[#allocation2 + $0x2f8] sm:$0xff]  }
 0xb36   :  { %v3367_v41 = vpack.c.bf16 %v3361_v39, %v3360_v32  ;;  %v6126_v39 = vld [vmem:[#allocation2 + $0x280] sm:$0xff]   ;;  %v6153_v57 = vld [vmem:[#allocation2 + $0x278] sm:$0xff]  }
 0xb38   :  { %3655 = vmatprep.mubr.bf16.mxu1 %v3367_v41  ;;  %5807 = vmatpush3.bf16.msra.mxu0 %v6121_v47  ;;  %v6128_v41 = vld [vmem:[#allocation2 + $0x2c8] sm:$0xff]   ;;  %v6140_v47 = vld [vmem:[#allocation2 + $0x2e0] sm:$0xff]  }
 0xb39   :  { %3656 = vmatmul.mubr.bf16.gmra.mrb[112].mxu1 %v3366_v33  ;;  %5808 = vmatprep.subr.bf16.mxu0 %v6122_v48 }
 0xb3a   :  { %5437 = vmatpush3.bf16.msra.mxu1 %v6139_v58  ;;  %v6154_v58 = vld [vmem:[#allocation2 + $0x2b8] sm:$0xff]  }
 0xb3b   :  { %5438 = vmatprep.subr.bf16.mxu1 %v6141_v60  ;;  %v6155_v60 = vld [vmem:[#allocation2 + $0x238] sm:$0xff]  }
 0xb3c   :  { %5809 = vmatpush3.bf16.msra.mxu0 %v6122_v48  ;;  %v6142_v48 = vld [vmem:[#allocation2 + $0x2a0] sm:$0xff]  }
 0xb3d   :  { %5810 = vmatprep.subr.bf16.mxu0 %v6123_v50 }
 0xb3e   :  { %5439 = vmatpush3.bf16.msra.mxu1 %v6143_v61  ;;  %v4967_v61 = vld [vmem:[%s7236_s9 + $0x2] ss:$0 sm:$0xff] }
 0xb3f   :  { %5440 = vmatprep.subr.bf16.mxu1 %v6145_v62 }
 0xb40   :  { %5811 = vmatpush3.bf16.msra.mxu0 %v6123_v50  ;;  %v6144_v50 = vld [vmem:[#allocation2 + $0x2e8] sm:$0xff]  }
 0xb41   :  { %5452 = vmatprep.subr.bf16.mxu0 %v6124_v51  ;;  %v6146_v51 = vld [vmem:[#allocation2 + $0x2a8] sm:$0xff]  }
 0xb42   :  { %5441 = vmatpush3.bf16.msra.mxu1 %v6147_v49 }
 0xb43   :  { %5442 = vmatprep.subr.bf16.mxu1 %v6149_v55  ;;  %v6165_v55 = vld [vmem:[%s7241_s14 + $0x8] sm:$0xff]  }
 0xb46   :  { %5443 = vmatpush3.bf16.msra.mxu1 %v6151_v53 }
 0xb47   :  { %5444 = vmatprep.subr.bf16.mxu1 %v6153_v57 }
 0xb4a   :  { %5445 = vmatpush3.bf16.msra.mxu1 %v6155_v60 }
 0xb4b   :  { %5816 = vmatprep.subr.bf16.mxu1 %v6221_v0 }
 0xbf4   :  { %v5380_v63 = vpop.f32.mrb[136].mxu0 }
 0xbf5   :  { %v5381_v1 = vpop.f32.mrb[137].mxu0 }
 0xbf6   :  { %v5382_v2 = vadd.f32 %v5381_v1, %v5380_v63  ;;  %v5383_v3 = vpop.f32.mrb[138].mxu0 }
 0xbf7   :  { %v5384_v4 = vpop.f32.mrb[139].mxu0 }
 0xbf8   :  { %v5385_v5 = vadd.f32 %v5384_v4, %v5383_v3  ;;  %v3601_v10 = vadd.f32 %v5382_v2, %v4934_v6 }
 0xbfa   :  { %v3604_v17 = vadd.f32 %v5385_v5, %v4934_v6 }
 0xbfe   :  { %v5386_v7 = vpop.f32.mrb[140].mxu0  ;;  %v5408_v8 = vpop.f32.mrb[108].mxu1 }
 0xbff   :  { %v5387_v34 = vpop.f32.mrb[141].mxu0  ;;  %v5409_v9 = vpop.f32.mrb[109].mxu1 }
 0xc00   :  { %v5388_v11 = vadd.f32 %v5387_v34, %v5386_v7  ;;  %v5410_v12 = vadd.f32 %v5409_v9, %v5408_v8  ;;  %v5389_v13 = vpop.f32.mrb[142].mxu0  ;;  %v5411_v15 = vpop.f32.mrb[110].mxu1 }
 0xc01   :  { %v5390_v16 = vpop.f32.mrb[143].mxu0  ;;  %v5412_v30 = vpop.f32.mrb[111].mxu1 }
 0xc02   :  { %v3650_v18 = vadd.f32 %v5410_v12, %v3601_v10  ;;  %v5391_v19 = vadd.f32 %v5390_v16, %v5389_v13  ;;  %v5413_v20 = vadd.f32 %v5412_v30, %v5411_v15  ;;  %v3609_v27 = vadd.f32 %v5388_v11, %v4934_v6  ;;  %v6156_v13 = vld [vmem:[%s7239_s12 + $0x80] sm:$0xff]   ;;  %v6157_v16 = vld [vmem:[%s7239_s12 + $0x88] sm:$0xff]   ;;  %v6158_v30 = vld [vmem:[%s7239_s12 + $0x90] sm:$0xff]  }
 0xc04   :  { %v3653_v21 = vadd.f32 %v5413_v20, %v3604_v17  ;;  %v3664_v22 = vmax.f32 %v3650_v18, 0.0  ;;  %v3612_v32 = vadd.f32 %v5391_v19, %v4934_v6  ;;  %v6159_v17 = vld [vmem:[%s7239_s12 + $0x98] sm:$0xff]   ;;  %v6160_v18 = vld [vmem:[%s7239_s12 + $0xa0] sm:$0xff]   ;;  %v6161_v19 = vld [vmem:[%s7239_s12 + $0xa8] sm:$0xff]  }
 0xc05   :  { %v6162_v20 = vld [vmem:[%s7239_s12 + $0xb0] sm:$0xff]  }
 0xc06   :  { %v3665_v23 = vmax.f32 %v3653_v21, 0.0  ;;  %v6163_v21 = vld [vmem:[%s7239_s12 + $0xb8] sm:$0xff]  }
 0xc08   :  { %v3668_v24 = vpack.c.bf16 %v3665_v23, %v3664_v22 }
 0xc0a   :  { %5812 = vmatprep.mubr.bf16.mxu0 %v3668_v24 }
 0xc0c   :  { %v5414_v25 = vpop.f32.mrb[112].mxu1 }
 0xc0d   :  { %v5415_v26 = vpop.f32.mrb[113].mxu1 }
 0xc0e   :  { %v5416_v28 = vadd.f32 %v5415_v26, %v5414_v25  ;;  %v5417_v29 = vpop.f32.mrb[114].mxu1  ;;  %v4976_v26 = vld [vmem:[%s7238_s11 + $0x2] ss:$0 sm:$0xff] }
 0xc0f   :  { %v5418_v31 = vpop.f32.mrb[115].mxu1 }
 0xc10   :  { %v3658_v33 = vadd.f32 %v5416_v28, %v3609_v27  ;;  %v5419_v35 = vadd.f32 %v5418_v31, %v5417_v29 }
 0xc12   :  { %v3661_v36 = vadd.f32 %v5419_v35, %v3612_v32  ;;  %v3666_v37 = vmax.f32 %v3658_v33, 0.0 }
 0xc14   :  { %v3667_v38 = vmax.f32 %v3661_v36, 0.0 }
 0xc16   :  { %v3669_v40 = vpack.c.bf16 %v3667_v38, %v3666_v37 }
 0xc18   :  { %5813 = vmatmul.mubr.bf16.vlgmr.msra.gmra.mrb[144].mxu0 %v3669_v40 }
 0xc19   :  { %5453 = vmatpush3.bf16.msra.mxu0 %v6126_v39  ;;  %v5009_v39 = vld [vmem:[%s7240_s13 + $0x2] ss:$0 sm:$0xff] }
 0xc1a   :  { %5454 = vmatprep.subr.bf16.mxu0 %v6128_v41 }
 0xc1d   :  { %5455 = vmatpush3.bf16.msra.mxu0 %v6130_v42 }
 0xc1e   :  { %5456 = vmatprep.subr.bf16.mxu0 %v6132_v43 }
 0xc21   :  { %5457 = vmatpush3.bf16.msra.mxu0 %v6134_v44 }
 0xc22   :  { %5458 = vmatprep.subr.bf16.mxu0 %v6136_v45 }
 0xc25   :  { %5459 = vmatpush3.bf16.msra.mxu0 %v6138_v46 }
 0xc26   :  { %5460 = vmatprep.subr.bf16.mxu0 %v6140_v47 }
 0xc29   :  { %5461 = vmatpush3.bf16.msra.mxu0 %v6142_v48 }
 0xc2a   :  { %5462 = vmatprep.subr.bf16.mxu0 %v6144_v50 }
 0xc2d   :  { %5463 = vmatpush3.bf16.msra.mxu0 %v6146_v51 }
 0xc2e   :  { %5464 = vmatprep.subr.bf16.mxu0 %v6148_v54  ;;  %v6164_v54 = vld [vmem:[%s7241_s14] sm:$0xff]  }
 0xc31   :  { %5465 = vmatpush3.bf16.msra.mxu0 %v6150_v52 }
 0xc32   :  { %5466 = vmatprep.subr.bf16.mxu0 %v6152_v56 }
 0xc35   :  { %5467 = vmatpush3.bf16.msra.mxu0 %v6154_v58 }
 0xc36   :  { %5842 = vmatprep.subr.bf16.mxu0 %v6221_v0 }
 0xceb   :  { %v5814_v62 = vpop.f32.mrb[144].mxu0 }
 0xcec   :  { %v3767_v63 = vadd.f32 %v5814_v62, %v4967_v61  ;;  %v3758_v1 = vpop.f32.mrb[145].mxu0  ;;  %v6166_v62 = vld [vmem:[%s7243_s16] sm:$0xff]  }
 0xced   :  { %v3759_v2 = vadd.f32 %v4967_v61, %v3758_v1  ;;  %v5815_v3 = vpop.f32.mrb[146].mxu0 }
 0xcee   :  { %v3770_v4 = vadd.f32 %v5815_v3, %v4967_v61  ;;  %v3761_v5 = vpop.f32.mrb[147].mxu0  ;;  %v3775_v6 = vmax.f32 %v3767_v63, 0.0  ;;  %v5019_v63 = vld [vmem:[%s7242_s15] ss:$0 sm:$0xff] }
 0xcef   :  { %v3762_v7 = vadd.f32 %v4967_v61, %v3761_v5  ;;  %v3773_v8 = vmax.f32 %v3759_v2, 0.0 }
 0xcf0   :  { %v3776_v34 = vmax.f32 %v3770_v4, 0.0  ;;  %v3779_v11 = vpack.c.bf16 %v3775_v6, %v3775_v6 }
 0xcf1   :  { %v3774_v9 = vmax.f32 %v3762_v7, 0.0  ;;  %v3777_v15 = vpack.c.bf16 %v3773_v8, %v3773_v8 }
 0xcf2   :  { %v3780_v10 = vpack.c.bf16 %v3776_v34, %v3776_v34  ;;  %v6168_v34 = vld [vmem:[%s7245_s18] sm:$0xff]  }
 0xcf3   :  { %v3778_v12 = vpack.c.bf16 %v3774_v9, %v3774_v9  ;;  %v6169_v9 = vld [vmem:[%s7245_s18 + $0x8] sm:$0xff]   ;;  %s6223_s18 = smov [#allocation5]  }
 0xcf4   :  { %4051 = vmatprep.mubr.bf16.mxu0 %v3780_v10  ;;  %v5023_v10 = vld [vmem:[%s7244_s17] ss:$0 sm:$0xff]  ;;  %s4420_s27 = sshll.u32 %s6223_s18, 4  ;;  %s4421_s27 = int_to_ptr.vmem [resolvable:$true] %s4420_s27 }
 0xcf5   :  { %4011 = vmatprep.mubr.bf16.mxu1 %v3778_v12  ;;  %4052 = vmatmul.mubr.bf16.vlgmr.msra.gmra.mrb[148].mxu0 %v3779_v11  ;;  %s6192_s17 = scalar_lea.vmem %s4421_s27, 32  ;;  %p6197_p9 = scmp.lt.s32.totalorder %s4421_s27, %s4421_s27 }
 0xcf6   :  { %4012 = vmatmul.mubr.bf16.vlgmr.msra.gmra.mrb[116].mxu1 %v3777_v15  ;;  %5846 = vmatprep.mubr.msk.bf16.mxu0 %vm6222_vm0, %v6221_v0  ;;  %p6193_p8 = scmp.ne.s32.totalorder %s4421_s27, %s6192_s17  ;;  %p6198_p10 = scmp.lt.s32.totalorder %s6192_s17, %s6192_s17 }
 0xcf7   :  { %5817 = vmatpush3.bf16.msra.mxu1 %v6156_v13  ;;  %5832 = vmatprep.mubr.msk.bf16.mxu1 %vm6222_vm0, %v6221_v0 }
 0xcf8   :  { %5818 = vmatprep.subr.bf16.mxu1 %v6221_v0  ;;  %5843 = vmatpush3.bf16.msra.mxu0 %v6164_v54  ;;  %p6199_p11 = por %p6198_p10, %p6197_p9 }
 0xcf9   :  { %5844 = vmatprep.subr.bf16.mxu0 %v6221_v0 }
 0xcfa   :  { %p6200_p12 = pnand %p6199_p11, %p6193_p8 }
 0xcfb   :  { %5819 = vmatpush3.bf16.msra.mxu1 %v6157_v16 }
 0xcfc   :  { %5820 = vmatprep.subr.bf16.mxu1 %v6221_v0  ;;  %5845 = vmatpush3.bf16.msra.mxu0 %v6165_v55 }
 0xcfd   :  { %5850 = vmatprep.subr.bf16.mxu0 %v6221_v0 }
 0xcff   :  { %5821 = vmatpush3.bf16.msra.mxu1 %v6158_v30 }
 0xd00   :  { %5822 = vmatprep.subr.bf16.mxu1 %v6221_v0 }
 0xd03   :  { %5823 = vmatpush3.bf16.msra.mxu1 %v6159_v17 }
 0xd04   :  { %5824 = vmatprep.subr.bf16.mxu1 %v6221_v0 }
 0xd07   :  { %5825 = vmatpush3.bf16.msra.mxu1 %v6160_v18 }
 0xd08   :  { %5826 = vmatprep.subr.bf16.mxu1 %v6221_v0 }
 0xd0b   :  { %5827 = vmatpush3.bf16.msra.mxu1 %v6161_v19 }
 0xd0c   :  { %5828 = vmatprep.subr.bf16.mxu1 %v6221_v0 }
 0xd0f   :  { %5829 = vmatpush3.bf16.msra.mxu1 %v6162_v20 }
 0xd10   :  { %5830 = vmatprep.subr.bf16.mxu1 %v6221_v0 }
 0xd13   :  { %5831 = vmatpush3.bf16.msra.mxu1 %v6163_v21 }
 0xd14   :  { %5836 = vmatprep.subr.bf16.mxu1 %v6221_v0 }
 0xdc8   :  { %v5468_v22 = vpop.f32.mrb[148].mxu0 }
 0xdc9   :  { %v5446_v23 = vpop.f32.mrb[116].mxu1  ;;  %v5469_v24 = vpop.f32.mrb[149].mxu0 }
 0xdca   :  { %v5470_v25 = vadd.f32 %v5469_v24, %v5468_v22  ;;  %v5447_v27 = vpop.f32.mrb[117].mxu1  ;;  %v5471_v28 = vpop.f32.mrb[150].mxu0 }
 0xdcb   :  { %v5448_v29 = vadd.f32 %v5447_v27, %v5446_v23  ;;  %v5449_v31 = vpop.f32.mrb[118].mxu1  ;;  %v5472_v32 = vpop.f32.mrb[151].mxu0 }
 0xdcc   :  { %v5450_v33 = vpop.f32.mrb[119].mxu1 }
 0xdcd   :  { %v4014_v35 = vadd.f32 %v5448_v29, %v4976_v26 }
 0xdcf   :  { %v4054_v36 = vadd.f32 %v5470_v25, %v4014_v35 }
 0xdd1   :  { %v4059_v37 = vmax.f32 %v4054_v36, 0.0 }
 0xdd3   :  { %v4060_v38 = vpack.c.bf16 %v4059_v37, %v4059_v37 }
 0xdd5   :  { %5833 = vmatmul.mubr.bf16.vlgmr.msra.gmra.mrb[120].mxu1 %v4060_v38 }
 0xdd6   :  { %5838 = vmatprep.mubr.msk.bf16.mxu1 %vm6222_vm0, %v6221_v0 }
 0xea8   :  { %v4149_v40 = vpop.f32.mrb[120].mxu1 }
 0xea9   :  { %v4150_v41 = vadd.f32 %v5009_v39, %v4149_v40  ;;  %v5834_v42 = vpop.f32.mrb[121].mxu1 }
 0xeaa   :  { %v4152_v43 = vpop.f32.mrb[122].mxu1 }
 0xeab   :  { %v4155_v44 = vmax.f32 %v4150_v41, -1.0  ;;  %v5835_v45 = vpop.f32.mrb[123].mxu1 }
 0xead   :  { %v4156_v46 = vmin.f32 %v4155_v44, 0.9921875 }
 0xeaf   :  { %v4157_v47 = vmul.f32 128.0, %v4156_v46 }
 0xeb1   :  { %v5874_v48 = vround.rtne.f32 %v4157_v47 }
 0xeb3   :  { %v4159_v50 = vmul.f32 0.0078125, %v5874_v48 }
 0xeb5   :  { %v4160_v51 = vpack.c.bf16 %v4159_v50, %v4159_v50 }
 0xeb7   :  { %v4162_v49 = vsel %vm310_vm1, %v4160_v51, 0 }
 0xeb8   :  { %5837 = vmatpush3.bf16.msra.mxu1 %v4162_v49 }
 0xebb   :  { %5839 = vmatmul.mubr.msk.bf16.vlgmr.msra.gmra.mrb[84].mxu1 %vm294_vm2, %v6909_v14 }
 0xf8e   :  { %v4198_v52 = vpop.f32.mrb[84].mxu1 }
 0xf8f   :  { %v5866_v53 = vadd.f32 %v4198_v52, %v7014_v59  ;;  %v5840_v56 = vpop.f32.mrb[85].mxu1  ;;  %v6167_v59 = vld [vmem:[%s7243_s16 + $0x8] sm:$0xff]  }
 0xf90   :  { %v4201_v57 = vpop.f32.mrb[86].mxu1 }
 0xf91   :  { %v4205_v14 = vmax.f32 %v5866_v53, -1.0  ;;  %v5841_v58 = vpop.f32.mrb[87].mxu1 }
 0xf93   :  { %v4206_v60 = vmin.f32 %v4205_v14, 0.9921875 }
 0xf95   :  { %v4207_v61 = vpack.c.bf16 %v4206_v60, %v4206_v60 }
 0xf97   :  { %5847 = vmatmul.mubr.msk.bf16.vlgmr.msra.gmra.mrb[152].mxu0 %vm4231_vm10, %v4207_v61 }
 0xf98   :  { %5854 = vmatprep.mubr.msk.bf16.mxu0 %vm6222_vm0, %v6221_v0  ;;  %5851 = vmatpush3.bf16.msra.mxu0 %v6166_v62 }
 0xf99   :  { %5852 = vmatprep.subr.bf16.mxu0 %v6221_v0 }
 0xf9c   :  { %5853 = vmatpush3.bf16.msra.mxu0 %v6167_v59 }
 0xf9d   :  { %5858 = vmatprep.subr.bf16.mxu0 %v6221_v0 }
0x106a   :  { %v4269_v1 = vpop.f32.mrb[152].mxu0 }
0x106b   :  { %v4270_v2 = vadd.f32 %v5019_v63, %v4269_v1  ;;  %v5848_v3 = vpop.f32.mrb[153].mxu0 }
0x106c   :  { %v4272_v4 = vpop.f32.mrb[154].mxu0 }
0x106d   :  { %v4275_v5 = vmax.f32 %v4270_v2, 0.0  ;;  %v5849_v6 = vpop.f32.mrb[155].mxu0 }
0x106f   :  { %v4276_v7 = vmin.f32 %v4275_v5, 0.9921875 }
0x1071   :  { %v4277_v8 = vpack.c.bf16 %v4276_v7, %v4276_v7 }
0x1073   :  { %5855 = vmatmul.mubr.msk.bf16.vlgmr.msra.gmra.mrb[156].mxu0 %vm4231_vm10, %v4277_v8 }
0x1074   :  { %5862 = vmatprep.mubr.msk.bf16.mxu0 %vm6222_vm0, %v6221_v0  ;;  %5859 = vmatpush3.bf16.msra.mxu0 %v6168_v34 }
0x1075   :  { %5860 = vmatprep.subr.bf16.mxu0 %v6221_v0  ;;  %v5027_v0 = vld [vmem:[%s7246_s19] ss:$0 sm:$0xff] }
0x1078   :  { %5861 = vmatpush3.bf16.msra.mxu0 %v6169_v9 }
0x1146   :  { %v4338_v11 = vpop.f32.mrb[156].mxu0 }
0x1147   :  { %v4339_v12 = vadd.f32 %v5023_v10, %v4338_v11  ;;  %v5856_v13 = vpop.f32.mrb[157].mxu0 }
0x1148   :  { %v4341_v15 = vpop.f32.mrb[158].mxu0 }
0x1149   :  { %v4344_v16 = vmax.f32 %v4339_v12, 0.0  ;;  %v5857_v30 = vpop.f32.mrb[159].mxu0 }
0x114b   :  { %v4345_v17 = vmin.f32 %v4344_v16, 0.9921875 }
0x114d   :  { %v4346_v18 = vpack.c.bf16 %v4345_v17, %v4345_v17 }
0x114f   :  { %5863 = vmatmul.mubr.msk.bf16.vlgmr.msra.gmra.mrb[160].mxu0 %vm4231_vm10, %v4346_v18 }
0x1222   :  { %v4407_v19 = vpop.f32.mrb[160].mxu0 }
0x1223   :  { %v4408_v20 = vadd.f32 %v5027_v0, %v4407_v19  ;;  %v5864_v21 = vpop.f32.mrb[161].mxu0 }
0x1224   :  { %v4410_v22 = vpop.f32.mrb[162].mxu0 }
0x1225   :  { %4413 = vst [vmem:[#allocation5] sm:$0x3] %v4408_v20  ;;  %v5865_v23 = vpop.f32.mrb[163].mxu0 }
0x1226   :  { %6203 = shalt.err (!%p6200_p12)
}
0x1227   :  { %s6204_s19 = scalar_lea.hbm %s7247_s20, 32 }
0x1228   :  { %p6205_p13 = scmp.ne.s32.totalorder %s7247_s20, %s6204_s19  ;;  %p6208_p0 = scmp.lt.u32.totalorder %s6204_s19, %s7247_s20 }
0x122a   :  { %p6210_p1 = pnand %p6208_p0, %p6205_p13 }
0x122c   :  { %6213 = shalt.err (!%p6210_p1)
}
0x122d   :  { %4423 = dma.vmem_to_hbm [thread:$0]  %s4421_s27, 32, %s7247_s20, [#allocation4]  }
0x122e   :  { %6216 = dma.done.wait [#allocation4], 32  }
0x122f   :  { %6217 = vsyncadd [#allocation4], 4294967264 }
0x1230   :  { %4427 = vsyncpa [#allocation3], 1 }
0x1231   :  { %4428 = vsyncpa [#allocation4], 1 }

</bundles_post_ra>
